<compile_context>
chip_gen: v7x
topology: tpu7x:2x2x1
jax: 0.10.0
libtpu: 0.0.40
codegen_flags: <defaults>
</compile_context>

<pallas_src>
import numpy as np

import jax
import jax.numpy as jnp
from jax.experimental import pallas as pl
from jax.experimental.pallas import tpu as pltpu

# ---------------- small synthetic config (stands in for 224x224 ViT-tiny) ----
IN_CHANNELS = 4          # != 3, so the 1x1-conv branch of ODViT is exercised
OUT_CHANNELS = 3         # n_cls
IMG = 32                 # stands in for 224
PATCH = 16
GRID = IMG // PATCH      # 2
NPATCH = GRID * GRID     # 4
EMBED = 32               # stands in for 192 (vit_tiny)
HEADS = 2
HEAD_DIM = EMBED // HEADS
MLP = 4 * EMBED
ENC_DEPTH = 2            # stands in for 12
DEC_DEPTH = 1
BATCH = 2
T_ENC = NPATCH + 1                       # cls + patches                (5 real tokens)
T_DEC = 1 + NPATCH + OUT_CHANNELS        # unused slot + patches + cls-emb (7 real)
TPAD = 8                                 # padded tokens per batch element (sublane aligned)
M_TOK = BATCH * TPAD                     # batch-merged row count (16)
KIN = IN_CHANNELS * PATCH * PATCH        # folded-conv patch-embed input width
OUT_PAD = 128                            # lane-dense fused output width
_OUT_USED = EMBED + OUT_CHANNELS * NPATCH
_NEG = -1e30

assert T_ENC <= TPAD and T_DEC <= TPAD and _OUT_USED <= OUT_PAD

_BLOCK_KEYS = ("ln1g", "ln1b", "wqkv", "bqkv", "wproj", "bproj",
               "ln2g", "ln2b", "w1", "b1", "w2", "b2")


# ---------------- in-kernel helpers ------------------------------------------
def _layernorm(x, g, b, eps=1e-6):
    mu = jnp.mean(x, axis=-1, keepdims=True)
    xc = x - mu
    var = jnp.mean(xc * xc, axis=-1, keepdims=True)
    return xc * jax.lax.rsqrt(var + eps) * g + b


def _transformer_block(tok, wts, layer, attn_bias):
    """Pre-norm transformer block on the batch-merged 2D token matrix.

    tok: (M_TOK, D) f32 value.  wts: dict of depth-stacked weight refs (L, ...).
    attn_bias: (M_TOK, M_TOK) additive mask (block-diagonal over batch + pad-key mask).
    """
    d = EMBED
    ln1g = wts["ln1g"][layer]
    ln1b = wts["ln1b"][layer]
    wqkv = wts["wqkv"][layer]      # (D, 3D)  columns = [q | k | v], heads contiguous
    bqkv = wts["bqkv"][layer]
    wproj = wts["wproj"][layer]    # (D, D)
    bproj = wts["bproj"][layer]
    ln2g = wts["ln2g"][layer]
    ln2b = wts["ln2b"][layer]
    w1 = wts["w1"][layer]
    b1 = wts["b1"][layer]
    w2 = wts["w2"][layer]
    b2 = wts["b2"][layer]

    scale = 1.0 / (HEAD_DIM ** 0.5)

    # ---- multi-head self-attention: one fused (M, D)x(D, 3D) QKV dot ----
    y = _layernorm(tok, ln1g, ln1b)
    qkv = jnp.dot(y, wqkv, preferred_element_type=jnp.float32) + bqkv      # (M, 3D)

    acc = jnp.zeros_like(tok)                                              # f32 accumulator
    for h in range(HEADS):
        q = qkv[:, h * HEAD_DIM:(h + 1) * HEAD_DIM]
        k = qkv[:, d + h * HEAD_DIM:d + (h + 1) * HEAD_DIM]
        v = qkv[:, 2 * d + h * HEAD_DIM:2 * d + (h + 1) * HEAD_DIM]
        s = jnp.einsum("qd,kd->qk", q, k,
                       preferred_element_type=jnp.float32) * scale + attn_bias
        s = s - jnp.max(s, axis=-1, keepdims=True)
        p = jnp.exp(s)
        p = p / jnp.sum(p, axis=-1, keepdims=True)       # exact softmax (numerics parity)
        o = jnp.dot(p, v, preferred_element_type=jnp.float32)              # (M, HEAD_DIM)
        # project through the sublane-aligned row slice of wproj; no lane concat of heads
        acc = acc + jnp.dot(o, wproj[h * HEAD_DIM:(h + 1) * HEAD_DIM, :],
                            preferred_element_type=jnp.float32)
    tok = tok + acc + bproj

    # ---- MLP ----
    y = _layernorm(tok, ln2g, ln2b)
    z = jnp.dot(y, w1, preferred_element_type=jnp.float32) + b1
    z = jax.nn.gelu(z, approximate=True)   # TODO(synk): timm ViT uses exact-erf GELU
    tok = tok + jnp.dot(z, w2, preferred_element_type=jnp.float32) + b2
    return tok


# ---------------- the single fused Pallas kernel ------------------------------
def _odvit_kernel(*refs):
    it = iter(refs)
    xp_ref = next(it)                                  # (M_TOK, KIN)  zero-padded patches
    pw_ref = next(it)                                  # (KIN, D)  1x1 conv folded in
    tbias_ref = next(it)                               # (M_TOK, D)  cls/pos/bias fold
    enc_bias_ref = next(it)                            # (M_TOK, M_TOK) attention bias
    enc = {k: next(it) for k in _BLOCK_KEYS}           # each (ENC_DEPTH, ...)
    enc_lng = next(it)
    enc_lnb = next(it)
    dmask_ref = next(it)                               # (M_TOK, D) decoder patch-row mask
    dconst_ref = next(it)                              # (M_TOK, D) decoder cls-emb rows
    dec_bias_ref = next(it)                            # (M_TOK, M_TOK)
    dec = {k: next(it) for k in _BLOCK_KEYS}           # each (DEC_DEPTH, ...)
    dec_lng = next(it)
    dec_lnb = next(it)
    wp_ref = next(it)                                  # (D, D)
    wc_ref = next(it)                                  # (D, D)
    out_ref = next(it)                                 # out: (BATCH, OUT_PAD) lane-dense
    assert next(it, None) is None                      # trace-time arg-count check

    # ---- patch embed + [cls | patches | pad] assembly + pos emb: ONE dot + ONE add ----
    tok = jnp.dot(xp_ref[...], pw_ref[...],
                  preferred_element_type=jnp.float32) + tbias_ref[...]     # (M_TOK, D)

    # ---- ViT encoder blocks + final LayerNorm ----
    enc_bias = enc_bias_ref[...]
    for l in range(ENC_DEPTH):
        tok = _transformer_block(tok, enc, l, enc_bias)
    tok = _layernorm(tok, enc_lng[...], enc_lnb[...])

    # ---- decoder input: keep patch tokens in place, drop cls, insert class embeddings ----
    dtok = tok * dmask_ref[...] + dconst_ref[...]
    dec_bias = dec_bias_ref[...]
    for l in range(DEC_DEPTH):
        dtok = _transformer_block(dtok, dec, l, dec_bias)
    dtok = _layernorm(dtok, dec_lng[...], dec_lnb[...])

    # ---- Segmenter-style mask head + fused lane-dense output (head | masks | zero pad) ----
    wp = wp_ref[...]
    wc = wc_ref[...]
    zeros_tail = jnp.zeros((1, OUT_PAD - _OUT_USED), jnp.float32)
    for b in range(BATCH):
        base = b * TPAD
        head_b = tok[base:base + 1, :]                                     # (1, D) cls feat
        pat = jnp.dot(dtok[base + 1:base + 1 + NPATCH, :], wp,
                      preferred_element_type=jnp.float32)                  # (NPATCH, D)
        cl = jnp.dot(dtok[base + 1 + NPATCH:base + TPAD, :], wc,
                     preferred_element_type=jnp.float32)                   # (n_cls, D)
        pat = pat * jax.lax.rsqrt(jnp.sum(pat * pat, axis=-1, keepdims=True) + 1e-12)
        cl = cl * jax.lax.rsqrt(jnp.sum(cl * cl, axis=-1, keepdims=True) + 1e-12)
        m = jnp.einsum("cd,pd->cp", cl, pat,
                       preferred_element_type=jnp.float32)                 # (n_cls, NPATCH)
        m_row = jnp.concatenate([m[c:c + 1, :] for c in range(OUT_CHANNELS)],
                                axis=1)                                    # (1, n_cls*NPATCH)
        out_ref[b:b + 1, :] = jnp.concatenate([head_b, m_row, zeros_tail], axis=1)


# ---------------- cost estimate ------------------------------------------------
def _cost_numbers():
    m = M_TOK

    def block(mm):
        f = 2 * mm * EMBED * 3 * EMBED                 # fused qkv
        f += HEADS * (2 * mm * mm * HEAD_DIM * 2)      # scores + PV (block-diagonal dense)
        f += 2 * mm * EMBED * EMBED                    # output projection (per-head acc)
        f += 2 * 2 * mm * EMBED * MLP                  # fc1 + fc2
        return f

    flops = 2 * m * KIN * EMBED                        # patch embed
    flops += (ENC_DEPTH + DEC_DEPTH) * block(m)
    flops += 2 * BATCH * (NPATCH + OUT_CHANNELS) * EMBED * EMBED
    flops += 2 * BATCH * OUT_CHANNELS * NPATCH * EMBED
    transc = (ENC_DEPTH + DEC_DEPTH) * (HEADS * m * m + m * MLP)   # exp + gelu
    return int(flops), int(transc)


_COST_FLOPS, _COST_TRANSC = _cost_numbers()


# ---------------- pallas_call wrapper ------------------------------------------
def _odvit_pallas(xp_pad, q):
    inputs = [xp_pad, q["fused_patch_w"], q["tok_bias"], q["enc_attn_bias"]]
    inputs += [q["enc"][k] for k in _BLOCK_KEYS]
    inputs += [q["enc_ln_g"], q["enc_ln_b"],
               q["dec_patch_mask"], q["dec_const"], q["dec_attn_bias"]]
    inputs += [q["dec"][k] for k in _BLOCK_KEYS]
    inputs += [q["dec_ln_g"], q["dec_ln_b"], q["proj_patch"], q["proj_cls"]]

    in_specs = [pl.BlockSpec(a.shape, lambda i, nd=a.ndim: (0,) * nd) for a in inputs]
    out_shape = jax.ShapeDtypeStruct((BATCH, OUT_PAD), jnp.float32)
    out_specs = pl.BlockSpec((BATCH, OUT_PAD), lambda i: (0, 0))

    bytes_accessed = int(sum(int(a.size) * a.dtype.itemsize for a in inputs)
                         + BATCH * OUT_PAD * 4)

    return pl.pallas_call(
        _odvit_kernel,
        grid=(1,),
        out_shape=out_shape,
        in_specs=in_specs,
        out_specs=out_specs,
        compiler_params=pltpu.CompilerParams(dimension_semantics=("arbitrary",)),
        cost_estimate=pl.CostEstimate(flops=_COST_FLOPS,
                                      transcendentals=_COST_TRANSC,
                                      bytes_accessed=bytes_accessed),
    )(*inputs)


# ---------------- parameters ---------------------------------------------------
def init_params(key):
    keys = iter(jax.random.split(key, 256))

    def nrm(shape, scale=0.02):
        return (scale * jax.random.normal(next(keys), shape)).astype(jnp.float32)

    def stacked_blocks(depth):
        def one():
            return {
                "ln1g": jnp.ones((1, EMBED), jnp.float32),
                "ln1b": jnp.zeros((1, EMBED), jnp.float32),
                "wqkv": nrm((EMBED, 3 * EMBED)),            # fused [q|k|v] projection
                "bqkv": jnp.zeros((1, 3 * EMBED), jnp.float32),
                "wproj": nrm((EMBED, EMBED)),
                "bproj": jnp.zeros((1, EMBED), jnp.float32),
                "ln2g": jnp.ones((1, EMBED), jnp.float32),
                "ln2b": jnp.zeros((1, EMBED), jnp.float32),
                "w1": nrm((EMBED, MLP)),
                "b1": jnp.zeros((1, MLP), jnp.float32),
                "w2": nrm((MLP, EMBED)),
                "b2": jnp.zeros((1, EMBED), jnp.float32),
            }
        layers = [one() for _ in range(depth)]
        return {k: jnp.stack([lyr[k] for lyr in layers], axis=0) for k in _BLOCK_KEYS}

    return {
        "conv_w": nrm((IN_CHANNELS, 3), 0.1),          # 1x1 conv (in_channels -> 3)
        "conv_b": jnp.zeros((1, 3), jnp.float32),
        "patch_w": nrm((3 * PATCH * PATCH, EMBED)),    # patch-embed conv as matmul
        "patch_b": jnp.zeros((1, EMBED), jnp.float32),
        "cls_token": nrm((1, EMBED)),
        "pos_emb": nrm((T_ENC, EMBED)),
        "enc": stacked_blocks(ENC_DEPTH),
        "enc_ln_g": jnp.ones((1, EMBED), jnp.float32),
        "enc_ln_b": jnp.zeros((1, EMBED), jnp.float32),
        "cls_emb": nrm((OUT_CHANNELS, EMBED)),
        "dec": stacked_blocks(DEC_DEPTH),
        "dec_ln_g": jnp.ones((1, EMBED), jnp.float32),
        "dec_ln_b": jnp.zeros((1, EMBED), jnp.float32),
        "proj_patch": nrm((EMBED, EMBED), EMBED ** -0.5),
        "proj_cls": nrm((EMBED, EMBED), EMBED ** -0.5),
    }


def _make_attn_bias(real_key):
    """Block-diagonal additive attention bias over the batch-merged token rows."""
    real = np.asarray(real_key, dtype=bool)
    bias = np.full((M_TOK, M_TOK), _NEG, dtype=np.float32)
    blk = np.where(real[None, :], 0.0, _NEG).astype(np.float32)
    for b in range(BATCH):
        bias[b * TPAD:(b + 1) * TPAD, b * TPAD:(b + 1) * TPAD] = blk
    return jnp.asarray(bias)


def prepare_params(p):
    """One-time precompute (outside the per-call path): fold the 1x1 conv into the
    patch-embed weight and build the token-assembly constants consumed by the kernel."""
    pw3 = p["patch_w"].reshape(3, PATCH * PATCH, EMBED)
    fused_w = jnp.einsum("ic,cpe->ipe", p["conv_w"], pw3).reshape(KIN, EMBED)
    fused_b = p["patch_b"][0] + jnp.einsum("c,cpe->e", p["conv_b"][0], pw3)   # (EMBED,)

    # encoder token bias (per 8-row block): [cls+pos0 | patch_bias+pos1..4 | zeros]
    tb = jnp.concatenate([
        p["cls_token"] + p["pos_emb"][0:1, :],
        fused_b[None, :] + p["pos_emb"][1:T_ENC, :],
        jnp.zeros((TPAD - T_ENC, EMBED), jnp.float32)], axis=0)
    tok_bias = jnp.tile(tb, (BATCH, 1))

    # decoder slot layout per 8-row block: [unused | patch x NPATCH | cls-emb x n_cls]
    dm = jnp.concatenate([jnp.zeros((1, EMBED), jnp.float32),
                          jnp.ones((NPATCH, EMBED), jnp.float32),
                          jnp.zeros((OUT_CHANNELS, EMBED), jnp.float32)], axis=0)
    dc = jnp.concatenate([jnp.zeros((1 + NPATCH, EMBED), jnp.float32),
                          p["cls_emb"]], axis=0)

    q = dict(p)
    q["fused_patch_w"] = fused_w
    q["tok_bias"] = tok_bias
    q["dec_patch_mask"] = jnp.tile(dm, (BATCH, 1))
    q["dec_const"] = jnp.tile(dc, (BATCH, 1))
    q["enc_attn_bias"] = _make_attn_bias([True] * T_ENC + [False] * (TPAD - T_ENC))
    q["dec_attn_bias"] = _make_attn_bias([False] + [True] * (NPATCH + OUT_CHANNELS))
    return q


# ---------------- forward (== ODViT.forward) -----------------------------------
def odvit_forward(x, q):
    """x: (N, in_channels, H, W) NCHW.  Returns (head, masks)."""
    n = x.shape[0]

    # NCHW -> zero-padded (N*TPAD, C*P*P) patch matrix, (c, ph, pw) flattening
    # (Conv2d weight order), patch index row-major over (gh, gw); cls/pad slots are zero
    # so their embedding comes entirely from the precomputed additive token bias.
    xp = x.reshape(n, IN_CHANNELS, GRID, PATCH, GRID, PATCH)
    xp = jnp.transpose(xp, (0, 2, 4, 1, 3, 5)).reshape(n, NPATCH, KIN)
    xp_pad = jnp.concatenate(
        [jnp.zeros((n, 1, KIN), xp.dtype), xp,
         jnp.zeros((n, TPAD - 1 - NPATCH, KIN), xp.dtype)], axis=1)
    xp_pad = xp_pad.reshape(n * TPAD, KIN)

    out = _odvit_pallas(xp_pad, q)                                # (N, OUT_PAD) lane-dense
    head = out[:, :EMBED]                                         # (N, EMBED) cls feature
    masks = out[:, EMBED:EMBED + OUT_CHANNELS * NPATCH]
    masks = masks.reshape(n, OUT_CHANNELS, GRID, GRID)
    # TODO(synk): the reference decoder's upsampling mode is unknown (Segmenter uses
    # bilinear); using nearest-neighbor patch replication here.
    masks = jnp.repeat(jnp.repeat(masks, PATCH, axis=2), PATCH, axis=3)   # (N, n_cls, H, W)
    return head, masks


# ---------------- main ----------------------------------------------------------
if __name__ == "__main__":
    key = jax.random.PRNGKey(0)
    pkey, xkey = jax.random.split(key)
    params = prepare_params(init_params(pkey))
    x = jax.random.normal(xkey, (BATCH, IN_CHANNELS, IMG, IMG), dtype=jnp.float32)

    head, out = jax.jit(odvit_forward)(x, params)
    jax.block_until_ready((head, out))

    assert head.shape == (BATCH, EMBED)
    assert out.shape == (BATCH, OUT_CHANNELS, IMG, IMG)
    assert bool(jnp.all(jnp.isfinite(head))) and bool(jnp.all(jnp.isfinite(out)))
    print("KERNEL_OK")
</pallas_src>

<mosaic_0001>
module attributes {stable_mosaic.version = 11 : i64} {
  func.func @_odvit_kernel(%arg0: i32, %arg1: memref<16x1024xf32, #tpu.memory_space<vmem>>, %arg2: memref<1024x32xf32, #tpu.memory_space<vmem>>, %arg3: memref<16x32xf32, #tpu.memory_space<vmem>>, %arg4: memref<16x16xf32, #tpu.memory_space<vmem>>, %arg5: memref<2x1x32xf32, #tpu.memory_space<vmem>>, %arg6: memref<2x1x32xf32, #tpu.memory_space<vmem>>, %arg7: memref<2x32x96xf32, #tpu.memory_space<vmem>>, %arg8: memref<2x1x96xf32, #tpu.memory_space<vmem>>, %arg9: memref<2x32x32xf32, #tpu.memory_space<vmem>>, %arg10: memref<2x1x32xf32, #tpu.memory_space<vmem>>, %arg11: memref<2x1x32xf32, #tpu.memory_space<vmem>>, %arg12: memref<2x1x32xf32, #tpu.memory_space<vmem>>, %arg13: memref<2x32x128xf32, #tpu.memory_space<vmem>>, %arg14: memref<2x1x128xf32, #tpu.memory_space<vmem>>, %arg15: memref<2x128x32xf32, #tpu.memory_space<vmem>>, %arg16: memref<2x1x32xf32, #tpu.memory_space<vmem>>, %arg17: memref<1x32xf32, #tpu.memory_space<vmem>>, %arg18: memref<1x32xf32, #tpu.memory_space<vmem>>, %arg19: memref<16x32xf32, #tpu.memory_space<vmem>>, %arg20: memref<16x32xf32, #tpu.memory_space<vmem>>, %arg21: memref<16x16xf32, #tpu.memory_space<vmem>>, %arg22: memref<1x1x32xf32, #tpu.memory_space<vmem>>, %arg23: memref<1x1x32xf32, #tpu.memory_space<vmem>>, %arg24: memref<1x32x96xf32, #tpu.memory_space<vmem>>, %arg25: memref<1x1x96xf32, #tpu.memory_space<vmem>>, %arg26: memref<1x32x32xf32, #tpu.memory_space<vmem>>, %arg27: memref<1x1x32xf32, #tpu.memory_space<vmem>>, %arg28: memref<1x1x32xf32, #tpu.memory_space<vmem>>, %arg29: memref<1x1x32xf32, #tpu.memory_space<vmem>>, %arg30: memref<1x32x128xf32, #tpu.memory_space<vmem>>, %arg31: memref<1x1x128xf32, #tpu.memory_space<vmem>>, %arg32: memref<1x128x32xf32, #tpu.memory_space<vmem>>, %arg33: memref<1x1x32xf32, #tpu.memory_space<vmem>>, %arg34: memref<1x32xf32, #tpu.memory_space<vmem>>, %arg35: memref<1x32xf32, #tpu.memory_space<vmem>>, %arg36: memref<32x32xf32, #tpu.memory_space<vmem>>, %arg37: memref<32x32xf32, #tpu.memory_space<vmem>>, %arg38: memref<2x128xf32, #tpu.memory_space<vmem>>) attributes {dimension_semantics = [#tpu.dimension_semantics<arbitrary>], iteration_bounds = array<i64: 1>, scalar_prefetch = 0 : i64, scratch_operands = 0 : i64, tpu.core_type = #tpu.core_type<tc>, window_params = [{pipeline_mode = #tpu.pipeline_mode<synchronous>, transform_indices = @transform_0, window_bounds = array<i64: 16, 1024>}, {pipeline_mode = #tpu.pipeline_mode<synchronous>, transform_indices = @transform_1, window_bounds = array<i64: 1024, 32>}, {pipeline_mode = #tpu.pipeline_mode<synchronous>, transform_indices = @transform_2, window_bounds = array<i64: 16, 32>}, {pipeline_mode = #tpu.pipeline_mode<synchronous>, transform_indices = @transform_3, window_bounds = array<i64: 16, 16>}, {pipeline_mode = #tpu.pipeline_mode<synchronous>, transform_indices = @transform_4, window_bounds = array<i64: 2, 1, 32>}, {pipeline_mode = #tpu.pipeline_mode<synchronous>, transform_indices = @transform_5, window_bounds = array<i64: 2, 1, 32>}, {pipeline_mode = #tpu.pipeline_mode<synchronous>, transform_indices = @transform_6, window_bounds = array<i64: 2, 32, 96>}, {pipeline_mode = #tpu.pipeline_mode<synchronous>, transform_indices = @transform_7, window_bounds = array<i64: 2, 1, 96>}, {pipeline_mode = #tpu.pipeline_mode<synchronous>, transform_indices = @transform_8, window_bounds = array<i64: 2, 32, 32>}, {pipeline_mode = #tpu.pipeline_mode<synchronous>, transform_indices = @transform_9, window_bounds = array<i64: 2, 1, 32>}, {pipeline_mode = #tpu.pipeline_mode<synchronous>, transform_indices = @transform_10, window_bounds = array<i64: 2, 1, 32>}, {pipeline_mode = #tpu.pipeline_mode<synchronous>, transform_indices = @transform_11, window_bounds = array<i64: 2, 1, 32>}, {pipeline_mode = #tpu.pipeline_mode<synchronous>, transform_indices = @transform_12, window_bounds = array<i64: 2, 32, 128>}, {pipeline_mode = #tpu.pipeline_mode<synchronous>, transform_indices = @transform_13, window_bounds = array<i64: 2, 1, 128>}, {pipeline_mode = #tpu.pipeline_mode<synchronous>, transform_indices = @transform_14, window_bounds = array<i64: 2, 128, 32>}, {pipeline_mode = #tpu.pipeline_mode<synchronous>, transform_indices = @transform_15, window_bounds = array<i64: 2, 1, 32>}, {pipeline_mode = #tpu.pipeline_mode<synchronous>, transform_indices = @transform_16, window_bounds = array<i64: 1, 32>}, {pipeline_mode = #tpu.pipeline_mode<synchronous>, transform_indices = @transform_17, window_bounds = array<i64: 1, 32>}, {pipeline_mode = #tpu.pipeline_mode<synchronous>, transform_indices = @transform_18, window_bounds = array<i64: 16, 32>}, {pipeline_mode = #tpu.pipeline_mode<synchronous>, transform_indices = @transform_19, window_bounds = array<i64: 16, 32>}, {pipeline_mode = #tpu.pipeline_mode<synchronous>, transform_indices = @transform_20, window_bounds = array<i64: 16, 16>}, {pipeline_mode = #tpu.pipeline_mode<synchronous>, transform_indices = @transform_21, window_bounds = array<i64: 1, 1, 32>}, {pipeline_mode = #tpu.pipeline_mode<synchronous>, transform_indices = @transform_22, window_bounds = array<i64: 1, 1, 32>}, {pipeline_mode = #tpu.pipeline_mode<synchronous>, transform_indices = @transform_23, window_bounds = array<i64: 1, 32, 96>}, {pipeline_mode = #tpu.pipeline_mode<synchronous>, transform_indices = @transform_24, window_bounds = array<i64: 1, 1, 96>}, {pipeline_mode = #tpu.pipeline_mode<synchronous>, transform_indices = @transform_25, window_bounds = array<i64: 1, 32, 32>}, {pipeline_mode = #tpu.pipeline_mode<synchronous>, transform_indices = @transform_26, window_bounds = array<i64: 1, 1, 32>}, {pipeline_mode = #tpu.pipeline_mode<synchronous>, transform_indices = @transform_27, window_bounds = array<i64: 1, 1, 32>}, {pipeline_mode = #tpu.pipeline_mode<synchronous>, transform_indices = @transform_28, window_bounds = array<i64: 1, 1, 32>}, {pipeline_mode = #tpu.pipeline_mode<synchronous>, transform_indices = @transform_29, window_bounds = array<i64: 1, 32, 128>}, {pipeline_mode = #tpu.pipeline_mode<synchronous>, transform_indices = @transform_30, window_bounds = array<i64: 1, 1, 128>}, {pipeline_mode = #tpu.pipeline_mode<synchronous>, transform_indices = @transform_31, window_bounds = array<i64: 1, 128, 32>}, {pipeline_mode = #tpu.pipeline_mode<synchronous>, transform_indices = @transform_32, window_bounds = array<i64: 1, 1, 32>}, {pipeline_mode = #tpu.pipeline_mode<synchronous>, transform_indices = @transform_33, window_bounds = array<i64: 1, 32>}, {pipeline_mode = #tpu.pipeline_mode<synchronous>, transform_indices = @transform_34, window_bounds = array<i64: 1, 32>}, {pipeline_mode = #tpu.pipeline_mode<synchronous>, transform_indices = @transform_35, window_bounds = array<i64: 32, 32>}, {pipeline_mode = #tpu.pipeline_mode<synchronous>, transform_indices = @transform_36, window_bounds = array<i64: 32, 32>}, {pipeline_mode = #tpu.pipeline_mode<synchronous>, transform_indices = @transform_37, window_bounds = array<i64: 2, 128>}]} {
    %c0 = arith.constant 0 : index
    %c0_0 = arith.constant 0 : index
    %0 = vector.load %arg1[%c0, %c0_0] : memref<16x1024xf32, #tpu.memory_space<vmem>>, vector<16x1024xf32>
    %c0_1 = arith.constant 0 : index
    %c0_2 = arith.constant 0 : index
    %1 = vector.load %arg2[%c0_1, %c0_2] : memref<1024x32xf32, #tpu.memory_space<vmem>>, vector<1024x32xf32>
    %cst = arith.constant dense<0.000000e+00> : vector<16x32xf32>
    %2 = tpu.matmul %0, %1, %cst {dimension_numbers = #tpu.dot_dimension_numbers<[1], [0], [0], [1], [0, 0, 1, 1], [], []>} : vector<16x1024xf32>, vector<1024x32xf32>, vector<16x32xf32> -> vector<16x32xf32>
    %c0_3 = arith.constant 0 : index
    %c0_4 = arith.constant 0 : index
    %3 = vector.load %arg3[%c0_3, %c0_4] : memref<16x32xf32, #tpu.memory_space<vmem>>, vector<16x32xf32>
    %4 = arith.addf %2, %3 : vector<16x32xf32>
    %c0_5 = arith.constant 0 : index
    %c0_6 = arith.constant 0 : index
    %5 = vector.load %arg4[%c0_5, %c0_6] : memref<16x16xf32, #tpu.memory_space<vmem>>, vector<16x16xf32>
    %c0_7 = arith.constant 0 : index
    %c0_8 = arith.constant 0 : index
    %c0_9 = arith.constant 0 : index
    %6 = vector.load %arg5[%c0_7, %c0_8, %c0_9] : memref<2x1x32xf32, #tpu.memory_space<vmem>>, vector<1x1x32xf32>
    %7 = vector.shape_cast %6 : vector<1x1x32xf32> to vector<1x32xf32>
    %c0_10 = arith.constant 0 : index
    %c0_11 = arith.constant 0 : index
    %c0_12 = arith.constant 0 : index
    %8 = vector.load %arg6[%c0_10, %c0_11, %c0_12] : memref<2x1x32xf32, #tpu.memory_space<vmem>>, vector<1x1x32xf32>
    %9 = vector.shape_cast %8 : vector<1x1x32xf32> to vector<1x32xf32>
    %c0_13 = arith.constant 0 : index
    %c0_14 = arith.constant 0 : index
    %c0_15 = arith.constant 0 : index
    %10 = vector.load %arg7[%c0_13, %c0_14, %c0_15] : memref<2x32x96xf32, #tpu.memory_space<vmem>>, vector<1x32x96xf32>
    %11 = vector.shape_cast %10 : vector<1x32x96xf32> to vector<32x96xf32>
    %c0_16 = arith.constant 0 : index
    %c0_17 = arith.constant 0 : index
    %c0_18 = arith.constant 0 : index
    %12 = vector.load %arg8[%c0_16, %c0_17, %c0_18] : memref<2x1x96xf32, #tpu.memory_space<vmem>>, vector<1x1x96xf32>
    %13 = vector.shape_cast %12 : vector<1x1x96xf32> to vector<1x96xf32>
    %c0_19 = arith.constant 0 : index
    %c0_20 = arith.constant 0 : index
    %c0_21 = arith.constant 0 : index
    %14 = vector.load %arg9[%c0_19, %c0_20, %c0_21] : memref<2x32x32xf32, #tpu.memory_space<vmem>>, vector<1x32x32xf32>
    %15 = vector.shape_cast %14 : vector<1x32x32xf32> to vector<32x32xf32>
    %c0_22 = arith.constant 0 : index
    %c0_23 = arith.constant 0 : index
    %c0_24 = arith.constant 0 : index
    %16 = vector.load %arg10[%c0_22, %c0_23, %c0_24] : memref<2x1x32xf32, #tpu.memory_space<vmem>>, vector<1x1x32xf32>
    %17 = vector.shape_cast %16 : vector<1x1x32xf32> to vector<1x32xf32>
    %c0_25 = arith.constant 0 : index
    %c0_26 = arith.constant 0 : index
    %c0_27 = arith.constant 0 : index
    %18 = vector.load %arg11[%c0_25, %c0_26, %c0_27] : memref<2x1x32xf32, #tpu.memory_space<vmem>>, vector<1x1x32xf32>
    %19 = vector.shape_cast %18 : vector<1x1x32xf32> to vector<1x32xf32>
    %c0_28 = arith.constant 0 : index
    %c0_29 = arith.constant 0 : index
    %c0_30 = arith.constant 0 : index
    %20 = vector.load %arg12[%c0_28, %c0_29, %c0_30] : memref<2x1x32xf32, #tpu.memory_space<vmem>>, vector<1x1x32xf32>
    %21 = vector.shape_cast %20 : vector<1x1x32xf32> to vector<1x32xf32>
    %c0_31 = arith.constant 0 : index
    %c0_32 = arith.constant 0 : index
    %c0_33 = arith.constant 0 : index
    %22 = vector.load %arg13[%c0_31, %c0_32, %c0_33] : memref<2x32x128xf32, #tpu.memory_space<vmem>>, vector<1x32x128xf32>
    %23 = vector.shape_cast %22 : vector<1x32x128xf32> to vector<32x128xf32>
    %c0_34 = arith.constant 0 : index
    %c0_35 = arith.constant 0 : index
    %c0_36 = arith.constant 0 : index
    %24 = vector.load %arg14[%c0_34, %c0_35, %c0_36] : memref<2x1x128xf32, #tpu.memory_space<vmem>>, vector<1x1x128xf32>
    %25 = vector.shape_cast %24 : vector<1x1x128xf32> to vector<1x128xf32>
    %c0_37 = arith.constant 0 : index
    %c0_38 = arith.constant 0 : index
    %c0_39 = arith.constant 0 : index
    %26 = vector.load %arg15[%c0_37, %c0_38, %c0_39] : memref<2x128x32xf32, #tpu.memory_space<vmem>>, vector<1x128x32xf32>
    %27 = vector.shape_cast %26 : vector<1x128x32xf32> to vector<128x32xf32>
    %c0_40 = arith.constant 0 : index
    %c0_41 = arith.constant 0 : index
    %c0_42 = arith.constant 0 : index
    %28 = vector.load %arg16[%c0_40, %c0_41, %c0_42] : memref<2x1x32xf32, #tpu.memory_space<vmem>>, vector<1x1x32xf32>
    %29 = vector.shape_cast %28 : vector<1x1x32xf32> to vector<1x32xf32>
    %cst_43 = arith.constant dense<0.000000e+00> : vector<16xf32>
    %30 = vector.multi_reduction <add>, %4, %cst_43 [1] : vector<16x32xf32> to vector<16xf32>
    %31 = vector.shape_cast %30 : vector<16xf32> to vector<16x1xf32>
    %cst_44 = arith.constant 3.200000e+01 : f32
    %32 = vector.broadcast %cst_44 : f32 to vector<16x1xf32>
    %33 = arith.divf %31, %32 : vector<16x1xf32>
    %34 = vector.broadcast %33 : vector<16x1xf32> to vector<16x32xf32>
    %35 = arith.subf %4, %34 : vector<16x32xf32>
    %36 = arith.mulf %35, %35 : vector<16x32xf32>
    %cst_45 = arith.constant dense<0.000000e+00> : vector<16xf32>
    %37 = vector.multi_reduction <add>, %36, %cst_45 [1] : vector<16x32xf32> to vector<16xf32>
    %38 = vector.shape_cast %37 : vector<16xf32> to vector<16x1xf32>
    %cst_46 = arith.constant 3.200000e+01 : f32
    %39 = vector.broadcast %cst_46 : f32 to vector<16x1xf32>
    %40 = arith.divf %38, %39 : vector<16x1xf32>
    %cst_47 = arith.constant 9.99999997E-7 : f32
    %41 = vector.broadcast %cst_47 : f32 to vector<16x1xf32>
    %42 = arith.addf %40, %41 : vector<16x1xf32>
    %43 = math.rsqrt %42 : vector<16x1xf32>
    %44 = vector.broadcast %43 : vector<16x1xf32> to vector<16x32xf32>
    %45 = arith.mulf %35, %44 : vector<16x32xf32>
    %46 = vector.broadcast %7 : vector<1x32xf32> to vector<16x32xf32>
    %47 = arith.mulf %45, %46 : vector<16x32xf32>
    %48 = vector.broadcast %9 : vector<1x32xf32> to vector<16x32xf32>
    %49 = arith.addf %47, %48 : vector<16x32xf32>
    %cst_48 = arith.constant dense<0.000000e+00> : vector<16x96xf32>
    %50 = tpu.matmul %49, %11, %cst_48 {dimension_numbers = #tpu.dot_dimension_numbers<[1], [0], [0], [1], [0, 0, 1, 1], [], []>} : vector<16x32xf32>, vector<32x96xf32>, vector<16x96xf32> -> vector<16x96xf32>
    %51 = vector.broadcast %13 : vector<1x96xf32> to vector<16x96xf32>
    %52 = arith.addf %50, %51 : vector<16x96xf32>
    %cst_49 = arith.constant 0.000000e+00 : f32
    %53 = vector.broadcast %cst_49 : f32 to vector<16x32xf32>
    %54 = vector.extract_strided_slice %52 {offsets = [0, 0], sizes = [16, 16], strides = [1, 1]} : vector<16x96xf32> to vector<16x16xf32>
    %55 = vector.extract_strided_slice %52 {offsets = [0, 32], sizes = [16, 16], strides = [1, 1]} : vector<16x96xf32> to vector<16x16xf32>
    %56 = vector.extract_strided_slice %52 {offsets = [0, 64], sizes = [16, 16], strides = [1, 1]} : vector<16x96xf32> to vector<16x16xf32>
    "tpu.trace_start"() <{level = 10 : i32, message = "qd,kd->qk"}> : () -> ()
    %cst_50 = arith.constant dense<0.000000e+00> : vector<16x16xf32>
    %57 = tpu.matmul %54, %55, %cst_50 {dimension_numbers = #tpu.dot_dimension_numbers<[1], [1], [0], [0], [0, 0, 1, 0], [], []>} : vector<16x16xf32>, vector<16x16xf32>, vector<16x16xf32> -> vector<16x16xf32>
    "tpu.trace_stop"() : () -> ()
    %cst_51 = arith.constant 2.500000e-01 : f32
    %58 = vector.broadcast %cst_51 : f32 to vector<16x16xf32>
    %59 = arith.mulf %57, %58 : vector<16x16xf32>
    %60 = arith.addf %59, %5 : vector<16x16xf32>
    %cst_52 = arith.constant dense<0xFF800000> : vector<16xf32>
    %61 = vector.multi_reduction <maximumf>, %60, %cst_52 [1] : vector<16x16xf32> to vector<16xf32>
    %62 = vector.shape_cast %61 : vector<16xf32> to vector<16x1xf32>
    %63 = vector.broadcast %62 : vector<16x1xf32> to vector<16x16xf32>
    %64 = arith.subf %60, %63 : vector<16x16xf32>
    %65 = math.exp %64 : vector<16x16xf32>
    %cst_53 = arith.constant dense<0.000000e+00> : vector<16xf32>
    %66 = vector.multi_reduction <add>, %65, %cst_53 [1] : vector<16x16xf32> to vector<16xf32>
    %67 = vector.shape_cast %66 : vector<16xf32> to vector<16x1xf32>
    %68 = vector.broadcast %67 : vector<16x1xf32> to vector<16x16xf32>
    %69 = arith.divf %65, %68 : vector<16x16xf32>
    %cst_54 = arith.constant dense<0.000000e+00> : vector<16x16xf32>
    %70 = tpu.matmul %69, %56, %cst_54 {dimension_numbers = #tpu.dot_dimension_numbers<[1], [0], [0], [1], [0, 0, 1, 1], [], []>} : vector<16x16xf32>, vector<16x16xf32>, vector<16x16xf32> -> vector<16x16xf32>
    %71 = vector.extract_strided_slice %15 {offsets = [0, 0], sizes = [16, 32], strides = [1, 1]} : vector<32x32xf32> to vector<16x32xf32>
    %cst_55 = arith.constant dense<0.000000e+00> : vector<16x32xf32>
    %72 = tpu.matmul %70, %71, %cst_55 {dimension_numbers = #tpu.dot_dimension_numbers<[1], [0], [0], [1], [0, 0, 1, 1], [], []>} : vector<16x16xf32>, vector<16x32xf32>, vector<16x32xf32> -> vector<16x32xf32>
    %73 = arith.addf %53, %72 : vector<16x32xf32>
    %74 = vector.extract_strided_slice %52 {offsets = [0, 16], sizes = [16, 16], strides = [1, 1]} : vector<16x96xf32> to vector<16x16xf32>
    %75 = vector.extract_strided_slice %52 {offsets = [0, 48], sizes = [16, 16], strides = [1, 1]} : vector<16x96xf32> to vector<16x16xf32>
    %76 = vector.extract_strided_slice %52 {offsets = [0, 80], sizes = [16, 16], strides = [1, 1]} : vector<16x96xf32> to vector<16x16xf32>
    "tpu.trace_start"() <{level = 10 : i32, message = "qd,kd->qk"}> : () -> ()
    %cst_56 = arith.constant dense<0.000000e+00> : vector<16x16xf32>
    %77 = tpu.matmul %74, %75, %cst_56 {dimension_numbers = #tpu.dot_dimension_numbers<[1], [1], [0], [0], [0, 0, 1, 0], [], []>} : vector<16x16xf32>, vector<16x16xf32>, vector<16x16xf32> -> vector<16x16xf32>
    "tpu.trace_stop"() : () -> ()
    %cst_57 = arith.constant 2.500000e-01 : f32
    %78 = vector.broadcast %cst_57 : f32 to vector<16x16xf32>
    %79 = arith.mulf %77, %78 : vector<16x16xf32>
    %80 = arith.addf %79, %5 : vector<16x16xf32>
    %cst_58 = arith.constant dense<0xFF800000> : vector<16xf32>
    %81 = vector.multi_reduction <maximumf>, %80, %cst_58 [1] : vector<16x16xf32> to vector<16xf32>
    %82 = vector.shape_cast %81 : vector<16xf32> to vector<16x1xf32>
    %83 = vector.broadcast %82 : vector<16x1xf32> to vector<16x16xf32>
    %84 = arith.subf %80, %83 : vector<16x16xf32>
    %85 = math.exp %84 : vector<16x16xf32>
    %cst_59 = arith.constant dense<0.000000e+00> : vector<16xf32>
    %86 = vector.multi_reduction <add>, %85, %cst_59 [1] : vector<16x16xf32> to vector<16xf32>
    %87 = vector.shape_cast %86 : vector<16xf32> to vector<16x1xf32>
    %88 = vector.broadcast %87 : vector<16x1xf32> to vector<16x16xf32>
    %89 = arith.divf %85, %88 : vector<16x16xf32>
    %cst_60 = arith.constant dense<0.000000e+00> : vector<16x16xf32>
    %90 = tpu.matmul %89, %76, %cst_60 {dimension_numbers = #tpu.dot_dimension_numbers<[1], [0], [0], [1], [0, 0, 1, 1], [], []>} : vector<16x16xf32>, vector<16x16xf32>, vector<16x16xf32> -> vector<16x16xf32>
    %91 = vector.extract_strided_slice %15 {offsets = [16, 0], sizes = [16, 32], strides = [1, 1]} : vector<32x32xf32> to vector<16x32xf32>
    %cst_61 = arith.constant dense<0.000000e+00> : vector<16x32xf32>
    %92 = tpu.matmul %90, %91, %cst_61 {dimension_numbers = #tpu.dot_dimension_numbers<[1], [0], [0], [1], [0, 0, 1, 1], [], []>} : vector<16x16xf32>, vector<16x32xf32>, vector<16x32xf32> -> vector<16x32xf32>
    %93 = arith.addf %73, %92 : vector<16x32xf32>
    %94 = arith.addf %4, %93 : vector<16x32xf32>
    %95 = vector.broadcast %17 : vector<1x32xf32> to vector<16x32xf32>
    %96 = arith.addf %94, %95 : vector<16x32xf32>
    %cst_62 = arith.constant dense<0.000000e+00> : vector<16xf32>
    %97 = vector.multi_reduction <add>, %96, %cst_62 [1] : vector<16x32xf32> to vector<16xf32>
    %98 = vector.shape_cast %97 : vector<16xf32> to vector<16x1xf32>
    %cst_63 = arith.constant 3.200000e+01 : f32
    %99 = vector.broadcast %cst_63 : f32 to vector<16x1xf32>
    %100 = arith.divf %98, %99 : vector<16x1xf32>
    %101 = vector.broadcast %100 : vector<16x1xf32> to vector<16x32xf32>
    %102 = arith.subf %96, %101 : vector<16x32xf32>
    %103 = arith.mulf %102, %102 : vector<16x32xf32>
    %cst_64 = arith.constant dense<0.000000e+00> : vector<16xf32>
    %104 = vector.multi_reduction <add>, %103, %cst_64 [1] : vector<16x32xf32> to vector<16xf32>
    %105 = vector.shape_cast %104 : vector<16xf32> to vector<16x1xf32>
    %cst_65 = arith.constant 3.200000e+01 : f32
    %106 = vector.broadcast %cst_65 : f32 to vector<16x1xf32>
    %107 = arith.divf %105, %106 : vector<16x1xf32>
    %cst_66 = arith.constant 9.99999997E-7 : f32
    %108 = vector.broadcast %cst_66 : f32 to vector<16x1xf32>
    %109 = arith.addf %107, %108 : vector<16x1xf32>
    %110 = math.rsqrt %109 : vector<16x1xf32>
    %111 = vector.broadcast %110 : vector<16x1xf32> to vector<16x32xf32>
    %112 = arith.mulf %102, %111 : vector<16x32xf32>
    %113 = vector.broadcast %19 : vector<1x32xf32> to vector<16x32xf32>
    %114 = arith.mulf %112, %113 : vector<16x32xf32>
    %115 = vector.broadcast %21 : vector<1x32xf32> to vector<16x32xf32>
    %116 = arith.addf %114, %115 : vector<16x32xf32>
    %cst_67 = arith.constant dense<0.000000e+00> : vector<16x128xf32>
    %117 = tpu.matmul %116, %23, %cst_67 {dimension_numbers = #tpu.dot_dimension_numbers<[1], [0], [0], [1], [0, 0, 1, 1], [], []>} : vector<16x32xf32>, vector<32x128xf32>, vector<16x128xf32> -> vector<16x128xf32>
    %118 = vector.broadcast %25 : vector<1x128xf32> to vector<16x128xf32>
    %119 = arith.addf %117, %118 : vector<16x128xf32>
    %120 = arith.mulf %119, %119 : vector<16x128xf32>
    %121 = arith.mulf %119, %120 : vector<16x128xf32>
    %cst_68 = arith.constant 4.471500e-02 : f32
    %122 = vector.broadcast %cst_68 : f32 to vector<16x128xf32>
    %123 = arith.mulf %122, %121 : vector<16x128xf32>
    %124 = arith.addf %119, %123 : vector<16x128xf32>
    %cst_69 = arith.constant 0.797884583 : f32
    %125 = vector.broadcast %cst_69 : f32 to vector<16x128xf32>
    %126 = arith.mulf %125, %124 : vector<16x128xf32>
    %127 = math.tanh %126 : vector<16x128xf32>
    %cst_70 = arith.constant 1.000000e+00 : f32
    %128 = vector.broadcast %cst_70 : f32 to vector<16x128xf32>
    %129 = arith.addf %128, %127 : vector<16x128xf32>
    %cst_71 = arith.constant 5.000000e-01 : f32
    %130 = vector.broadcast %cst_71 : f32 to vector<16x128xf32>
    %131 = arith.mulf %130, %129 : vector<16x128xf32>
    %132 = arith.mulf %119, %131 : vector<16x128xf32>
    %cst_72 = arith.constant dense<0.000000e+00> : vector<16x32xf32>
    %133 = tpu.matmul %132, %27, %cst_72 {dimension_numbers = #tpu.dot_dimension_numbers<[1], [0], [0], [1], [0, 0, 1, 1], [], []>} : vector<16x128xf32>, vector<128x32xf32>, vector<16x32xf32> -> vector<16x32xf32>
    %134 = arith.addf %96, %133 : vector<16x32xf32>
    %135 = vector.broadcast %29 : vector<1x32xf32> to vector<16x32xf32>
    %136 = arith.addf %134, %135 : vector<16x32xf32>
    %c1 = arith.constant 1 : index
    %c0_73 = arith.constant 0 : index
    %c0_74 = arith.constant 0 : index
    %137 = vector.load %arg5[%c1, %c0_73, %c0_74] : memref<2x1x32xf32, #tpu.memory_space<vmem>>, vector<1x1x32xf32>
    %138 = vector.shape_cast %137 : vector<1x1x32xf32> to vector<1x32xf32>
    %c1_75 = arith.constant 1 : index
    %c0_76 = arith.constant 0 : index
    %c0_77 = arith.constant 0 : index
    %139 = vector.load %arg6[%c1_75, %c0_76, %c0_77] : memref<2x1x32xf32, #tpu.memory_space<vmem>>, vector<1x1x32xf32>
    %140 = vector.shape_cast %139 : vector<1x1x32xf32> to vector<1x32xf32>
    %c1_78 = arith.constant 1 : index
    %c0_79 = arith.constant 0 : index
    %c0_80 = arith.constant 0 : index
    %141 = vector.load %arg7[%c1_78, %c0_79, %c0_80] : memref<2x32x96xf32, #tpu.memory_space<vmem>>, vector<1x32x96xf32>
    %142 = vector.shape_cast %141 : vector<1x32x96xf32> to vector<32x96xf32>
    %c1_81 = arith.constant 1 : index
    %c0_82 = arith.constant 0 : index
    %c0_83 = arith.constant 0 : index
    %143 = vector.load %arg8[%c1_81, %c0_82, %c0_83] : memref<2x1x96xf32, #tpu.memory_space<vmem>>, vector<1x1x96xf32>
    %144 = vector.shape_cast %143 : vector<1x1x96xf32> to vector<1x96xf32>
    %c1_84 = arith.constant 1 : index
    %c0_85 = arith.constant 0 : index
    %c0_86 = arith.constant 0 : index
    %145 = vector.load %arg9[%c1_84, %c0_85, %c0_86] : memref<2x32x32xf32, #tpu.memory_space<vmem>>, vector<1x32x32xf32>
    %146 = vector.shape_cast %145 : vector<1x32x32xf32> to vector<32x32xf32>
    %c1_87 = arith.constant 1 : index
    %c0_88 = arith.constant 0 : index
    %c0_89 = arith.constant 0 : index
    %147 = vector.load %arg10[%c1_87, %c0_88, %c0_89] : memref<2x1x32xf32, #tpu.memory_space<vmem>>, vector<1x1x32xf32>
    %148 = vector.shape_cast %147 : vector<1x1x32xf32> to vector<1x32xf32>
    %c1_90 = arith.constant 1 : index
    %c0_91 = arith.constant 0 : index
    %c0_92 = arith.constant 0 : index
    %149 = vector.load %arg11[%c1_90, %c0_91, %c0_92] : memref<2x1x32xf32, #tpu.memory_space<vmem>>, vector<1x1x32xf32>
    %150 = vector.shape_cast %149 : vector<1x1x32xf32> to vector<1x32xf32>
    %c1_93 = arith.constant 1 : index
    %c0_94 = arith.constant 0 : index
    %c0_95 = arith.constant 0 : index
    %151 = vector.load %arg12[%c1_93, %c0_94, %c0_95] : memref<2x1x32xf32, #tpu.memory_space<vmem>>, vector<1x1x32xf32>
    %152 = vector.shape_cast %151 : vector<1x1x32xf32> to vector<1x32xf32>
    %c1_96 = arith.constant 1 : index
    %c0_97 = arith.constant 0 : index
    %c0_98 = arith.constant 0 : index
    %153 = vector.load %arg13[%c1_96, %c0_97, %c0_98] : memref<2x32x128xf32, #tpu.memory_space<vmem>>, vector<1x32x128xf32>
    %154 = vector.shape_cast %153 : vector<1x32x128xf32> to vector<32x128xf32>
    %c1_99 = arith.constant 1 : index
    %c0_100 = arith.constant 0 : index
    %c0_101 = arith.constant 0 : index
    %155 = vector.load %arg14[%c1_99, %c0_100, %c0_101] : memref<2x1x128xf32, #tpu.memory_space<vmem>>, vector<1x1x128xf32>
    %156 = vector.shape_cast %155 : vector<1x1x128xf32> to vector<1x128xf32>
    %c1_102 = arith.constant 1 : index
    %c0_103 = arith.constant 0 : index
    %c0_104 = arith.constant 0 : index
    %157 = vector.load %arg15[%c1_102, %c0_103, %c0_104] : memref<2x128x32xf32, #tpu.memory_space<vmem>>, vector<1x128x32xf32>
    %158 = vector.shape_cast %157 : vector<1x128x32xf32> to vector<128x32xf32>
    %c1_105 = arith.constant 1 : index
    %c0_106 = arith.constant 0 : index
    %c0_107 = arith.constant 0 : index
    %159 = vector.load %arg16[%c1_105, %c0_106, %c0_107] : memref<2x1x32xf32, #tpu.memory_space<vmem>>, vector<1x1x32xf32>
    %160 = vector.shape_cast %159 : vector<1x1x32xf32> to vector<1x32xf32>
    %cst_108 = arith.constant dense<0.000000e+00> : vector<16xf32>
    %161 = vector.multi_reduction <add>, %136, %cst_108 [1] : vector<16x32xf32> to vector<16xf32>
    %162 = vector.shape_cast %161 : vector<16xf32> to vector<16x1xf32>
    %cst_109 = arith.constant 3.200000e+01 : f32
    %163 = vector.broadcast %cst_109 : f32 to vector<16x1xf32>
    %164 = arith.divf %162, %163 : vector<16x1xf32>
    %165 = vector.broadcast %164 : vector<16x1xf32> to vector<16x32xf32>
    %166 = arith.subf %136, %165 : vector<16x32xf32>
    %167 = arith.mulf %166, %166 : vector<16x32xf32>
    %cst_110 = arith.constant dense<0.000000e+00> : vector<16xf32>
    %168 = vector.multi_reduction <add>, %167, %cst_110 [1] : vector<16x32xf32> to vector<16xf32>
    %169 = vector.shape_cast %168 : vector<16xf32> to vector<16x1xf32>
    %cst_111 = arith.constant 3.200000e+01 : f32
    %170 = vector.broadcast %cst_111 : f32 to vector<16x1xf32>
    %171 = arith.divf %169, %170 : vector<16x1xf32>
    %cst_112 = arith.constant 9.99999997E-7 : f32
    %172 = vector.broadcast %cst_112 : f32 to vector<16x1xf32>
    %173 = arith.addf %171, %172 : vector<16x1xf32>
    %174 = math.rsqrt %173 : vector<16x1xf32>
    %175 = vector.broadcast %174 : vector<16x1xf32> to vector<16x32xf32>
    %176 = arith.mulf %166, %175 : vector<16x32xf32>
    %177 = vector.broadcast %138 : vector<1x32xf32> to vector<16x32xf32>
    %178 = arith.mulf %176, %177 : vector<16x32xf32>
    %179 = vector.broadcast %140 : vector<1x32xf32> to vector<16x32xf32>
    %180 = arith.addf %178, %179 : vector<16x32xf32>
    %cst_113 = arith.constant dense<0.000000e+00> : vector<16x96xf32>
    %181 = tpu.matmul %180, %142, %cst_113 {dimension_numbers = #tpu.dot_dimension_numbers<[1], [0], [0], [1], [0, 0, 1, 1], [], []>} : vector<16x32xf32>, vector<32x96xf32>, vector<16x96xf32> -> vector<16x96xf32>
    %182 = vector.broadcast %144 : vector<1x96xf32> to vector<16x96xf32>
    %183 = arith.addf %181, %182 : vector<16x96xf32>
    %cst_114 = arith.constant 0.000000e+00 : f32
    %184 = vector.broadcast %cst_114 : f32 to vector<16x32xf32>
    %185 = vector.extract_strided_slice %183 {offsets = [0, 0], sizes = [16, 16], strides = [1, 1]} : vector<16x96xf32> to vector<16x16xf32>
    %186 = vector.extract_strided_slice %183 {offsets = [0, 32], sizes = [16, 16], strides = [1, 1]} : vector<16x96xf32> to vector<16x16xf32>
    %187 = vector.extract_strided_slice %183 {offsets = [0, 64], sizes = [16, 16], strides = [1, 1]} : vector<16x96xf32> to vector<16x16xf32>
    "tpu.trace_start"() <{level = 10 : i32, message = "qd,kd->qk"}> : () -> ()
    %cst_115 = arith.constant dense<0.000000e+00> : vector<16x16xf32>
    %188 = tpu.matmul %185, %186, %cst_115 {dimension_numbers = #tpu.dot_dimension_numbers<[1], [1], [0], [0], [0, 0, 1, 0], [], []>} : vector<16x16xf32>, vector<16x16xf32>, vector<16x16xf32> -> vector<16x16xf32>
    "tpu.trace_stop"() : () -> ()
    %cst_116 = arith.constant 2.500000e-01 : f32
    %189 = vector.broadcast %cst_116 : f32 to vector<16x16xf32>
    %190 = arith.mulf %188, %189 : vector<16x16xf32>
    %191 = arith.addf %190, %5 : vector<16x16xf32>
    %cst_117 = arith.constant dense<0xFF800000> : vector<16xf32>
    %192 = vector.multi_reduction <maximumf>, %191, %cst_117 [1] : vector<16x16xf32> to vector<16xf32>
    %193 = vector.shape_cast %192 : vector<16xf32> to vector<16x1xf32>
    %194 = vector.broadcast %193 : vector<16x1xf32> to vector<16x16xf32>
    %195 = arith.subf %191, %194 : vector<16x16xf32>
    %196 = math.exp %195 : vector<16x16xf32>
    %cst_118 = arith.constant dense<0.000000e+00> : vector<16xf32>
    %197 = vector.multi_reduction <add>, %196, %cst_118 [1] : vector<16x16xf32> to vector<16xf32>
    %198 = vector.shape_cast %197 : vector<16xf32> to vector<16x1xf32>
    %199 = vector.broadcast %198 : vector<16x1xf32> to vector<16x16xf32>
    %200 = arith.divf %196, %199 : vector<16x16xf32>
    %cst_119 = arith.constant dense<0.000000e+00> : vector<16x16xf32>
    %201 = tpu.matmul %200, %187, %cst_119 {dimension_numbers = #tpu.dot_dimension_numbers<[1], [0], [0], [1], [0, 0, 1, 1], [], []>} : vector<16x16xf32>, vector<16x16xf32>, vector<16x16xf32> -> vector<16x16xf32>
    %202 = vector.extract_strided_slice %146 {offsets = [0, 0], sizes = [16, 32], strides = [1, 1]} : vector<32x32xf32> to vector<16x32xf32>
    %cst_120 = arith.constant dense<0.000000e+00> : vector<16x32xf32>
    %203 = tpu.matmul %201, %202, %cst_120 {dimension_numbers = #tpu.dot_dimension_numbers<[1], [0], [0], [1], [0, 0, 1, 1], [], []>} : vector<16x16xf32>, vector<16x32xf32>, vector<16x32xf32> -> vector<16x32xf32>
    %204 = arith.addf %184, %203 : vector<16x32xf32>
    %205 = vector.extract_strided_slice %183 {offsets = [0, 16], sizes = [16, 16], strides = [1, 1]} : vector<16x96xf32> to vector<16x16xf32>
    %206 = vector.extract_strided_slice %183 {offsets = [0, 48], sizes = [16, 16], strides = [1, 1]} : vector<16x96xf32> to vector<16x16xf32>
    %207 = vector.extract_strided_slice %183 {offsets = [0, 80], sizes = [16, 16], strides = [1, 1]} : vector<16x96xf32> to vector<16x16xf32>
    "tpu.trace_start"() <{level = 10 : i32, message = "qd,kd->qk"}> : () -> ()
    %cst_121 = arith.constant dense<0.000000e+00> : vector<16x16xf32>
    %208 = tpu.matmul %205, %206, %cst_121 {dimension_numbers = #tpu.dot_dimension_numbers<[1], [1], [0], [0], [0, 0, 1, 0], [], []>} : vector<16x16xf32>, vector<16x16xf32>, vector<16x16xf32> -> vector<16x16xf32>
    "tpu.trace_stop"() : () -> ()
    %cst_122 = arith.constant 2.500000e-01 : f32
    %209 = vector.broadcast %cst_122 : f32 to vector<16x16xf32>
    %210 = arith.mulf %208, %209 : vector<16x16xf32>
    %211 = arith.addf %210, %5 : vector<16x16xf32>
    %cst_123 = arith.constant dense<0xFF800000> : vector<16xf32>
    %212 = vector.multi_reduction <maximumf>, %211, %cst_123 [1] : vector<16x16xf32> to vector<16xf32>
    %213 = vector.shape_cast %212 : vector<16xf32> to vector<16x1xf32>
    %214 = vector.broadcast %213 : vector<16x1xf32> to vector<16x16xf32>
    %215 = arith.subf %211, %214 : vector<16x16xf32>
    %216 = math.exp %215 : vector<16x16xf32>
    %cst_124 = arith.constant dense<0.000000e+00> : vector<16xf32>
    %217 = vector.multi_reduction <add>, %216, %cst_124 [1] : vector<16x16xf32> to vector<16xf32>
    %218 = vector.shape_cast %217 : vector<16xf32> to vector<16x1xf32>
    %219 = vector.broadcast %218 : vector<16x1xf32> to vector<16x16xf32>
    %220 = arith.divf %216, %219 : vector<16x16xf32>
    %cst_125 = arith.constant dense<0.000000e+00> : vector<16x16xf32>
    %221 = tpu.matmul %220, %207, %cst_125 {dimension_numbers = #tpu.dot_dimension_numbers<[1], [0], [0], [1], [0, 0, 1, 1], [], []>} : vector<16x16xf32>, vector<16x16xf32>, vector<16x16xf32> -> vector<16x16xf32>
    %222 = vector.extract_strided_slice %146 {offsets = [16, 0], sizes = [16, 32], strides = [1, 1]} : vector<32x32xf32> to vector<16x32xf32>
    %cst_126 = arith.constant dense<0.000000e+00> : vector<16x32xf32>
    %223 = tpu.matmul %221, %222, %cst_126 {dimension_numbers = #tpu.dot_dimension_numbers<[1], [0], [0], [1], [0, 0, 1, 1], [], []>} : vector<16x16xf32>, vector<16x32xf32>, vector<16x32xf32> -> vector<16x32xf32>
    %224 = arith.addf %204, %223 : vector<16x32xf32>
    %225 = arith.addf %136, %224 : vector<16x32xf32>
    %226 = vector.broadcast %148 : vector<1x32xf32> to vector<16x32xf32>
    %227 = arith.addf %225, %226 : vector<16x32xf32>
    %cst_127 = arith.constant dense<0.000000e+00> : vector<16xf32>
    %228 = vector.multi_reduction <add>, %227, %cst_127 [1] : vector<16x32xf32> to vector<16xf32>
    %229 = vector.shape_cast %228 : vector<16xf32> to vector<16x1xf32>
    %cst_128 = arith.constant 3.200000e+01 : f32
    %230 = vector.broadcast %cst_128 : f32 to vector<16x1xf32>
    %231 = arith.divf %229, %230 : vector<16x1xf32>
    %232 = vector.broadcast %231 : vector<16x1xf32> to vector<16x32xf32>
    %233 = arith.subf %227, %232 : vector<16x32xf32>
    %234 = arith.mulf %233, %233 : vector<16x32xf32>
    %cst_129 = arith.constant dense<0.000000e+00> : vector<16xf32>
    %235 = vector.multi_reduction <add>, %234, %cst_129 [1] : vector<16x32xf32> to vector<16xf32>
    %236 = vector.shape_cast %235 : vector<16xf32> to vector<16x1xf32>
    %cst_130 = arith.constant 3.200000e+01 : f32
    %237 = vector.broadcast %cst_130 : f32 to vector<16x1xf32>
    %238 = arith.divf %236, %237 : vector<16x1xf32>
    %cst_131 = arith.constant 9.99999997E-7 : f32
    %239 = vector.broadcast %cst_131 : f32 to vector<16x1xf32>
    %240 = arith.addf %238, %239 : vector<16x1xf32>
    %241 = math.rsqrt %240 : vector<16x1xf32>
    %242 = vector.broadcast %241 : vector<16x1xf32> to vector<16x32xf32>
    %243 = arith.mulf %233, %242 : vector<16x32xf32>
    %244 = vector.broadcast %150 : vector<1x32xf32> to vector<16x32xf32>
    %245 = arith.mulf %243, %244 : vector<16x32xf32>
    %246 = vector.broadcast %152 : vector<1x32xf32> to vector<16x32xf32>
    %247 = arith.addf %245, %246 : vector<16x32xf32>
    %cst_132 = arith.constant dense<0.000000e+00> : vector<16x128xf32>
    %248 = tpu.matmul %247, %154, %cst_132 {dimension_numbers = #tpu.dot_dimension_numbers<[1], [0], [0], [1], [0, 0, 1, 1], [], []>} : vector<16x32xf32>, vector<32x128xf32>, vector<16x128xf32> -> vector<16x128xf32>
    %249 = vector.broadcast %156 : vector<1x128xf32> to vector<16x128xf32>
    %250 = arith.addf %248, %249 : vector<16x128xf32>
    %251 = arith.mulf %250, %250 : vector<16x128xf32>
    %252 = arith.mulf %250, %251 : vector<16x128xf32>
    %cst_133 = arith.constant 4.471500e-02 : f32
    %253 = vector.broadcast %cst_133 : f32 to vector<16x128xf32>
    %254 = arith.mulf %253, %252 : vector<16x128xf32>
    %255 = arith.addf %250, %254 : vector<16x128xf32>
    %cst_134 = arith.constant 0.797884583 : f32
    %256 = vector.broadcast %cst_134 : f32 to vector<16x128xf32>
    %257 = arith.mulf %256, %255 : vector<16x128xf32>
    %258 = math.tanh %257 : vector<16x128xf32>
    %cst_135 = arith.constant 1.000000e+00 : f32
    %259 = vector.broadcast %cst_135 : f32 to vector<16x128xf32>
    %260 = arith.addf %259, %258 : vector<16x128xf32>
    %cst_136 = arith.constant 5.000000e-01 : f32
    %261 = vector.broadcast %cst_136 : f32 to vector<16x128xf32>
    %262 = arith.mulf %261, %260 : vector<16x128xf32>
    %263 = arith.mulf %250, %262 : vector<16x128xf32>
    %cst_137 = arith.constant dense<0.000000e+00> : vector<16x32xf32>
    %264 = tpu.matmul %263, %158, %cst_137 {dimension_numbers = #tpu.dot_dimension_numbers<[1], [0], [0], [1], [0, 0, 1, 1], [], []>} : vector<16x128xf32>, vector<128x32xf32>, vector<16x32xf32> -> vector<16x32xf32>
    %265 = arith.addf %227, %264 : vector<16x32xf32>
    %266 = vector.broadcast %160 : vector<1x32xf32> to vector<16x32xf32>
    %267 = arith.addf %265, %266 : vector<16x32xf32>
    %c0_138 = arith.constant 0 : index
    %c0_139 = arith.constant 0 : index
    %268 = vector.load %arg17[%c0_138, %c0_139] : memref<1x32xf32, #tpu.memory_space<vmem>>, vector<1x32xf32>
    %c0_140 = arith.constant 0 : index
    %c0_141 = arith.constant 0 : index
    %269 = vector.load %arg18[%c0_140, %c0_141] : memref<1x32xf32, #tpu.memory_space<vmem>>, vector<1x32xf32>
    %cst_142 = arith.constant dense<0.000000e+00> : vector<16xf32>
    %270 = vector.multi_reduction <add>, %267, %cst_142 [1] : vector<16x32xf32> to vector<16xf32>
    %271 = vector.shape_cast %270 : vector<16xf32> to vector<16x1xf32>
    %cst_143 = arith.constant 3.200000e+01 : f32
    %272 = vector.broadcast %cst_143 : f32 to vector<16x1xf32>
    %273 = arith.divf %271, %272 : vector<16x1xf32>
    %274 = vector.broadcast %273 : vector<16x1xf32> to vector<16x32xf32>
    %275 = arith.subf %267, %274 : vector<16x32xf32>
    %276 = arith.mulf %275, %275 : vector<16x32xf32>
    %cst_144 = arith.constant dense<0.000000e+00> : vector<16xf32>
    %277 = vector.multi_reduction <add>, %276, %cst_144 [1] : vector<16x32xf32> to vector<16xf32>
    %278 = vector.shape_cast %277 : vector<16xf32> to vector<16x1xf32>
    %cst_145 = arith.constant 3.200000e+01 : f32
    %279 = vector.broadcast %cst_145 : f32 to vector<16x1xf32>
    %280 = arith.divf %278, %279 : vector<16x1xf32>
    %cst_146 = arith.constant 9.99999997E-7 : f32
    %281 = vector.broadcast %cst_146 : f32 to vector<16x1xf32>
    %282 = arith.addf %280, %281 : vector<16x1xf32>
    %283 = math.rsqrt %282 : vector<16x1xf32>
    %284 = vector.broadcast %283 : vector<16x1xf32> to vector<16x32xf32>
    %285 = arith.mulf %275, %284 : vector<16x32xf32>
    %286 = vector.broadcast %268 : vector<1x32xf32> to vector<16x32xf32>
    %287 = arith.mulf %285, %286 : vector<16x32xf32>
    %288 = vector.broadcast %269 : vector<1x32xf32> to vector<16x32xf32>
    %289 = arith.addf %287, %288 : vector<16x32xf32>
    %c0_147 = arith.constant 0 : index
    %c0_148 = arith.constant 0 : index
    %290 = vector.load %arg19[%c0_147, %c0_148] : memref<16x32xf32, #tpu.memory_space<vmem>>, vector<16x32xf32>
    %291 = arith.mulf %289, %290 : vector<16x32xf32>
    %c0_149 = arith.constant 0 : index
    %c0_150 = arith.constant 0 : index
    %292 = vector.load %arg20[%c0_149, %c0_150] : memref<16x32xf32, #tpu.memory_space<vmem>>, vector<16x32xf32>
    %293 = arith.addf %291, %292 : vector<16x32xf32>
    %c0_151 = arith.constant 0 : index
    %c0_152 = arith.constant 0 : index
    %294 = vector.load %arg21[%c0_151, %c0_152] : memref<16x16xf32, #tpu.memory_space<vmem>>, vector<16x16xf32>
    %c0_153 = arith.constant 0 : index
    %c0_154 = arith.constant 0 : index
    %c0_155 = arith.constant 0 : index
    %295 = vector.load %arg22[%c0_153, %c0_154, %c0_155] : memref<1x1x32xf32, #tpu.memory_space<vmem>>, vector<1x1x32xf32>
    %296 = vector.shape_cast %295 : vector<1x1x32xf32> to vector<1x32xf32>
    %c0_156 = arith.constant 0 : index
    %c0_157 = arith.constant 0 : index
    %c0_158 = arith.constant 0 : index
    %297 = vector.load %arg23[%c0_156, %c0_157, %c0_158] : memref<1x1x32xf32, #tpu.memory_space<vmem>>, vector<1x1x32xf32>
    %298 = vector.shape_cast %297 : vector<1x1x32xf32> to vector<1x32xf32>
    %c0_159 = arith.constant 0 : index
    %c0_160 = arith.constant 0 : index
    %c0_161 = arith.constant 0 : index
    %299 = vector.load %arg24[%c0_159, %c0_160, %c0_161] : memref<1x32x96xf32, #tpu.memory_space<vmem>>, vector<1x32x96xf32>
    %300 = vector.shape_cast %299 : vector<1x32x96xf32> to vector<32x96xf32>
    %c0_162 = arith.constant 0 : index
    %c0_163 = arith.constant 0 : index
    %c0_164 = arith.constant 0 : index
    %301 = vector.load %arg25[%c0_162, %c0_163, %c0_164] : memref<1x1x96xf32, #tpu.memory_space<vmem>>, vector<1x1x96xf32>
    %302 = vector.shape_cast %301 : vector<1x1x96xf32> to vector<1x96xf32>
    %c0_165 = arith.constant 0 : index
    %c0_166 = arith.constant 0 : index
    %c0_167 = arith.constant 0 : index
    %303 = vector.load %arg26[%c0_165, %c0_166, %c0_167] : memref<1x32x32xf32, #tpu.memory_space<vmem>>, vector<1x32x32xf32>
    %304 = vector.shape_cast %303 : vector<1x32x32xf32> to vector<32x32xf32>
    %c0_168 = arith.constant 0 : index
    %c0_169 = arith.constant 0 : index
    %c0_170 = arith.constant 0 : index
    %305 = vector.load %arg27[%c0_168, %c0_169, %c0_170] : memref<1x1x32xf32, #tpu.memory_space<vmem>>, vector<1x1x32xf32>
    %306 = vector.shape_cast %305 : vector<1x1x32xf32> to vector<1x32xf32>
    %c0_171 = arith.constant 0 : index
    %c0_172 = arith.constant 0 : index
    %c0_173 = arith.constant 0 : index
    %307 = vector.load %arg28[%c0_171, %c0_172, %c0_173] : memref<1x1x32xf32, #tpu.memory_space<vmem>>, vector<1x1x32xf32>
    %308 = vector.shape_cast %307 : vector<1x1x32xf32> to vector<1x32xf32>
    %c0_174 = arith.constant 0 : index
    %c0_175 = arith.constant 0 : index
    %c0_176 = arith.constant 0 : index
    %309 = vector.load %arg29[%c0_174, %c0_175, %c0_176] : memref<1x1x32xf32, #tpu.memory_space<vmem>>, vector<1x1x32xf32>
    %310 = vector.shape_cast %309 : vector<1x1x32xf32> to vector<1x32xf32>
    %c0_177 = arith.constant 0 : index
    %c0_178 = arith.constant 0 : index
    %c0_179 = arith.constant 0 : index
    %311 = vector.load %arg30[%c0_177, %c0_178, %c0_179] : memref<1x32x128xf32, #tpu.memory_space<vmem>>, vector<1x32x128xf32>
    %312 = vector.shape_cast %311 : vector<1x32x128xf32> to vector<32x128xf32>
    %c0_180 = arith.constant 0 : index
    %c0_181 = arith.constant 0 : index
    %c0_182 = arith.constant 0 : index
    %313 = vector.load %arg31[%c0_180, %c0_181, %c0_182] : memref<1x1x128xf32, #tpu.memory_space<vmem>>, vector<1x1x128xf32>
    %314 = vector.shape_cast %313 : vector<1x1x128xf32> to vector<1x128xf32>
    %c0_183 = arith.constant 0 : index
    %c0_184 = arith.constant 0 : index
    %c0_185 = arith.constant 0 : index
    %315 = vector.load %arg32[%c0_183, %c0_184, %c0_185] : memref<1x128x32xf32, #tpu.memory_space<vmem>>, vector<1x128x32xf32>
    %316 = vector.shape_cast %315 : vector<1x128x32xf32> to vector<128x32xf32>
    %c0_186 = arith.constant 0 : index
    %c0_187 = arith.constant 0 : index
    %c0_188 = arith.constant 0 : index
    %317 = vector.load %arg33[%c0_186, %c0_187, %c0_188] : memref<1x1x32xf32, #tpu.memory_space<vmem>>, vector<1x1x32xf32>
    %318 = vector.shape_cast %317 : vector<1x1x32xf32> to vector<1x32xf32>
    %cst_189 = arith.constant dense<0.000000e+00> : vector<16xf32>
    %319 = vector.multi_reduction <add>, %293, %cst_189 [1] : vector<16x32xf32> to vector<16xf32>
    %320 = vector.shape_cast %319 : vector<16xf32> to vector<16x1xf32>
    %cst_190 = arith.constant 3.200000e+01 : f32
    %321 = vector.broadcast %cst_190 : f32 to vector<16x1xf32>
    %322 = arith.divf %320, %321 : vector<16x1xf32>
    %323 = vector.broadcast %322 : vector<16x1xf32> to vector<16x32xf32>
    %324 = arith.subf %293, %323 : vector<16x32xf32>
    %325 = arith.mulf %324, %324 : vector<16x32xf32>
    %cst_191 = arith.constant dense<0.000000e+00> : vector<16xf32>
    %326 = vector.multi_reduction <add>, %325, %cst_191 [1] : vector<16x32xf32> to vector<16xf32>
    %327 = vector.shape_cast %326 : vector<16xf32> to vector<16x1xf32>
    %cst_192 = arith.constant 3.200000e+01 : f32
    %328 = vector.broadcast %cst_192 : f32 to vector<16x1xf32>
    %329 = arith.divf %327, %328 : vector<16x1xf32>
    %cst_193 = arith.constant 9.99999997E-7 : f32
    %330 = vector.broadcast %cst_193 : f32 to vector<16x1xf32>
    %331 = arith.addf %329, %330 : vector<16x1xf32>
    %332 = math.rsqrt %331 : vector<16x1xf32>
    %333 = vector.broadcast %332 : vector<16x1xf32> to vector<16x32xf32>
    %334 = arith.mulf %324, %333 : vector<16x32xf32>
    %335 = vector.broadcast %296 : vector<1x32xf32> to vector<16x32xf32>
    %336 = arith.mulf %334, %335 : vector<16x32xf32>
    %337 = vector.broadcast %298 : vector<1x32xf32> to vector<16x32xf32>
    %338 = arith.addf %336, %337 : vector<16x32xf32>
    %cst_194 = arith.constant dense<0.000000e+00> : vector<16x96xf32>
    %339 = tpu.matmul %338, %300, %cst_194 {dimension_numbers = #tpu.dot_dimension_numbers<[1], [0], [0], [1], [0, 0, 1, 1], [], []>} : vector<16x32xf32>, vector<32x96xf32>, vector<16x96xf32> -> vector<16x96xf32>
    %340 = vector.broadcast %302 : vector<1x96xf32> to vector<16x96xf32>
    %341 = arith.addf %339, %340 : vector<16x96xf32>
    %cst_195 = arith.constant 0.000000e+00 : f32
    %342 = vector.broadcast %cst_195 : f32 to vector<16x32xf32>
    %343 = vector.extract_strided_slice %341 {offsets = [0, 0], sizes = [16, 16], strides = [1, 1]} : vector<16x96xf32> to vector<16x16xf32>
    %344 = vector.extract_strided_slice %341 {offsets = [0, 32], sizes = [16, 16], strides = [1, 1]} : vector<16x96xf32> to vector<16x16xf32>
    %345 = vector.extract_strided_slice %341 {offsets = [0, 64], sizes = [16, 16], strides = [1, 1]} : vector<16x96xf32> to vector<16x16xf32>
    "tpu.trace_start"() <{level = 10 : i32, message = "qd,kd->qk"}> : () -> ()
    %cst_196 = arith.constant dense<0.000000e+00> : vector<16x16xf32>
    %346 = tpu.matmul %343, %344, %cst_196 {dimension_numbers = #tpu.dot_dimension_numbers<[1], [1], [0], [0], [0, 0, 1, 0], [], []>} : vector<16x16xf32>, vector<16x16xf32>, vector<16x16xf32> -> vector<16x16xf32>
    "tpu.trace_stop"() : () -> ()
    %cst_197 = arith.constant 2.500000e-01 : f32
    %347 = vector.broadcast %cst_197 : f32 to vector<16x16xf32>
    %348 = arith.mulf %346, %347 : vector<16x16xf32>
    %349 = arith.addf %348, %294 : vector<16x16xf32>
    %cst_198 = arith.constant dense<0xFF800000> : vector<16xf32>
    %350 = vector.multi_reduction <maximumf>, %349, %cst_198 [1] : vector<16x16xf32> to vector<16xf32>
    %351 = vector.shape_cast %350 : vector<16xf32> to vector<16x1xf32>
    %352 = vector.broadcast %351 : vector<16x1xf32> to vector<16x16xf32>
    %353 = arith.subf %349, %352 : vector<16x16xf32>
    %354 = math.exp %353 : vector<16x16xf32>
    %cst_199 = arith.constant dense<0.000000e+00> : vector<16xf32>
    %355 = vector.multi_reduction <add>, %354, %cst_199 [1] : vector<16x16xf32> to vector<16xf32>
    %356 = vector.shape_cast %355 : vector<16xf32> to vector<16x1xf32>
    %357 = vector.broadcast %356 : vector<16x1xf32> to vector<16x16xf32>
    %358 = arith.divf %354, %357 : vector<16x16xf32>
    %cst_200 = arith.constant dense<0.000000e+00> : vector<16x16xf32>
    %359 = tpu.matmul %358, %345, %cst_200 {dimension_numbers = #tpu.dot_dimension_numbers<[1], [0], [0], [1], [0, 0, 1, 1], [], []>} : vector<16x16xf32>, vector<16x16xf32>, vector<16x16xf32> -> vector<16x16xf32>
    %360 = vector.extract_strided_slice %304 {offsets = [0, 0], sizes = [16, 32], strides = [1, 1]} : vector<32x32xf32> to vector<16x32xf32>
    %cst_201 = arith.constant dense<0.000000e+00> : vector<16x32xf32>
    %361 = tpu.matmul %359, %360, %cst_201 {dimension_numbers = #tpu.dot_dimension_numbers<[1], [0], [0], [1], [0, 0, 1, 1], [], []>} : vector<16x16xf32>, vector<16x32xf32>, vector<16x32xf32> -> vector<16x32xf32>
    %362 = arith.addf %342, %361 : vector<16x32xf32>
    %363 = vector.extract_strided_slice %341 {offsets = [0, 16], sizes = [16, 16], strides = [1, 1]} : vector<16x96xf32> to vector<16x16xf32>
    %364 = vector.extract_strided_slice %341 {offsets = [0, 48], sizes = [16, 16], strides = [1, 1]} : vector<16x96xf32> to vector<16x16xf32>
    %365 = vector.extract_strided_slice %341 {offsets = [0, 80], sizes = [16, 16], strides = [1, 1]} : vector<16x96xf32> to vector<16x16xf32>
    "tpu.trace_start"() <{level = 10 : i32, message = "qd,kd->qk"}> : () -> ()
    %cst_202 = arith.constant dense<0.000000e+00> : vector<16x16xf32>
    %366 = tpu.matmul %363, %364, %cst_202 {dimension_numbers = #tpu.dot_dimension_numbers<[1], [1], [0], [0], [0, 0, 1, 0], [], []>} : vector<16x16xf32>, vector<16x16xf32>, vector<16x16xf32> -> vector<16x16xf32>
    "tpu.trace_stop"() : () -> ()
    %cst_203 = arith.constant 2.500000e-01 : f32
    %367 = vector.broadcast %cst_203 : f32 to vector<16x16xf32>
    %368 = arith.mulf %366, %367 : vector<16x16xf32>
    %369 = arith.addf %368, %294 : vector<16x16xf32>
    %cst_204 = arith.constant dense<0xFF800000> : vector<16xf32>
    %370 = vector.multi_reduction <maximumf>, %369, %cst_204 [1] : vector<16x16xf32> to vector<16xf32>
    %371 = vector.shape_cast %370 : vector<16xf32> to vector<16x1xf32>
    %372 = vector.broadcast %371 : vector<16x1xf32> to vector<16x16xf32>
    %373 = arith.subf %369, %372 : vector<16x16xf32>
    %374 = math.exp %373 : vector<16x16xf32>
    %cst_205 = arith.constant dense<0.000000e+00> : vector<16xf32>
    %375 = vector.multi_reduction <add>, %374, %cst_205 [1] : vector<16x16xf32> to vector<16xf32>
    %376 = vector.shape_cast %375 : vector<16xf32> to vector<16x1xf32>
    %377 = vector.broadcast %376 : vector<16x1xf32> to vector<16x16xf32>
    %378 = arith.divf %374, %377 : vector<16x16xf32>
    %cst_206 = arith.constant dense<0.000000e+00> : vector<16x16xf32>
    %379 = tpu.matmul %378, %365, %cst_206 {dimension_numbers = #tpu.dot_dimension_numbers<[1], [0], [0], [1], [0, 0, 1, 1], [], []>} : vector<16x16xf32>, vector<16x16xf32>, vector<16x16xf32> -> vector<16x16xf32>
    %380 = vector.extract_strided_slice %304 {offsets = [16, 0], sizes = [16, 32], strides = [1, 1]} : vector<32x32xf32> to vector<16x32xf32>
    %cst_207 = arith.constant dense<0.000000e+00> : vector<16x32xf32>
    %381 = tpu.matmul %379, %380, %cst_207 {dimension_numbers = #tpu.dot_dimension_numbers<[1], [0], [0], [1], [0, 0, 1, 1], [], []>} : vector<16x16xf32>, vector<16x32xf32>, vector<16x32xf32> -> vector<16x32xf32>
    %382 = arith.addf %362, %381 : vector<16x32xf32>
    %383 = arith.addf %293, %382 : vector<16x32xf32>
    %384 = vector.broadcast %306 : vector<1x32xf32> to vector<16x32xf32>
    %385 = arith.addf %383, %384 : vector<16x32xf32>
    %cst_208 = arith.constant dense<0.000000e+00> : vector<16xf32>
    %386 = vector.multi_reduction <add>, %385, %cst_208 [1] : vector<16x32xf32> to vector<16xf32>
    %387 = vector.shape_cast %386 : vector<16xf32> to vector<16x1xf32>
    %cst_209 = arith.constant 3.200000e+01 : f32
    %388 = vector.broadcast %cst_209 : f32 to vector<16x1xf32>
    %389 = arith.divf %387, %388 : vector<16x1xf32>
    %390 = vector.broadcast %389 : vector<16x1xf32> to vector<16x32xf32>
    %391 = arith.subf %385, %390 : vector<16x32xf32>
    %392 = arith.mulf %391, %391 : vector<16x32xf32>
    %cst_210 = arith.constant dense<0.000000e+00> : vector<16xf32>
    %393 = vector.multi_reduction <add>, %392, %cst_210 [1] : vector<16x32xf32> to vector<16xf32>
    %394 = vector.shape_cast %393 : vector<16xf32> to vector<16x1xf32>
    %cst_211 = arith.constant 3.200000e+01 : f32
    %395 = vector.broadcast %cst_211 : f32 to vector<16x1xf32>
    %396 = arith.divf %394, %395 : vector<16x1xf32>
    %cst_212 = arith.constant 9.99999997E-7 : f32
    %397 = vector.broadcast %cst_212 : f32 to vector<16x1xf32>
    %398 = arith.addf %396, %397 : vector<16x1xf32>
    %399 = math.rsqrt %398 : vector<16x1xf32>
    %400 = vector.broadcast %399 : vector<16x1xf32> to vector<16x32xf32>
    %401 = arith.mulf %391, %400 : vector<16x32xf32>
    %402 = vector.broadcast %308 : vector<1x32xf32> to vector<16x32xf32>
    %403 = arith.mulf %401, %402 : vector<16x32xf32>
    %404 = vector.broadcast %310 : vector<1x32xf32> to vector<16x32xf32>
    %405 = arith.addf %403, %404 : vector<16x32xf32>
    %cst_213 = arith.constant dense<0.000000e+00> : vector<16x128xf32>
    %406 = tpu.matmul %405, %312, %cst_213 {dimension_numbers = #tpu.dot_dimension_numbers<[1], [0], [0], [1], [0, 0, 1, 1], [], []>} : vector<16x32xf32>, vector<32x128xf32>, vector<16x128xf32> -> vector<16x128xf32>
    %407 = vector.broadcast %314 : vector<1x128xf32> to vector<16x128xf32>
    %408 = arith.addf %406, %407 : vector<16x128xf32>
    %409 = arith.mulf %408, %408 : vector<16x128xf32>
    %410 = arith.mulf %408, %409 : vector<16x128xf32>
    %cst_214 = arith.constant 4.471500e-02 : f32
    %411 = vector.broadcast %cst_214 : f32 to vector<16x128xf32>
    %412 = arith.mulf %411, %410 : vector<16x128xf32>
    %413 = arith.addf %408, %412 : vector<16x128xf32>
    %cst_215 = arith.constant 0.797884583 : f32
    %414 = vector.broadcast %cst_215 : f32 to vector<16x128xf32>
    %415 = arith.mulf %414, %413 : vector<16x128xf32>
    %416 = math.tanh %415 : vector<16x128xf32>
    %cst_216 = arith.constant 1.000000e+00 : f32
    %417 = vector.broadcast %cst_216 : f32 to vector<16x128xf32>
    %418 = arith.addf %417, %416 : vector<16x128xf32>
    %cst_217 = arith.constant 5.000000e-01 : f32
    %419 = vector.broadcast %cst_217 : f32 to vector<16x128xf32>
    %420 = arith.mulf %419, %418 : vector<16x128xf32>
    %421 = arith.mulf %408, %420 : vector<16x128xf32>
    %cst_218 = arith.constant dense<0.000000e+00> : vector<16x32xf32>
    %422 = tpu.matmul %421, %316, %cst_218 {dimension_numbers = #tpu.dot_dimension_numbers<[1], [0], [0], [1], [0, 0, 1, 1], [], []>} : vector<16x128xf32>, vector<128x32xf32>, vector<16x32xf32> -> vector<16x32xf32>
    %423 = arith.addf %385, %422 : vector<16x32xf32>
    %424 = vector.broadcast %318 : vector<1x32xf32> to vector<16x32xf32>
    %425 = arith.addf %423, %424 : vector<16x32xf32>
    %c0_219 = arith.constant 0 : index
    %c0_220 = arith.constant 0 : index
    %426 = vector.load %arg34[%c0_219, %c0_220] : memref<1x32xf32, #tpu.memory_space<vmem>>, vector<1x32xf32>
    %c0_221 = arith.constant 0 : index
    %c0_222 = arith.constant 0 : index
    %427 = vector.load %arg35[%c0_221, %c0_222] : memref<1x32xf32, #tpu.memory_space<vmem>>, vector<1x32xf32>
    %cst_223 = arith.constant dense<0.000000e+00> : vector<16xf32>
    %428 = vector.multi_reduction <add>, %425, %cst_223 [1] : vector<16x32xf32> to vector<16xf32>
    %429 = vector.shape_cast %428 : vector<16xf32> to vector<16x1xf32>
    %cst_224 = arith.constant 3.200000e+01 : f32
    %430 = vector.broadcast %cst_224 : f32 to vector<16x1xf32>
    %431 = arith.divf %429, %430 : vector<16x1xf32>
    %432 = vector.broadcast %431 : vector<16x1xf32> to vector<16x32xf32>
    %433 = arith.subf %425, %432 : vector<16x32xf32>
    %434 = arith.mulf %433, %433 : vector<16x32xf32>
    %cst_225 = arith.constant dense<0.000000e+00> : vector<16xf32>
    %435 = vector.multi_reduction <add>, %434, %cst_225 [1] : vector<16x32xf32> to vector<16xf32>
    %436 = vector.shape_cast %435 : vector<16xf32> to vector<16x1xf32>
    %cst_226 = arith.constant 3.200000e+01 : f32
    %437 = vector.broadcast %cst_226 : f32 to vector<16x1xf32>
    %438 = arith.divf %436, %437 : vector<16x1xf32>
    %cst_227 = arith.constant 9.99999997E-7 : f32
    %439 = vector.broadcast %cst_227 : f32 to vector<16x1xf32>
    %440 = arith.addf %438, %439 : vector<16x1xf32>
    %441 = math.rsqrt %440 : vector<16x1xf32>
    %442 = vector.broadcast %441 : vector<16x1xf32> to vector<16x32xf32>
    %443 = arith.mulf %433, %442 : vector<16x32xf32>
    %444 = vector.broadcast %426 : vector<1x32xf32> to vector<16x32xf32>
    %445 = arith.mulf %443, %444 : vector<16x32xf32>
    %446 = vector.broadcast %427 : vector<1x32xf32> to vector<16x32xf32>
    %447 = arith.addf %445, %446 : vector<16x32xf32>
    %c0_228 = arith.constant 0 : index
    %c0_229 = arith.constant 0 : index
    %448 = vector.load %arg36[%c0_228, %c0_229] : memref<32x32xf32, #tpu.memory_space<vmem>>, vector<32x32xf32>
    %c0_230 = arith.constant 0 : index
    %c0_231 = arith.constant 0 : index
    %449 = vector.load %arg37[%c0_230, %c0_231] : memref<32x32xf32, #tpu.memory_space<vmem>>, vector<32x32xf32>
    %cst_232 = arith.constant 0.000000e+00 : f32
    %450 = vector.broadcast %cst_232 : f32 to vector<1x84xf32>
    %451 = vector.extract_strided_slice %289 {offsets = [0, 0], sizes = [1, 32], strides = [1, 1]} : vector<16x32xf32> to vector<1x32xf32>
    %452 = vector.extract_strided_slice %447 {offsets = [1, 0], sizes = [4, 32], strides = [1, 1]} : vector<16x32xf32> to vector<4x32xf32>
    %cst_233 = arith.constant dense<0.000000e+00> : vector<4x32xf32>
    %453 = tpu.matmul %452, %448, %cst_233 {dimension_numbers = #tpu.dot_dimension_numbers<[1], [0], [0], [1], [0, 0, 1, 1], [], []>} : vector<4x32xf32>, vector<32x32xf32>, vector<4x32xf32> -> vector<4x32xf32>
    %454 = vector.extract_strided_slice %447 {offsets = [5, 0], sizes = [3, 32], strides = [1, 1]} : vector<16x32xf32> to vector<3x32xf32>
    %cst_234 = arith.constant dense<0.000000e+00> : vector<3x32xf32>
    %455 = tpu.matmul %454, %449, %cst_234 {dimension_numbers = #tpu.dot_dimension_numbers<[1], [0], [0], [1], [0, 0, 1, 1], [], []>} : vector<3x32xf32>, vector<32x32xf32>, vector<3x32xf32> -> vector<3x32xf32>
    %456 = arith.mulf %453, %453 : vector<4x32xf32>
    %cst_235 = arith.constant dense<0.000000e+00> : vector<4xf32>
    %457 = vector.multi_reduction <add>, %456, %cst_235 [1] : vector<4x32xf32> to vector<4xf32>
    %458 = vector.shape_cast %457 : vector<4xf32> to vector<4x1xf32>
    %cst_236 = arith.constant 9.99999996E-13 : f32
    %459 = vector.broadcast %cst_236 : f32 to vector<4x1xf32>
    %460 = arith.addf %458, %459 : vector<4x1xf32>
    %461 = math.rsqrt %460 : vector<4x1xf32>
    %462 = vector.broadcast %461 : vector<4x1xf32> to vector<4x32xf32>
    %463 = arith.mulf %453, %462 : vector<4x32xf32>
    %464 = arith.mulf %455, %455 : vector<3x32xf32>
    %cst_237 = arith.constant dense<0.000000e+00> : vector<3xf32>
    %465 = vector.multi_reduction <add>, %464, %cst_237 [1] : vector<3x32xf32> to vector<3xf32>
    %466 = vector.shape_cast %465 : vector<3xf32> to vector<3x1xf32>
    %cst_238 = arith.constant 9.99999996E-13 : f32
    %467 = vector.broadcast %cst_238 : f32 to vector<3x1xf32>
    %468 = arith.addf %466, %467 : vector<3x1xf32>
    %469 = math.rsqrt %468 : vector<3x1xf32>
    %470 = vector.broadcast %469 : vector<3x1xf32> to vector<3x32xf32>
    %471 = arith.mulf %455, %470 : vector<3x32xf32>
    "tpu.trace_start"() <{level = 10 : i32, message = "cd,pd->cp"}> : () -> ()
    %cst_239 = arith.constant dense<0.000000e+00> : vector<3x4xf32>
    %472 = tpu.matmul %471, %463, %cst_239 {dimension_numbers = #tpu.dot_dimension_numbers<[1], [1], [0], [0], [0, 0, 1, 0], [], []>} : vector<3x32xf32>, vector<4x32xf32>, vector<3x4xf32> -> vector<3x4xf32>
    "tpu.trace_stop"() : () -> ()
    %473 = vector.extract_strided_slice %472 {offsets = [0, 0], sizes = [1, 4], strides = [1, 1]} : vector<3x4xf32> to vector<1x4xf32>
    %474 = vector.extract_strided_slice %472 {offsets = [1, 0], sizes = [1, 4], strides = [1, 1]} : vector<3x4xf32> to vector<1x4xf32>
    %475 = vector.extract_strided_slice %472 {offsets = [2, 0], sizes = [1, 4], strides = [1, 1]} : vector<3x4xf32> to vector<1x4xf32>
    %476 = tpu.concatenate %473, %474, %475 in 1 : vector<1x4xf32>, vector<1x4xf32>, vector<1x4xf32> -> vector<1x12xf32>
    %477 = tpu.concatenate %451, %476, %450 in 1 : vector<1x32xf32>, vector<1x12xf32>, vector<1x84xf32> -> vector<1x128xf32>
    %c0_240 = arith.constant 0 : index
    %c0_241 = arith.constant 0 : index
    %478 = vector.load %arg38[%c0_240, %c0_241] : memref<2x128xf32, #tpu.memory_space<vmem>>, vector<1x128xf32>
    tpu.vector_store %arg38[%c0_240, %c0_241], %477 {strides = array<i32>} : memref<2x128xf32, #tpu.memory_space<vmem>>, vector<1x128xf32>,
    %479 = vector.extract_strided_slice %289 {offsets = [8, 0], sizes = [1, 32], strides = [1, 1]} : vector<16x32xf32> to vector<1x32xf32>
    %480 = vector.extract_strided_slice %447 {offsets = [9, 0], sizes = [4, 32], strides = [1, 1]} : vector<16x32xf32> to vector<4x32xf32>
    %cst_242 = arith.constant dense<0.000000e+00> : vector<4x32xf32>
    %481 = tpu.matmul %480, %448, %cst_242 {dimension_numbers = #tpu.dot_dimension_numbers<[1], [0], [0], [1], [0, 0, 1, 1], [], []>} : vector<4x32xf32>, vector<32x32xf32>, vector<4x32xf32> -> vector<4x32xf32>
    %482 = vector.extract_strided_slice %447 {offsets = [13, 0], sizes = [3, 32], strides = [1, 1]} : vector<16x32xf32> to vector<3x32xf32>
    %cst_243 = arith.constant dense<0.000000e+00> : vector<3x32xf32>
    %483 = tpu.matmul %482, %449, %cst_243 {dimension_numbers = #tpu.dot_dimension_numbers<[1], [0], [0], [1], [0, 0, 1, 1], [], []>} : vector<3x32xf32>, vector<32x32xf32>, vector<3x32xf32> -> vector<3x32xf32>
    %484 = arith.mulf %481, %481 : vector<4x32xf32>
    %cst_244 = arith.constant dense<0.000000e+00> : vector<4xf32>
    %485 = vector.multi_reduction <add>, %484, %cst_244 [1] : vector<4x32xf32> to vector<4xf32>
    %486 = vector.shape_cast %485 : vector<4xf32> to vector<4x1xf32>
    %cst_245 = arith.constant 9.99999996E-13 : f32
    %487 = vector.broadcast %cst_245 : f32 to vector<4x1xf32>
    %488 = arith.addf %486, %487 : vector<4x1xf32>
    %489 = math.rsqrt %488 : vector<4x1xf32>
    %490 = vector.broadcast %489 : vector<4x1xf32> to vector<4x32xf32>
    %491 = arith.mulf %481, %490 : vector<4x32xf32>
    %492 = arith.mulf %483, %483 : vector<3x32xf32>
    %cst_246 = arith.constant dense<0.000000e+00> : vector<3xf32>
    %493 = vector.multi_reduction <add>, %492, %cst_246 [1] : vector<3x32xf32> to vector<3xf32>
    %494 = vector.shape_cast %493 : vector<3xf32> to vector<3x1xf32>
    %cst_247 = arith.constant 9.99999996E-13 : f32
    %495 = vector.broadcast %cst_247 : f32 to vector<3x1xf32>
    %496 = arith.addf %494, %495 : vector<3x1xf32>
    %497 = math.rsqrt %496 : vector<3x1xf32>
    %498 = vector.broadcast %497 : vector<3x1xf32> to vector<3x32xf32>
    %499 = arith.mulf %483, %498 : vector<3x32xf32>
    "tpu.trace_start"() <{level = 10 : i32, message = "cd,pd->cp"}> : () -> ()
    %cst_248 = arith.constant dense<0.000000e+00> : vector<3x4xf32>
    %500 = tpu.matmul %499, %491, %cst_248 {dimension_numbers = #tpu.dot_dimension_numbers<[1], [1], [0], [0], [0, 0, 1, 0], [], []>} : vector<3x32xf32>, vector<4x32xf32>, vector<3x4xf32> -> vector<3x4xf32>
    "tpu.trace_stop"() : () -> ()
    %501 = vector.extract_strided_slice %500 {offsets = [0, 0], sizes = [1, 4], strides = [1, 1]} : vector<3x4xf32> to vector<1x4xf32>
    %502 = vector.extract_strided_slice %500 {offsets = [1, 0], sizes = [1, 4], strides = [1, 1]} : vector<3x4xf32> to vector<1x4xf32>
    %503 = vector.extract_strided_slice %500 {offsets = [2, 0], sizes = [1, 4], strides = [1, 1]} : vector<3x4xf32> to vector<1x4xf32>
    %504 = tpu.concatenate %501, %502, %503 in 1 : vector<1x4xf32>, vector<1x4xf32>, vector<1x4xf32> -> vector<1x12xf32>
    %505 = tpu.concatenate %479, %504, %450 in 1 : vector<1x32xf32>, vector<1x12xf32>, vector<1x84xf32> -> vector<1x128xf32>
    %c1_249 = arith.constant 1 : index
    %c0_250 = arith.constant 0 : index
    %506 = vector.load %arg38[%c1_249, %c0_250] : memref<2x128xf32, #tpu.memory_space<vmem>>, vector<1x128xf32>
    tpu.vector_store %arg38[%c1_249, %c0_250], %505 {strides = array<i32>} : memref<2x128xf32, #tpu.memory_space<vmem>>, vector<1x128xf32>,
    return
  }
  func.func @transform_0(%arg0: i32) -> (i32, i32) {
    %c0_i32 = arith.constant 0 : i32
    %c0_i32_0 = arith.constant 0 : i32
    %c0_i32_1 = arith.constant 0 : i32
    return %c0_i32, %c0_i32_0 : i32, i32
  }
  func.func @transform_1(%arg0: i32) -> (i32, i32) {
    %c0_i32 = arith.constant 0 : i32
    %c0_i32_0 = arith.constant 0 : i32
    %c0_i32_1 = arith.constant 0 : i32
    return %c0_i32, %c0_i32_0 : i32, i32
  }
  func.func @transform_2(%arg0: i32) -> (i32, i32) {
    %c0_i32 = arith.constant 0 : i32
    %c0_i32_0 = arith.constant 0 : i32
    %c0_i32_1 = arith.constant 0 : i32
    return %c0_i32, %c0_i32_0 : i32, i32
  }
  func.func @transform_3(%arg0: i32) -> (i32, i32) {
    %c0_i32 = arith.constant 0 : i32
    %c0_i32_0 = arith.constant 0 : i32
    %c0_i32_1 = arith.constant 0 : i32
    return %c0_i32, %c0_i32_0 : i32, i32
  }
  func.func @transform_4(%arg0: i32) -> (i32, i32, i32) {
    %c0_i32 = arith.constant 0 : i32
    %c0_i32_0 = arith.constant 0 : i32
    %c0_i32_1 = arith.constant 0 : i32
    %c0_i32_2 = arith.constant 0 : i32
    return %c0_i32, %c0_i32_0, %c0_i32_1 : i32, i32, i32
  }
  func.func @transform_5(%arg0: i32) -> (i32, i32, i32) {
    %c0_i32 = arith.constant 0 : i32
    %c0_i32_0 = arith.constant 0 : i32
    %c0_i32_1 = arith.constant 0 : i32
    %c0_i32_2 = arith.constant 0 : i32
    return %c0_i32, %c0_i32_0, %c0_i32_1 : i32, i32, i32
  }
  func.func @transform_6(%arg0: i32) -> (i32, i32, i32) {
    %c0_i32 = arith.constant 0 : i32
    %c0_i32_0 = arith.constant 0 : i32
    %c0_i32_1 = arith.constant 0 : i32
    %c0_i32_2 = arith.constant 0 : i32
    return %c0_i32, %c0_i32_0, %c0_i32_1 : i32, i32, i32
  }
  func.func @transform_7(%arg0: i32) -> (i32, i32, i32) {
    %c0_i32 = arith.constant 0 : i32
    %c0_i32_0 = arith.constant 0 : i32
    %c0_i32_1 = arith.constant 0 : i32
    %c0_i32_2 = arith.constant 0 : i32
    return %c0_i32, %c0_i32_0, %c0_i32_1 : i32, i32, i32
  }
  func.func @transform_8(%arg0: i32) -> (i32, i32, i32) {
    %c0_i32 = arith.constant 0 : i32
    %c0_i32_0 = arith.constant 0 : i32
    %c0_i32_1 = arith.constant 0 : i32
    %c0_i32_2 = arith.constant 0 : i32
    return %c0_i32, %c0_i32_0, %c0_i32_1 : i32, i32, i32
  }
  func.func @transform_9(%arg0: i32) -> (i32, i32, i32) {
    %c0_i32 = arith.constant 0 : i32
    %c0_i32_0 = arith.constant 0 : i32
    %c0_i32_1 = arith.constant 0 : i32
    %c0_i32_2 = arith.constant 0 : i32
    return %c0_i32, %c0_i32_0, %c0_i32_1 : i32, i32, i32
  }
  func.func @transform_10(%arg0: i32) -> (i32, i32, i32) {
    %c0_i32 = arith.constant 0 : i32
    %c0_i32_0 = arith.constant 0 : i32
    %c0_i32_1 = arith.constant 0 : i32
    %c0_i32_2 = arith.constant 0 : i32
    return %c0_i32, %c0_i32_0, %c0_i32_1 : i32, i32, i32
  }
  func.func @transform_11(%arg0: i32) -> (i32, i32, i32) {
    %c0_i32 = arith.constant 0 : i32
    %c0_i32_0 = arith.constant 0 : i32
    %c0_i32_1 = arith.constant 0 : i32
    %c0_i32_2 = arith.constant 0 : i32
    return %c0_i32, %c0_i32_0, %c0_i32_1 : i32, i32, i32
  }
  func.func @transform_12(%arg0: i32) -> (i32, i32, i32) {
    %c0_i32 = arith.constant 0 : i32
    %c0_i32_0 = arith.constant 0 : i32
    %c0_i32_1 = arith.constant 0 : i32
    %c0_i32_2 = arith.constant 0 : i32
    return %c0_i32, %c0_i32_0, %c0_i32_1 : i32, i32, i32
  }
  func.func @transform_13(%arg0: i32) -> (i32, i32, i32) {
    %c0_i32 = arith.constant 0 : i32
    %c0_i32_0 = arith.constant 0 : i32
    %c0_i32_1 = arith.constant 0 : i32
    %c0_i32_2 = arith.constant 0 : i32
    return %c0_i32, %c0_i32_0, %c0_i32_1 : i32, i32, i32
  }
  func.func @transform_14(%arg0: i32) -> (i32, i32, i32) {
    %c0_i32 = arith.constant 0 : i32
    %c0_i32_0 = arith.constant 0 : i32
    %c0_i32_1 = arith.constant 0 : i32
    %c0_i32_2 = arith.constant 0 : i32
    return %c0_i32, %c0_i32_0, %c0_i32_1 : i32, i32, i32
  }
  func.func @transform_15(%arg0: i32) -> (i32, i32, i32) {
    %c0_i32 = arith.constant 0 : i32
    %c0_i32_0 = arith.constant 0 : i32
    %c0_i32_1 = arith.constant 0 : i32
    %c0_i32_2 = arith.constant 0 : i32
    return %c0_i32, %c0_i32_0, %c0_i32_1 : i32, i32, i32
  }
  func.func @transform_16(%arg0: i32) -> (i32, i32) {
    %c0_i32 = arith.constant 0 : i32
    %c0_i32_0 = arith.constant 0 : i32
    %c0_i32_1 = arith.constant 0 : i32
    return %c0_i32, %c0_i32_0 : i32, i32
  }
  func.func @transform_17(%arg0: i32) -> (i32, i32) {
    %c0_i32 = arith.constant 0 : i32
    %c0_i32_0 = arith.constant 0 : i32
    %c0_i32_1 = arith.constant 0 : i32
    return %c0_i32, %c0_i32_0 : i32, i32
  }
  func.func @transform_18(%arg0: i32) -> (i32, i32) {
    %c0_i32 = arith.constant 0 : i32
    %c0_i32_0 = arith.constant 0 : i32
    %c0_i32_1 = arith.constant 0 : i32
    return %c0_i32, %c0_i32_0 : i32, i32
  }
  func.func @transform_19(%arg0: i32) -> (i32, i32) {
    %c0_i32 = arith.constant 0 : i32
    %c0_i32_0 = arith.constant 0 : i32
    %c0_i32_1 = arith.constant 0 : i32
    return %c0_i32, %c0_i32_0 : i32, i32
  }
  func.func @transform_20(%arg0: i32) -> (i32, i32) {
    %c0_i32 = arith.constant 0 : i32
    %c0_i32_0 = arith.constant 0 : i32
    %c0_i32_1 = arith.constant 0 : i32
    return %c0_i32, %c0_i32_0 : i32, i32
  }
  func.func @transform_21(%arg0: i32) -> (i32, i32, i32) {
    %c0_i32 = arith.constant 0 : i32
    %c0_i32_0 = arith.constant 0 : i32
    %c0_i32_1 = arith.constant 0 : i32
    %c0_i32_2 = arith.constant 0 : i32
    return %c0_i32, %c0_i32_0, %c0_i32_1 : i32, i32, i32
  }
  func.func @transform_22(%arg0: i32) -> (i32, i32, i32) {
    %c0_i32 = arith.constant 0 : i32
    %c0_i32_0 = arith.constant 0 : i32
    %c0_i32_1 = arith.constant 0 : i32
    %c0_i32_2 = arith.constant 0 : i32
    return %c0_i32, %c0_i32_0, %c0_i32_1 : i32, i32, i32
  }
  func.func @transform_23(%arg0: i32) -> (i32, i32, i32) {
    %c0_i32 = arith.constant 0 : i32
    %c0_i32_0 = arith.constant 0 : i32
    %c0_i32_1 = arith.constant 0 : i32
    %c0_i32_2 = arith.constant 0 : i32
    return %c0_i32, %c0_i32_0, %c0_i32_1 : i32, i32, i32
  }
  func.func @transform_24(%arg0: i32) -> (i32, i32, i32) {
    %c0_i32 = arith.constant 0 : i32
    %c0_i32_0 = arith.constant 0 : i32
    %c0_i32_1 = arith.constant 0 : i32
    %c0_i32_2 = arith.constant 0 : i32
    return %c0_i32, %c0_i32_0, %c0_i32_1 : i32, i32, i32
  }
  func.func @transform_25(%arg0: i32) -> (i32, i32, i32) {
    %c0_i32 = arith.constant 0 : i32
    %c0_i32_0 = arith.constant 0 : i32
    %c0_i32_1 = arith.constant 0 : i32
    %c0_i32_2 = arith.constant 0 : i32
    return %c0_i32, %c0_i32_0, %c0_i32_1 : i32, i32, i32
  }
  func.func @transform_26(%arg0: i32) -> (i32, i32, i32) {
    %c0_i32 = arith.constant 0 : i32
    %c0_i32_0 = arith.constant 0 : i32
    %c0_i32_1 = arith.constant 0 : i32
    %c0_i32_2 = arith.constant 0 : i32
    return %c0_i32, %c0_i32_0, %c0_i32_1 : i32, i32, i32
  }
  func.func @transform_27(%arg0: i32) -> (i32, i32, i32) {
    %c0_i32 = arith.constant 0 : i32
    %c0_i32_0 = arith.constant 0 : i32
    %c0_i32_1 = arith.constant 0 : i32
    %c0_i32_2 = arith.constant 0 : i32
    return %c0_i32, %c0_i32_0, %c0_i32_1 : i32, i32, i32
  }
  func.func @transform_28(%arg0: i32) -> (i32, i32, i32) {
    %c0_i32 = arith.constant 0 : i32
    %c0_i32_0 = arith.constant 0 : i32
    %c0_i32_1 = arith.constant 0 : i32
    %c0_i32_2 = arith.constant 0 : i32
    return %c0_i32, %c0_i32_0, %c0_i32_1 : i32, i32, i32
  }
  func.func @transform_29(%arg0: i32) -> (i32, i32, i32) {
    %c0_i32 = arith.constant 0 : i32
    %c0_i32_0 = arith.constant 0 : i32
    %c0_i32_1 = arith.constant 0 : i32
    %c0_i32_2 = arith.constant 0 : i32
    return %c0_i32, %c0_i32_0, %c0_i32_1 : i32, i32, i32
  }
  func.func @transform_30(%arg0: i32) -> (i32, i32, i32) {
    %c0_i32 = arith.constant 0 : i32
    %c0_i32_0 = arith.constant 0 : i32
    %c0_i32_1 = arith.constant 0 : i32
    %c0_i32_2 = arith.constant 0 : i32
    return %c0_i32, %c0_i32_0, %c0_i32_1 : i32, i32, i32
  }
  func.func @transform_31(%arg0: i32) -> (i32, i32, i32) {
    %c0_i32 = arith.constant 0 : i32
    %c0_i32_0 = arith.constant 0 : i32
    %c0_i32_1 = arith.constant 0 : i32
    %c0_i32_2 = arith.constant 0 : i32
    return %c0_i32, %c0_i32_0, %c0_i32_1 : i32, i32, i32
  }
  func.func @transform_32(%arg0: i32) -> (i32, i32, i32) {
    %c0_i32 = arith.constant 0 : i32
    %c0_i32_0 = arith.constant 0 : i32
    %c0_i32_1 = arith.constant 0 : i32
    %c0_i32_2 = arith.constant 0 : i32
    return %c0_i32, %c0_i32_0, %c0_i32_1 : i32, i32, i32
  }
  func.func @transform_33(%arg0: i32) -> (i32, i32) {
    %c0_i32 = arith.constant 0 : i32
    %c0_i32_0 = arith.constant 0 : i32
    %c0_i32_1 = arith.constant 0 : i32
    return %c0_i32, %c0_i32_0 : i32, i32
  }
  func.func @transform_34(%arg0: i32) -> (i32, i32) {
    %c0_i32 = arith.constant 0 : i32
    %c0_i32_0 = arith.constant 0 : i32
    %c0_i32_1 = arith.constant 0 : i32
    return %c0_i32, %c0_i32_0 : i32, i32
  }
  func.func @transform_35(%arg0: i32) -> (i32, i32) {
    %c0_i32 = arith.constant 0 : i32
    %c0_i32_0 = arith.constant 0 : i32
    %c0_i32_1 = arith.constant 0 : i32
    return %c0_i32, %c0_i32_0 : i32, i32
  }
  func.func @transform_36(%arg0: i32) -> (i32, i32) {
    %c0_i32 = arith.constant 0 : i32
    %c0_i32_0 = arith.constant 0 : i32
    %c0_i32_1 = arith.constant 0 : i32
    return %c0_i32, %c0_i32_0 : i32, i32
  }
  func.func @transform_37(%arg0: i32) -> (i32, i32) {
    %c0_i32 = arith.constant 0 : i32
    %c0_i32_0 = arith.constant 0 : i32
    %c0_i32_1 = arith.constant 0 : i32
    return %c0_i32, %c0_i32_0 : i32, i32
  }
}

</mosaic_0001>

<bundles_post_ra>
// kernel: odvit_forward.1
= control target key start
LH: loop header
LB: loop body
LE: loop exit
PB: predicated region body
PF: predicated region fallthrough
CT: control target
= control target key end

     0   :  { %s5616_s3 = smov 1   ;;  %s5617_s10 = smov 2   ;;  %vm638_vm0 = vcmask 261120   ;;  %vm775_vm1 = vcmask 130048   ;;  %vm5655_vm3 = vmmov 0   ;;  %vm3796_vm4 = vcmask 257024   ;;  %s6345_s0 = inlined_call_operand.smem [shape: u32[38], index: -1, kind: input, shape index: {}] }
   0x1   :  { %s5669_s6 = sld [smem:[%s6345_s0 + %s5616_s3]]   ;;  %s5618_s14 = smov 6   ;;  %vm5876_vm2 = vmpackc.low %vm775_vm1, %vm775_vm1  ;;  %vm3804_vm5 = vcmask 256000   ;;  %vm3896_vm6 = vcmask 31744   ;;  %vm3898_vm7 = vcmask 64512   ;;  %vm3905_vm8 = vcmask 359424  }
   0x2   :  { %s5713_s9 = sld [smem:[%s6345_s0]]   ;;  %s5619_s18 = smov 4  }
   0x3   :  { %s4168_s13 = sld [smem:[%s6345_s0 + %s5617_s10]]   ;;  %s5620_s22 = smov 5  }
   0x4   :  { %s5838_s17 = sld [smem:[%s6345_s0 + %s5618_s14]]   ;;  %s5621_s26 = smov 7  }
   0x5   :  { %s5848_s21 = sld [smem:[%s6345_s0 + %s5619_s18]]   ;;  %s5622_s30 = smov 80  }
   0x6   :  { %s5853_s25 = sld [smem:[%s6345_s0 + %s5620_s22]]   ;;  %s5623_s1 = smov 96  }
   0x7   :  { %v186_v0 = vld [vmem:[%s5669_s6 + $0x80] sm:$0xff]  ;;  %v187_v1 = vld [vmem:[%s5669_s6 + $0x88] sm:$0xff]  ;;  %v188_v11 = vld [vmem:[%s5669_s6 + $0x90] sm:$0xff]  ;;  %s5862_s29 = sld [smem:[%s6345_s0 + %s5621_s26]]   ;;  %s5624_s2 = smov 112  }
   0x8   :  { %v170_v2 = vld [vmem:[%s5669_s6] sm:$0xff]  ;;  %v5025_v3 = vpack.c.bf16 %v187_v1, %v186_v0  ;;  %v171_v4 = vld [vmem:[%s5669_s6 + $0x8] sm:$0xff]  ;;  %v189_v13 = vld [vmem:[%s5669_s6 + $0x98] sm:$0xff]  ;;  %s5625_s3 = smov 3   ;;  %s5626_s7 = smov 48  }
   0x9   :  { %v218_v5 = vld [vmem:[%s5669_s6 + $0x180] sm:$0xff]  ;;  %v219_v6 = vld [vmem:[%s5669_s6 + $0x188] sm:$0xff]  ;;  %v5027_v7 = vpack.c.bf16 %v171_v4, %v170_v2  ;;  %v172_v14 = vld [vmem:[%s5669_s6 + $0x10] sm:$0xff]  ;;  %v5029_v16 = vpack.c.bf16 %v189_v13, %v188_v11  ;;  %s5627_s8 = smov 64   ;;  %s5630_s19 = smov 12  }
   0xa   :  { %v5057_v8 = vpack.c.bf16 %v219_v6, %v218_v5  ;;  %v202_v9 = vld [vmem:[%s5669_s6 + $0x100] sm:$0xff]  ;;  %v203_v10 = vld [vmem:[%s5669_s6 + $0x108] sm:$0xff]  ;;  %5026 = vmatprep.subr.bf16.mxu0 %v5025_v3  ;;  %v173_v15 = vld [vmem:[%s5669_s6 + $0x18] sm:$0xff]  ;;  %s5955_s23 = sld [smem:[%s6345_s0 + %s5630_s19]]   ;;  %s5631_s24 = smov 10  }
   0xb   :  { %v5059_v12 = vpack.c.bf16 %v203_v10, %v202_v9  ;;  %5028 = vmatpush3.bf16.msra.mxu0 %v5027_v7  ;;  %v5031_v17 = vpack.c.bf16 %v173_v15, %v172_v14  ;;  %v220_v18 = vld [vmem:[%s5669_s6 + $0x190] sm:$0xff]  ;;  %v221_v19 = vld [vmem:[%s5669_s6 + $0x198] sm:$0xff]  ;;  %v190_v23 = vld [vmem:[%s5669_s6 + $0xa0] sm:$0xff]  ;;  %s5964_s28 = sld [smem:[%s6345_s0 + %s5631_s24]]   ;;  %s5633_s10 = smov 14  }
   0xc   :  { %5058 = vmatprep.subr.bf16.mxu1 %v5057_v8  ;;  %v204_v20 = vld [vmem:[%s5669_s6 + $0x110] sm:$0xff]  ;;  %v5061_v21 = vpack.c.bf16 %v221_v19, %v220_v18  ;;  %v205_v22 = vld [vmem:[%s5669_s6 + $0x118] sm:$0xff]  ;;  %v191_v24 = vld [vmem:[%s5669_s6 + $0xa8] sm:$0xff]  ;;  %5030 = vmatprep.subr.bf16.mxu0 %v5029_v16  ;;  %s5978_s14 = sld [smem:[%s6345_s0 + %s5633_s10]]   ;;  %s5634_s15 = smov 13  }
   0xd   :  { %5060 = vmatpush3.bf16.msra.mxu1 %v5059_v12  ;;  %v5063_v25 = vpack.c.bf16 %v205_v22, %v204_v20  ;;  %v5033_v26 = vpack.c.bf16 %v191_v24, %v190_v23  ;;  %v174_v27 = vld [vmem:[%s5669_s6 + $0x20] sm:$0xff]  ;;  %v175_v28 = vld [vmem:[%s5669_s6 + $0x28] sm:$0xff]  ;;  %v192_v35 = vld [vmem:[%s5669_s6 + $0xb0] sm:$0xff]  ;;  %s5999_s22 = sld [smem:[%s6345_s0 + %s5634_s15]]   ;;  %s5635_s24 = smov 15  }
   0xe   :  { %v222_v29 = vld [vmem:[%s5669_s6 + $0x1a0] sm:$0xff]  ;;  %5062 = vmatprep.subr.bf16.mxu1 %v5061_v21  ;;  %v223_v30 = vld [vmem:[%s5669_s6 + $0x1a8] sm:$0xff]  ;;  %v5035_v33 = vpack.c.bf16 %v175_v28, %v174_v27  ;;  %v193_v36 = vld [vmem:[%s5669_s6 + $0xb8] sm:$0xff]  ;;  %s5638_s4 = smov 18   ;;  %s5639_s11 = smov 19  }
   0xf   :  { %v206_v31 = vld [vmem:[%s5669_s6 + $0x120] sm:$0xff]  ;;  %v207_v32 = vld [vmem:[%s5669_s6 + $0x128] sm:$0xff]  ;;  %5032 = vmatpush3.bf16.msra.mxu0 %v5031_v17  ;;  %v5065_v34 = vpack.c.bf16 %v223_v30, %v222_v29  ;;  %v176_v37 = vld [vmem:[%s5669_s6 + $0x30] sm:$0xff]  ;;  %v5037_v39 = vpack.c.bf16 %v193_v36, %v192_v35  ;;  %s4184_s10 = sld [smem:[%s6345_s0 + %s5638_s4]]   ;;  %s5640_s19 = smov 23  }
  0x10   :  { %5034 = vmatprep.subr.bf16.mxu0 %v5033_v26  ;;  %v5067_v38 = vpack.c.bf16 %v207_v32, %v206_v31  ;;  %v177_v40 = vld [vmem:[%s5669_s6 + $0x38] sm:$0xff]  ;;  %v224_v41 = vld [vmem:[%s5669_s6 + $0x1b0] sm:$0xff]  ;;  %v194_v46 = vld [vmem:[%s5669_s6 + $0xc0] sm:$0xff]  ;;  %s4185_s15 = sld [smem:[%s6345_s0 + %s5639_s11]]   ;;  %s5641_s26 = smov 21  }
  0x11   :  { %5064 = vmatpush3.bf16.msra.mxu1 %v5063_v25  ;;  %v225_v42 = vld [vmem:[%s5669_s6 + $0x1b8] sm:$0xff]  ;;  %v208_v44 = vld [vmem:[%s5669_s6 + $0x130] sm:$0xff]  ;;  %v195_v47 = vld [vmem:[%s5669_s6 + $0xc8] sm:$0xff]  ;;  %v5039_v48 = vpack.c.bf16 %v177_v40, %v176_v37 }
  0x12   :  { %5066 = vmatprep.subr.bf16.mxu1 %v5065_v34  ;;  %v5069_v43 = vpack.c.bf16 %v225_v42, %v224_v41  ;;  %v209_v45 = vld [vmem:[%s5669_s6 + $0x138] sm:$0xff]  ;;  %v226_v49 = vld [vmem:[%s5669_s6 + $0x1c0] sm:$0xff]  ;;  %v227_v50 = vld [vmem:[%s5669_s6 + $0x1c8] sm:$0xff]  ;;  %v5041_v52 = vpack.c.bf16 %v195_v47, %v194_v46 }
  0x13   :  { %5036 = vmatpush3.bf16.msra.mxu0 %v5035_v33  ;;  %v5071_v51 = vpack.c.bf16 %v209_v45, %v208_v44  ;;  %v178_v53 = vld [vmem:[%s5669_s6 + $0x40] sm:$0xff]  ;;  %v179_v54 = vld [vmem:[%s5669_s6 + $0x48] sm:$0xff]  ;;  %v5073_v56 = vpack.c.bf16 %v227_v50, %v226_v49  ;;  %v196_v58 = vld [vmem:[%s5669_s6 + $0xd0] sm:$0xff] }
  0x14   :  { %5038 = vmatprep.subr.bf16.mxu0 %v5037_v39  ;;  %v210_v55 = vld [vmem:[%s5669_s6 + $0x140] sm:$0xff]  ;;  %v211_v57 = vld [vmem:[%s5669_s6 + $0x148] sm:$0xff]  ;;  %v197_v59 = vld [vmem:[%s5669_s6 + $0xd8] sm:$0xff]  ;;  %v5043_v62 = vpack.c.bf16 %v179_v54, %v178_v53 }
  0x15   :  { %5068 = vmatpush3.bf16.msra.mxu1 %v5067_v38  ;;  %v228_v60 = vld [vmem:[%s5669_s6 + $0x1d0] sm:$0xff]  ;;  %v229_v61 = vld [vmem:[%s5669_s6 + $0x1d8] sm:$0xff]  ;;  %v5075_v63 = vpack.c.bf16 %v211_v57, %v210_v55  ;;  %v5045_v0 = vpack.c.bf16 %v197_v59, %v196_v58  ;;  %v198_v6 = vld [vmem:[%s5669_s6 + $0xe0] sm:$0xff] }
  0x16   :  { %5070 = vmatprep.subr.bf16.mxu1 %v5069_v43  ;;  %v180_v1 = vld [vmem:[%s5669_s6 + $0x50] sm:$0xff]  ;;  %v181_v2 = vld [vmem:[%s5669_s6 + $0x58] sm:$0xff]  ;;  %v5077_v4 = vpack.c.bf16 %v229_v61, %v228_v60  ;;  %v199_v7 = vld [vmem:[%s5669_s6 + $0xe8] sm:$0xff] }
  0x17   :  { %5040 = vmatpush3.bf16.msra.mxu0 %v5039_v48  ;;  %v212_v3 = vld [vmem:[%s5669_s6 + $0x150] sm:$0xff]  ;;  %v213_v5 = vld [vmem:[%s5669_s6 + $0x158] sm:$0xff]  ;;  %v230_v8 = vld [vmem:[%s5669_s6 + $0x1e0] sm:$0xff]  ;;  %v5047_v10 = vpack.c.bf16 %v181_v2, %v180_v1  ;;  %v5049_v14 = vpack.c.bf16 %v199_v7, %v198_v6 }
  0x18   :  { %5042 = vmatprep.subr.bf16.mxu0 %v5041_v52  ;;  %v231_v9 = vld [vmem:[%s5669_s6 + $0x1e8] sm:$0xff]  ;;  %v182_v11 = vld [vmem:[%s5669_s6 + $0x60] sm:$0xff]  ;;  %v5079_v13 = vpack.c.bf16 %v213_v5, %v212_v3  ;;  %v200_v19 = vld [vmem:[%s5669_s6 + $0xf0] sm:$0xff] }
  0x19   :  { %5072 = vmatpush3.bf16.msra.mxu1 %v5071_v51  ;;  %v183_v12 = vld [vmem:[%s5669_s6 + $0x68] sm:$0xff]  ;;  %v214_v15 = vld [vmem:[%s5669_s6 + $0x160] sm:$0xff]  ;;  %v5081_v18 = vpack.c.bf16 %v231_v9, %v230_v8  ;;  %v201_v20 = vld [vmem:[%s5669_s6 + $0xf8] sm:$0xff] }
  0x1a   :  { %5074 = vmatprep.subr.bf16.mxu1 %v5073_v56  ;;  %v215_v16 = vld [vmem:[%s5669_s6 + $0x168] sm:$0xff]  ;;  %v157_v21 = vld [vmem:[%s5713_s9 + $0x18] sm:$0xff]  ;;  %v232_v22 = vld [vmem:[%s5669_s6 + $0x1f0] sm:$0xff]  ;;  %v5051_v24 = vpack.c.bf16 %v183_v12, %v182_v11  ;;  %v5053_v26 = vpack.c.bf16 %v201_v20, %v200_v19 }
  0x1b   :  { %5044 = vmatpush3.bf16.msra.mxu0 %v5043_v62  ;;  %v155_v17 = vld [vmem:[%s5713_s9 + $0x8] sm:$0xff]  ;;  %v233_v23 = vld [vmem:[%s5669_s6 + $0x1f8] sm:$0xff]  ;;  %439 = vmatprep.mubr.f32.mxu1 %v157_v21  ;;  %v5083_v25 = vpack.c.bf16 %v215_v16, %v214_v15  ;;  %v184_v27 = vld [vmem:[%s5669_s6 + $0x70] sm:$0xff] }
  0x1c   :  { %5046 = vmatprep.subr.bf16.mxu0 %v5045_v0  ;;  %364 = vmatprep.mubr.f32.mxu0 %v155_v17  ;;  %v185_v28 = vld [vmem:[%s5669_s6 + $0x78] sm:$0xff]  ;;  %v216_v29 = vld [vmem:[%s5669_s6 + $0x170] sm:$0xff]  ;;  %v5085_v30 = vpack.c.bf16 %v233_v23, %v232_v22  ;;  %v250_v32 = vld [vmem:[%s5669_s6 + $0x280] sm:$0xff] }
  0x1d   :  { %5076 = vmatpush3.bf16.msra.mxu1 %v5075_v63  ;;  %v217_v31 = vld [vmem:[%s5669_s6 + $0x178] sm:$0xff]  ;;  %v251_v33 = vld [vmem:[%s5669_s6 + $0x288] sm:$0xff]  ;;  %v282_v34 = vld [vmem:[%s5669_s6 + $0x380] sm:$0xff]  ;;  %v5055_v36 = vpack.c.bf16 %v185_v28, %v184_v27 }
  0x1e   :  { %5078 = vmatprep.subr.bf16.mxu1 %v5077_v4  ;;  %v283_v35 = vld [vmem:[%s5669_s6 + $0x388] sm:$0xff]  ;;  %v5087_v37 = vpack.c.bf16 %v217_v31, %v216_v29  ;;  %v5089_v38 = vpack.c.bf16 %v251_v33, %v250_v32  ;;  %v234_v39 = vld [vmem:[%s5669_s6 + $0x200] sm:$0xff]  ;;  %v252_v44 = vld [vmem:[%s5669_s6 + $0x290] sm:$0xff] }
  0x1f   :  { %5048 = vmatpush3.bf16.msra.mxu0 %v5047_v10  ;;  %v235_v40 = vld [vmem:[%s5669_s6 + $0x208] sm:$0xff]  ;;  %v266_v41 = vld [vmem:[%s5669_s6 + $0x300] sm:$0xff]  ;;  %v5121_v42 = vpack.c.bf16 %v283_v35, %v282_v34  ;;  %v253_v45 = vld [vmem:[%s5669_s6 + $0x298] sm:$0xff] }
  0x20   :  { %5050 = vmatprep.subr.bf16.mxu0 %v5049_v14  ;;  %v267_v43 = vld [vmem:[%s5669_s6 + $0x308] sm:$0xff]  ;;  %v284_v46 = vld [vmem:[%s5669_s6 + $0x390] sm:$0xff]  ;;  %v285_v47 = vld [vmem:[%s5669_s6 + $0x398] sm:$0xff]  ;;  %v5091_v49 = vpack.c.bf16 %v235_v40, %v234_v39  ;;  %v5093_v52 = vpack.c.bf16 %v253_v45, %v252_v44 }
  0x21   :  { %5080 = vmatpush3.bf16.msra.mxu1 %v5079_v13  ;;  %v154_v48 = vld [vmem:[%s5713_s9] sm:$0xff]  ;;  %v156_v50 = vld [vmem:[%s5713_s9 + $0x10] sm:$0xff]  ;;  %v5123_v51 = vpack.c.bf16 %v267_v43, %v266_v41  ;;  %v237_v54 = vld [vmem:[%s5669_s6 + $0x218] sm:$0xff]  ;;  %v5125_v56 = vpack.c.bf16 %v285_v47, %v284_v46 }
  0x22   :  { %5082 = vmatprep.subr.bf16.mxu1 %v5081_v18  ;;  %v236_v53 = vld [vmem:[%s5669_s6 + $0x210] sm:$0xff]  ;;  %v269_v57 = vld [vmem:[%s5669_s6 + $0x318] sm:$0xff]  ;;  %v254_v58 = vld [vmem:[%s5669_s6 + $0x2a0] sm:$0xff] }
  0x23   :  { %5052 = vmatpush3.bf16.msra.mxu0 %v5051_v24  ;;  %v268_v55 = vld [vmem:[%s5669_s6 + $0x310] sm:$0xff]  ;;  %v255_v59 = vld [vmem:[%s5669_s6 + $0x2a8] sm:$0xff]  ;;  %v286_v60 = vld [vmem:[%s5669_s6 + $0x3a0] sm:$0xff]  ;;  %v5095_v62 = vpack.c.bf16 %v237_v54, %v236_v53 }
  0x24   :  { %5054 = vmatprep.subr.bf16.mxu0 %v5053_v26  ;;  %v287_v61 = vld [vmem:[%s5669_s6 + $0x3a8] sm:$0xff]  ;;  %v5127_v63 = vpack.c.bf16 %v269_v57, %v268_v55  ;;  %v5097_v0 = vpack.c.bf16 %v255_v59, %v254_v58  ;;  %v238_v1 = vld [vmem:[%s5669_s6 + $0x220] sm:$0xff]  ;;  %v256_v6 = vld [vmem:[%s5669_s6 + $0x2b0] sm:$0xff] }
  0x25   :  { %5084 = vmatpush3.bf16.msra.mxu1 %v5083_v25  ;;  %v239_v2 = vld [vmem:[%s5669_s6 + $0x228] sm:$0xff]  ;;  %v270_v3 = vld [vmem:[%s5669_s6 + $0x320] sm:$0xff]  ;;  %v5129_v4 = vpack.c.bf16 %v287_v61, %v286_v60  ;;  %v257_v7 = vld [vmem:[%s5669_s6 + $0x2b8] sm:$0xff] }
  0x26   :  { %5086 = vmatprep.subr.bf16.mxu1 %v5085_v30  ;;  %v271_v5 = vld [vmem:[%s5669_s6 + $0x328] sm:$0xff]  ;;  %v288_v8 = vld [vmem:[%s5669_s6 + $0x3b0] sm:$0xff]  ;;  %v289_v9 = vld [vmem:[%s5669_s6 + $0x3b8] sm:$0xff]  ;;  %v5099_v10 = vpack.c.bf16 %v239_v2, %v238_v1  ;;  %v5101_v15 = vpack.c.bf16 %v257_v7, %v256_v6 }
  0x27   :  { %5056 = vmatpush3.bf16.msra.mxu0 %v5055_v36  ;;  %v240_v11 = vld [vmem:[%s5669_s6 + $0x230] sm:$0xff]  ;;  %v241_v12 = vld [vmem:[%s5669_s6 + $0x238] sm:$0xff]  ;;  %v163_v13 = vld [vmem:[%s5713_s9 + $0x48] sm:$0xff]  ;;  %v5131_v14 = vpack.c.bf16 %v271_v5, %v270_v3  ;;  %v5133_v19 = vpack.c.bf16 %v289_v9, %v288_v8 }
  0x28   :  { %5090 = vmatprep.subr.bf16.mxu0 %v5089_v38  ;;  %v272_v16 = vld [vmem:[%s5669_s6 + $0x330] sm:$0xff]  ;;  %v273_v17 = vld [vmem:[%s5669_s6 + $0x338] sm:$0xff]  ;;  %v162_v18 = vld [vmem:[%s5713_s9 + $0x40] sm:$0xff]  ;;  %v5103_v26 = vpack.c.bf16 %v241_v12, %v240_v11 }
  0x29   :  { %5088 = vmatpush3.bf16.msra.mxu1 %v5087_v37  ;;  %v258_v20 = vld [vmem:[%s5669_s6 + $0x2c0] sm:$0xff]  ;;  %v259_v21 = vld [vmem:[%s5669_s6 + $0x2c8] sm:$0xff]  ;;  %v165_v22 = vld [vmem:[%s5713_s9 + $0x58] sm:$0xff]  ;;  %v5135_v29 = vpack.c.bf16 %v273_v17, %v272_v16 }
  0x2a   :  { %5122 = vmatprep.subr.bf16.mxu1 %v5121_v42  ;;  %365 = vmatmul.mubr.f32.vlgmr.msra.gmra.mrb[0].mxu0 %v154_v48  ;;  %v290_v23 = vld [vmem:[%s5669_s6 + $0x3c0] sm:$0xff]  ;;  %v291_v24 = vld [vmem:[%s5669_s6 + $0x3c8] sm:$0xff]  ;;  %v164_v25 = vld [vmem:[%s5713_s9 + $0x50] sm:$0xff]  ;;  %v5105_v30 = vpack.c.bf16 %v259_v21, %v258_v20 }
  0x2b   :  { %5092 = vmatpush3.bf16.msra.mxu0 %v5091_v49  ;;  %369 = vmatprep.mubr.f32.mxu0 %v163_v13  ;;  %v242_v27 = vld [vmem:[%s5669_s6 + $0x240] sm:$0xff]  ;;  %v243_v28 = vld [vmem:[%s5669_s6 + $0x248] sm:$0xff]  ;;  %v5137_v34 = vpack.c.bf16 %v291_v24, %v290_v23  ;;  %v260_v35 = vld [vmem:[%s5669_s6 + $0x2d0] sm:$0xff] }
  0x2c   :  { %440 = vmatmul.mubr.f32.vlgmr.msra.gmra.mrb[0].mxu1 %v156_v50  ;;  %5094 = vmatprep.subr.bf16.mxu0 %v5093_v52  ;;  %v274_v31 = vld [vmem:[%s5669_s6 + $0x340] sm:$0xff]  ;;  %v275_v32 = vld [vmem:[%s5669_s6 + $0x348] sm:$0xff]  ;;  %v261_v36 = vld [vmem:[%s5669_s6 + $0x2d8] sm:$0xff]  ;;  %v5107_v40 = vpack.c.bf16 %v243_v28, %v242_v27 }
  0x2d   :  { %5124 = vmatpush3.bf16.msra.mxu1 %v5123_v51  ;;  %444 = vmatprep.mubr.f32.mxu1 %v165_v22  ;;  %v159_v33 = vld [vmem:[%s5713_s9 + $0x28] sm:$0xff]  ;;  %v161_v37 = vld [vmem:[%s5713_s9 + $0x38] sm:$0xff]  ;;  %v292_v38 = vld [vmem:[%s5669_s6 + $0x3d0] sm:$0xff]  ;;  %v5139_v41 = vpack.c.bf16 %v275_v32, %v274_v31  ;;  %v5109_v42 = vpack.c.bf16 %v261_v36, %v260_v35 }
  0x2e   :  { %5126 = vmatprep.subr.bf16.mxu1 %v5125_v56  ;;  %370 = vmatmul.mubr.f32.gmra.mrb[2].mxu0 %v162_v18  ;;  %v293_v39 = vld [vmem:[%s5669_s6 + $0x3d8] sm:$0xff]  ;;  %v244_v43 = vld [vmem:[%s5669_s6 + $0x250] sm:$0xff]  ;;  %v262_v48 = vld [vmem:[%s5669_s6 + $0x2e0] sm:$0xff] }
  0x2f   :  { %5096 = vmatpush3.bf16.msra.mxu0 %v5095_v62  ;;  %514 = vmatprep.mubr.f32.mxu0 %v159_v33  ;;  %v245_v44 = vld [vmem:[%s5669_s6 + $0x258] sm:$0xff]  ;;  %v276_v45 = vld [vmem:[%s5669_s6 + $0x350] sm:$0xff]  ;;  %v5141_v46 = vpack.c.bf16 %v293_v39, %v292_v38  ;;  %v263_v49 = vld [vmem:[%s5669_s6 + $0x2e8] sm:$0xff] }
  0x30   :  { %5098 = vmatprep.subr.bf16.mxu0 %v5097_v0  ;;  %445 = vmatmul.mubr.f32.gmra.mrb[2].mxu1 %v164_v25  ;;  %v277_v47 = vld [vmem:[%s5669_s6 + $0x358] sm:$0xff]  ;;  %v294_v50 = vld [vmem:[%s5669_s6 + $0x3e0] sm:$0xff]  ;;  %v295_v51 = vld [vmem:[%s5669_s6 + $0x3e8] sm:$0xff]  ;;  %v5111_v52 = vpack.c.bf16 %v245_v44, %v244_v43  ;;  %v5113_v54 = vpack.c.bf16 %v263_v49, %v262_v48 }
  0x31   :  { %5128 = vmatpush3.bf16.msra.mxu1 %v5127_v63  ;;  %589 = vmatprep.mubr.f32.mxu1 %v161_v37  ;;  %v5143_v53 = vpack.c.bf16 %v277_v47, %v276_v45  ;;  %v246_v55 = vld [vmem:[%s5669_s6 + $0x260] sm:$0xff]  ;;  %v247_v56 = vld [vmem:[%s5669_s6 + $0x268] sm:$0xff]  ;;  %v5145_v58 = vpack.c.bf16 %v295_v51, %v294_v50  ;;  %v264_v60 = vld [vmem:[%s5669_s6 + $0x2f0] sm:$0xff] }
  0x32   :  { %5130 = vmatprep.subr.bf16.mxu1 %v5129_v4  ;;  %v278_v57 = vld [vmem:[%s5669_s6 + $0x360] sm:$0xff]  ;;  %v279_v59 = vld [vmem:[%s5669_s6 + $0x368] sm:$0xff]  ;;  %v265_v61 = vld [vmem:[%s5669_s6 + $0x2f8] sm:$0xff]  ;;  %v5115_v0 = vpack.c.bf16 %v247_v56, %v246_v55 }
  0x33   :  { %5100 = vmatpush3.bf16.msra.mxu0 %v5099_v10  ;;  %v296_v62 = vld [vmem:[%s5669_s6 + $0x3f0] sm:$0xff]  ;;  %v297_v63 = vld [vmem:[%s5669_s6 + $0x3f8] sm:$0xff]  ;;  %v5147_v1 = vpack.c.bf16 %v279_v59, %v278_v57  ;;  %v5117_v2 = vpack.c.bf16 %v265_v61, %v264_v60  ;;  %v158_v10 = vld [vmem:[%s5713_s9 + $0x20] sm:$0xff] }
  0x34   :  { %5102 = vmatprep.subr.bf16.mxu0 %v5101_v15  ;;  %v248_v3 = vld [vmem:[%s5669_s6 + $0x270] sm:$0xff]  ;;  %v249_v4 = vld [vmem:[%s5669_s6 + $0x278] sm:$0xff]  ;;  %v5149_v5 = vpack.c.bf16 %v297_v63, %v296_v62  ;;  %v167_v12 = vld [vmem:[%s5713_s9 + $0x68] sm:$0xff] }
  0x35   :  { %5132 = vmatpush3.bf16.msra.mxu1 %v5131_v14  ;;  %v280_v6 = vld [vmem:[%s5669_s6 + $0x370] sm:$0xff]  ;;  %v281_v7 = vld [vmem:[%s5669_s6 + $0x378] sm:$0xff]  ;;  %v5119_v8 = vpack.c.bf16 %v249_v4, %v248_v3  ;;  %v166_v14 = vld [vmem:[%s5713_s9 + $0x60] sm:$0xff]  ;;  %s4169_s6 = sld [smem:[%s6345_s0 + %s5625_s3]]   ;;  %s5632_s3 = smov 11  }
  0x36   :  { %5134 = vmatprep.subr.bf16.mxu1 %v5133_v19  ;;  %v5151_v9 = vpack.c.bf16 %v281_v7, %v280_v6  ;;  %v160_v11 = vld [vmem:[%s5713_s9 + $0x30] sm:$0xff]  ;;  %v169_v13 = vld [vmem:[%s5713_s9 + $0x78] sm:$0xff]  ;;  %v298_v17 = vld [vmem:[%s4168_s13] sm:$0xff] }
  0x37   :  { %5104 = vmatpush3.bf16.msra.mxu0 %v5103_v26  ;;  %v168_v15 = vld [vmem:[%s5713_s9 + $0x70] sm:$0xff]  ;;  %v299_v26 = vld [vmem:[%s4168_s13 + $0x8] sm:$0xff]  ;;  %v604_v62 = vld [vmem:[%s5838_s17] sm:$0xff]  ;;  %s5628_s9 = smov 8   ;;  %s5629_s13 = smov 9  }
  0x38   :  { %5106 = vmatprep.subr.bf16.mxu0 %v5105_v30  ;;  %v605_v63 = vld [vmem:[%s5838_s17 + $0x8] sm:$0xff]  ;;  %s5922_s12 = sld [smem:[%s6345_s0 + %s5628_s9]]  }
  0x39   :  { %5136 = vmatpush3.bf16.msra.mxu1 %v5135_v29  ;;  %s5935_s16 = sld [smem:[%s6345_s0 + %s5629_s13]]  }
  0x3a   :  { %5138 = vmatprep.subr.bf16.mxu1 %v5137_v34 }
  0x3b   :  { %5108 = vmatpush3.bf16.msra.mxu0 %v5107_v40 }
  0x3c   :  { %5110 = vmatprep.subr.bf16.mxu0 %v5109_v42 }
  0x3d   :  { %5140 = vmatpush3.bf16.msra.mxu1 %v5139_v41 }
  0x3e   :  { %5142 = vmatprep.subr.bf16.mxu1 %v5141_v46 }
  0x3f   :  { %5112 = vmatpush3.bf16.msra.mxu0 %v5111_v52 }
  0x40   :  { %5114 = vmatprep.subr.bf16.mxu0 %v5113_v54 }
  0x41   :  { %5144 = vmatpush3.bf16.msra.mxu1 %v5143_v53 }
  0x42   :  { %5146 = vmatprep.subr.bf16.mxu1 %v5145_v58 }
  0x43   :  { %5116 = vmatpush3.bf16.msra.mxu0 %v5115_v0  ;;  %v5153_v0 = vpack.c.bf16 %v605_v63, %v604_v62 }
  0x44   :  { %5118 = vmatprep.subr.bf16.mxu0 %v5117_v2  ;;  %v607_v2 = vld [vmem:[%s5838_s17 + $0x18] sm:$0xff] }
  0x45   :  { %5148 = vmatpush3.bf16.msra.mxu1 %v5147_v1  ;;  %v606_v1 = vld [vmem:[%s5838_s17 + $0x10] sm:$0xff] }
  0x46   :  { %5150 = vmatprep.subr.bf16.mxu1 %v5149_v5  ;;  %v5157_v3 = vpack.c.bf16 %v607_v2, %v606_v1 }
  0x47   :  { %5120 = vmatpush3.bf16.msra.mxu0 %v5119_v8 }
  0x48   :  { %5154 = vmatprep.subr.bf16.mxu0 %v5153_v0 }
  0x49   :  { %5152 = vmatpush3.bf16.msra.mxu1 %v5151_v9 }
  0x4a   :  { %515 = vmatmul.mubr.f32.vlgmr.msra.gmra.mrb[4].mxu0 %v158_v10 }
  0x4b   :  { %519 = vmatprep.mubr.f32.mxu0 %v167_v12  ;;  %5156 = vmatpush3.bf16.msra.mxu0 %v5153_v0 }
  0x4c   :  { %590 = vmatmul.mubr.f32.vlgmr.msra.gmra.mrb[4].mxu1 %v160_v11  ;;  %5158 = vmatprep.subr.bf16.mxu0 %v5157_v3  ;;  %v4204_v11 = vld [vmem:[%s5848_s21] ss:$0 sm:$0xff] }
  0x4d   :  { %594 = vmatprep.mubr.f32.mxu1 %v169_v13  ;;  %v4205_v13 = vld [vmem:[%s5853_s25] ss:$0 sm:$0xff] }
  0x4e   :  { %520 = vmatmul.mubr.f32.gmra.mrb[6].mxu0 %v166_v14 }
  0x4f   :  { %5160 = vmatpush3.bf16.msra.mxu0 %v5157_v3 }
  0x50   :  { %595 = vmatmul.mubr.f32.gmra.mrb[6].mxu1 %v168_v15 }
  0xfd   :  { %v4368_v16 = vpop.f32.mrb[0].mxu0 }
  0xfe   :  { %v4369_v18 = vpop.f32.mrb[1].mxu0 }
  0xff   :  { %v4406_v19 = vpop.f32.mrb[0].mxu1  ;;  %v4370_v20 = vadd.f32 %v4369_v18, %v4368_v16 }
 0x100   :  { %v4407_v21 = vpop.f32.mrb[1].mxu1 }
 0x101   :  { %v4408_v22 = vadd.f32 %v4407_v21, %v4406_v19  ;;  %v367_v23 = vadd.f32 %v4370_v20, %v298_v17  ;;  %v4371_v25 = vpop.f32.mrb[2].mxu0  ;;  %v4206_v20 = vld [vmem:[%s5862_s29] ss:$0 sm:$0xff] }
 0x102   :  { %v4372_v27 = vpop.f32.mrb[3].mxu0 }
 0x103   :  { %v442_v24 = vadd.f32 %v4408_v22, %v367_v23  ;;  %v4409_v28 = vpop.f32.mrb[2].mxu1  ;;  %v4373_v29 = vadd.f32 %v4372_v27, %v4371_v25 }
 0x104   :  { %v4410_v30 = vpop.f32.mrb[3].mxu1 }
 0x105   :  { %v4411_v31 = vadd.f32 %v4410_v30, %v4409_v28  ;;  %v372_v32 = vadd.f32 %v4373_v29, %v299_v26 }
 0x107   :  { %v447_v33 = vadd.f32 %v4411_v31, %v372_v32 }
 0x11d   :  { %v4444_v34 = vpop.f32.mrb[4].mxu0 }
 0x11e   :  { %v4445_v35 = vpop.f32.mrb[5].mxu0 }
 0x11f   :  { %v4482_v36 = vpop.f32.mrb[4].mxu1  ;;  %v4446_v37 = vadd.f32 %v4445_v35, %v4444_v34 }
 0x120   :  { %v4483_v38 = vpop.f32.mrb[5].mxu1 }
 0x121   :  { %v4484_v39 = vadd.f32 %v4483_v38, %v4482_v36  ;;  %v517_v40 = vadd.f32 %v4446_v37, %v442_v24  ;;  %v4447_v41 = vpop.f32.mrb[6].mxu0  ;;  %v5894_v38 = vld [vmem:[%s4169_s6 + $0x8] sm:$0xff] }
 0x122   :  { %v4448_v42 = vpop.f32.mrb[7].mxu0 }
 0x123   :  { %v4485_v43 = vpop.f32.mrb[6].mxu1  ;;  %v5823_v44 = vadd.f32 %v4484_v39, %v517_v40  ;;  %v4449_v45 = vadd.f32 %v4448_v42, %v4447_v41  ;;  %v5896_v41 = vld [vmem:[%s4169_s6] sm:$0xff]  ;;  %s5969_s6 = sld [smem:[%s6345_s0 + %s5632_s3]]  }
 0x124   :  { %v4486_v46 = vpop.f32.mrb[7].mxu1  ;;  %s6005_s3 = sld [smem:[%s6345_s0 + %s5635_s24]]  }
 0x125   :  { %v4487_v47 = vadd.f32 %v4486_v46, %v4485_v43  ;;  %v522_v48 = vadd.f32 %v4449_v45, %v447_v33  ;;  %v639_v49 = vsel %vm638_vm0, %v5823_v44, 0.0  ;;  %s4189_s24 = sld [smem:[%s6345_s0 + %s5640_s19]]   ;;  %s5647_s19 = smov 29  }
 0x126   :  { %640 = vadd.xlane.f32.xlu0 %v639_v49 }
 0x127   :  { %v5827_v50 = vadd.f32 %v4487_v47, %v522_v48 }
 0x129   :  { %v642_v51 = vsel %vm638_vm0, %v5827_v50, 0.0 }
 0x12a   :  { %643 = vadd.xlane.f32.xlu0 %v642_v51 }
 0x1b3   :  { %v641_v52 = vpop.xlane.xlu0 %640 }
 0x1b4   :  { %v646_v53 = vmul.f32 0.03125, %v641_v52 }
 0x1b6   :  { %v648_v54 = vsub.f32 %v5823_v44, %v646_v53 }
 0x1b7   :  { %v644_v55 = vpop.xlane.xlu0 %643 }
 0x1b8   :  { %v647_v56 = vmul.f32 0.03125, %v644_v55  ;;  %v650_v57 = vmul.f32 %v648_v54, %v648_v54 }
 0x1ba   :  { %v649_v58 = vsub.f32 %v5827_v50, %v647_v56  ;;  %v652_v59 = vsel %vm638_vm0, %v650_v57, 0.0 }
 0x1bb   :  { %653 = vadd.xlane.f32.xlu1 %v652_v59 }
 0x1bc   :  { %v651_v60 = vmul.f32 %v649_v58, %v649_v58 }
 0x1be   :  { %v655_v61 = vsel %vm638_vm0, %v651_v60, 0.0 }
 0x1bf   :  { %656 = vadd.xlane.f32.xlu1 %v655_v61 }
 0x248   :  { %v654_v4 = vpop.xlane.xlu1 %653 }
 0x249   :  { %v658_v5 = vmul.f32 0.03125, %v654_v4 }
 0x24b   :  { %v660_v6 = vadd.f32 1e-06, %v658_v5 }
 0x24c   :  { %v657_v7 = vpop.xlane.xlu1 %656 }
 0x24d   :  { %5516 = vrsqrt.f32 %v660_v6  ;;  %v659_v8 = vmul.f32 0.03125, %v657_v7 }
 0x24f   :  { %v661_v9 = vadd.f32 1e-06, %v659_v8 }
 0x251   :  { %5518 = vrsqrt.f32 %v661_v9 }
 0x257   :  { %v5517_v10 = vpop.eup %5516 }
 0x258   :  { %v664_v12 = vmul.f32 %v5517_v10, %v648_v54 }
 0x25a   :  { %v672_v14 = vmul.f32 %v4204_v11, %v664_v12 }
 0x25b   :  { %v5519_v15 = vpop.eup %5518 }
 0x25c   :  { %v665_v16 = vmul.f32 %v5519_v15, %v649_v58  ;;  %v680_v17 = vadd.f32 %v4205_v13, %v672_v14 }
 0x25e   :  { %v673_v18 = vmul.f32 %v4204_v11, %v665_v16  ;;  %4682 = vmatprep.mubr.msk.f32.mxu0 %vm638_vm0, %v680_v17 }
 0x260   :  { %v681_v19 = vadd.f32 %v4205_v13, %v673_v18 }
 0x262   :  { %4683 = vmatmul.mubr.msk.f32.vlgmr.msra.gmra.mrb[8].mxu0 %vm638_vm0, %v681_v19 }
 0x335   :  { %v4684_v21 = vpop.f32.mrb[8].mxu0 }
 0x336   :  { %v766_v22 = vadd.f32 %v4684_v21, %v4206_v20  ;;  %v760_v23 = vpop.f32.mrb[9].mxu0 }
 0x337   :  { %v761_v24 = vadd.f32 %v4206_v20, %v760_v23 }
 0x339   :  { %4689 = vmatprep.mubr.msk.f32.mxu1 %vm775_vm1, %v761_v24  ;;  %v5866_v25 = vpack.i.bf16 %v766_v22, %v761_v24 }
 0x33b   :  { %5462 = vrot.lane.b32.xlu1 %v5866_v25, %s5622_s30  ;;  %5457 = vrot.lane.b32.xlu0 %v5866_v25, %s5623_s1 }
 0x33f   :  { %972 = vrot.lane.b32.xlu1 %v761_v24, %s5624_s2 }
 0x343   :  { %974 = vrot.lane.b32.xlu1 %v766_v22, %s5624_s2 }
 0x3ad   :  { %v5463_v26 = vpop.permute.xlu1 %5462  ;;  %v5458_v27 = vpop.permute.xlu0 %5457 }
 0x3ae   :  { %v5465_v28 = vunpack.i.h.bf16 %v5463_v26  ;;  %v5464_v29 = vunpack.i.l.bf16 %v5463_v26  ;;  %v5460_v30 = vunpack.i.h.bf16 %v5458_v27  ;;  %v5459_v31 = vunpack.i.l.bf16 %v5458_v27 }
 0x3b0   :  { %v5161_v33 = vpack.c.bf16 %v5460_v30, %v5459_v31  ;;  %v5171_v34 = vpack.c.bf16 %v5465_v28, %v5464_v29 }
 0x3b1   :  { %v973_v35 = vpop.permute.xlu1 %972 }
 0x3b2   :  { %5163 = vmatprep.subr.msk.bf16.mxu1 %vm5876_vm2, %v5161_v33 }
 0x3b3   :  { %5166 = vmatpush3.bf16.xpose.msk.msra.mxu1 %vm5876_vm2, %v5161_v33 }
 0x3b4   :  { %5173 = vmatprep.subr.msk.bf16.mxu1 %vm5876_vm2, %v5171_v34 }
 0x3b5   :  { %v975_v36 = vpop.permute.xlu1 %974 }
 0x3ba   :  { %4690 = vmatmul.mubr.msk.f32.vlgmr.msra.gmra.mrb[8].mxu1 %vm775_vm1, %v766_v22 }
 0x3bb   :  { %5176 = vmatpush3.bf16.xpose.msk.msra.mxu1 %vm5876_vm2, %v5171_v34  ;;  %4703 = vmatprep.mubr.msk.f32.mxu1 %vm775_vm1, %v973_v35  ;;  %v611_v34 = vld [vmem:[%s5922_s12 + $0x10] sm:$0xff]  ;;  %v612_v35 = vld [vmem:[%s5922_s12 + $0x18] sm:$0xff] }
 0x3c2   :  { %4704 = vmatmul.mubr.msk.f32.vlgmr.msra.gmra.mrb[10].mxu1 %vm775_vm1, %v975_v36  ;;  %v5181_v36 = vpack.c.bf16 %v612_v35, %v611_v34  ;;  %v628_v34 = vld [vmem:[%s5978_s14 + $0x38] sm:$0xff] }
 0x48d   :  { %v4691_v37 = vpop.f32.mrb[8].mxu1 }
 0x48e   :  { %v860_v39 = vmul.f32 0.25, %v4691_v37  ;;  %v850_v40 = vpop.f32.mrb[9].mxu1  ;;  %v609_v37 = vld [vmem:[%s5922_s12] sm:$0xff] }
 0x48f   :  { %v859_v42 = vmul.f32 0.25, %v850_v40 }
 0x490   :  { %v862_v43 = vadd.f32 %v860_v39, %v5894_v38  ;;  %v610_v39 = vld [vmem:[%s5922_s12 + $0x8] sm:$0xff] }
 0x491   :  { %v861_v45 = vadd.f32 %v859_v42, %v5896_v41  ;;  %v5185_v40 = vpack.c.bf16 %v610_v39, %v609_v37  ;;  %v630_v37 = vld [vmem:[%s5978_s14 + $0x48] sm:$0xff]  ;;  %v631_v39 = vld [vmem:[%s5978_s14 + $0x50] sm:$0xff] }
 0x492   :  { %v866_v46 = vsel %vm775_vm1, %v862_v43, -inf }
 0x493   :  { %867 = vmax.xlane.f32.xlu1 %v866_v46  ;;  %v863_v47 = vsel %vm775_vm1, %v861_v45, -inf }
 0x494   :  { %864 = vmax.xlane.f32.xlu0 %v863_v47  ;;  %v4225_v47 = vld [vmem:[%s5935_s16] ss:$0 sm:$0xff] }
 0x495   :  { %v4705_v48 = vpop.f32.mrb[10].mxu1 }
 0x496   :  { %v1054_v49 = vpop.f32.mrb[11].mxu1  ;;  %v1064_v51 = vmul.f32 0.25, %v4705_v48 }
 0x497   :  { %v1063_v52 = vmul.f32 0.25, %v1054_v49 }
 0x498   :  { %v1066_v55 = vadd.f32 %v1064_v51, %v5894_v38 }
 0x499   :  { %v1065_v53 = vadd.f32 %v1063_v52, %v5896_v41 }
 0x49a   :  { %v1070_v56 = vsel %vm775_vm1, %v1066_v55, -inf }
 0x49b   :  { %v1067_v54 = vsel %vm775_vm1, %v1065_v53, -inf }
 0x49c   :  { %1068 = vmax.xlane.f32.xlu0 %v1067_v54 }
 0x4a0   :  { %1071 = vmax.xlane.f32.xlu0 %v1070_v56 }
 0x520   :  { %v868_v57 = vpop.xlane.xlu1 %867 }
 0x521   :  { %v870_v58 = vsub.f32 %v862_v43, %v868_v57  ;;  %v865_v59 = vpop.xlane.xlu0 %864 }
 0x522   :  { %v869_v60 = vsub.f32 %v861_v45, %v865_v59 }
 0x523   :  { %v873_v61 = vmul.f32 1.442695, %v870_v58 }
 0x524   :  { %v871_v62 = vmul.f32 1.442695, %v869_v60 }
 0x525   :  { %5520 = vpow2.f32 %v873_v61 }
 0x526   :  { %5522 = vpow2.f32 %v871_v62 }
 0x529   :  { %v1069_v63 = vpop.xlane.xlu0 %1068 }
 0x52a   :  { %v1073_v0 = vsub.f32 %v1065_v53, %v1069_v63 }
 0x52c   :  { %v1075_v1 = vmul.f32 1.442695, %v1073_v0 }
 0x52d   :  { %v1072_v2 = vpop.xlane.xlu0 %1071 }
 0x52e   :  { %5524 = vpow2.f32 %v1075_v1  ;;  %v1074_v3 = vsub.f32 %v1066_v55, %v1072_v2  ;;  %v616_v1 = vld [vmem:[%s5955_s23] sm:$0xff]  ;;  %v617_v2 = vld [vmem:[%s5955_s23 + $0x8] sm:$0xff] }
 0x52f   :  { %v5521_v4 = vpop.eup %5520 }
 0x530   :  { %v5523_v5 = vpop.eup %5522  ;;  %v1077_v6 = vmul.f32 1.442695, %v1074_v3  ;;  %v878_v7 = vsel %vm775_vm1, %v5521_v4, 0.0  ;;  %v5189_v3 = vpack.c.bf16 %v617_v2, %v616_v1 }
 0x531   :  { %879 = vadd.xlane.f32.xlu1 %v878_v7  ;;  %v875_v8 = vsel %vm775_vm1, %v5523_v5, 0.0 }
 0x532   :  { %5526 = vpow2.f32 %v1077_v6  ;;  %876 = vadd.xlane.f32.xlu0 %v875_v8  ;;  %5190 = vmatprep.subr.bf16.mxu1 %v5189_v3 }
 0x533   :  { %5192 = vmatpush3.bf16.msra.mxu1 %v5189_v3 }
 0x538   :  { %v5525_v9 = vpop.eup %5524 }
 0x539   :  { %v1079_v10 = vsel %vm775_vm1, %v5525_v9, 0.0 }
 0x53a   :  { %1080 = vadd.xlane.f32.xlu0 %v1079_v10 }
 0x53c   :  { %v5527_v11 = vpop.eup %5526 }
 0x53d   :  { %v1082_v12 = vsel %vm775_vm1, %v5527_v11, 0.0 }
 0x53e   :  { %1083 = vadd.xlane.f32.xlu1 %v1082_v12 }
 0x54f   :  { %5472 = vrot.lane.b32.xlu1 %v5866_v25, %s5626_s7 }
 0x550   :  { %5467 = vrot.lane.b32.xlu0 %v5866_v25, %s5627_s8 }
 0x5be   :  { %v880_v14 = vpop.xlane.xlu1 %879 }
 0x5bf   :  { %v877_v13 = vpop.xlane.xlu0 %876 }
 0x5c0   :  { %5528 = vrcp.f32 %v877_v13 }
 0x5c1   :  { %5530 = vrcp.f32 %v880_v14  ;;  %v4226_v14 = vld [vmem:[%s5964_s28] ss:$0 sm:$0xff] }
 0x5c7   :  { %v1081_v15 = vpop.xlane.xlu0 %1080 }
 0x5c8   :  { %5532 = vrcp.f32 %v1081_v15 }
 0x5ca   :  { %v5529_v16 = vpop.eup %5528 }
 0x5cb   :  { %v1084_v17 = vpop.xlane.xlu1 %1083  ;;  %v5468_v18 = vpop.permute.xlu0 %5467  ;;  %v882_v19 = vmul.f32 %v5529_v16, %v5523_v5  ;;  %v619_v5 = vld [vmem:[%s5955_s23 + $0x18] sm:$0xff] }
 0x5cc   :  { %5534 = vrcp.f32 %v1084_v17  ;;  %v5470_v20 = vunpack.i.h.bf16 %v5468_v18  ;;  %v5469_v21 = vunpack.i.l.bf16 %v5468_v18  ;;  %v5531_v23 = vpop.eup %5530  ;;  %v4227_v18 = vld [vmem:[%s5969_s6] ss:$0 sm:$0xff] }
 0x5cd   :  { %4696 = vmatprep.mubr.msk.f32.mxu0 %vm775_vm1, %v882_v19  ;;  %v884_v28 = vmul.f32 %v5531_v23, %v5521_v4  ;;  %v618_v4 = vld [vmem:[%s5955_s23 + $0x10] sm:$0xff]  ;;  %v621_v23 = vld [vmem:[%s5978_s14] sm:$0xff] }
 0x5ce   :  { %v5167_v22 = vpack.c.bf16 %v5470_v20, %v5469_v21  ;;  %v5193_v6 = vpack.c.bf16 %v619_v5, %v618_v4 }
 0x5cf   :  { %v5473_v24 = vpop.permute.xlu1 %5472 }
 0x5d0   :  { %v5475_v26 = vunpack.i.h.bf16 %v5473_v24  ;;  %v5474_v25 = vunpack.i.l.bf16 %v5473_v24  ;;  %5168 = vmatprep.subr.bf16.mxu0 %v5167_v22  ;;  %5194 = vmatprep.subr.bf16.mxu1 %v5193_v6  ;;  %v622_v24 = vld [vmem:[%s5978_s14 + $0x8] sm:$0xff] }
 0x5d1   :  { %5170 = vmatpush3.bf16.msra.mxu0 %v5167_v22  ;;  %5196 = vmatpush3.bf16.msra.mxu1 %v5193_v6 }
 0x5d2   :  { %v5533_v27 = vpop.eup %5532  ;;  %v5177_v29 = vpack.c.bf16 %v5475_v26, %v5474_v25  ;;  %v5197_v26 = vpack.c.bf16 %v622_v24, %v621_v23  ;;  %v623_v25 = vld [vmem:[%s5978_s14 + $0x10] sm:$0xff] }
 0x5d3   :  { %v1086_v30 = vmul.f32 %v5533_v27, %v5525_v9  ;;  %v624_v27 = vld [vmem:[%s5978_s14 + $0x18] sm:$0xff] }
 0x5d4   :  { %4697 = vmatmul.mubr.msk.f32.vlgmr.msra.gmra.mrb[10].mxu0 %vm775_vm1, %v884_v28  ;;  %5178 = vmatprep.subr.bf16.mxu0 %v5177_v29  ;;  %v5201_v28 = vpack.c.bf16 %v624_v27, %v623_v25 }
 0x5d5   :  { %5180 = vmatpush3.bf16.msra.mxu0 %v5177_v29  ;;  %4710 = vmatprep.mubr.msk.f32.mxu0 %vm775_vm1, %v1086_v30  ;;  %v625_v29 = vld [vmem:[%s5978_s14 + $0x20] sm:$0xff]  ;;  %v626_v30 = vld [vmem:[%s5978_s14 + $0x28] sm:$0xff] }
 0x5d6   :  { %v5535_v31 = vpop.eup %5534  ;;  %5182 = vmatprep.subr.bf16.mxu0 %v5181_v36 }
 0x5d7   :  { %v1088_v33 = vmul.f32 %v5535_v31, %v5527_v11  ;;  %v5205_v31 = vpack.c.bf16 %v626_v30, %v625_v29  ;;  %v4235_v29 = vld [vmem:[%s5838_s17 + $0x28] sm:$0xff] }
 0x5d9   :  { %4711 = vmatmul.mubr.msk.f32.vlgmr.msra.gmra.mrb[12].mxu0 %vm775_vm1, %v1088_v33  ;;  %v627_v33 = vld [vmem:[%s5978_s14 + $0x30] sm:$0xff] }
 0x5da   :  { %5184 = vmatpush3.bf16.msra.mxu0 %v5181_v36  ;;  %v5209_v35 = vpack.c.bf16 %v628_v34, %v627_v33  ;;  %v629_v36 = vld [vmem:[%s5978_s14 + $0x40] sm:$0xff]  ;;  %v4237_v33 = vld [vmem:[%s5838_s17 + $0x38] sm:$0xff] }
 0x5db   :  { %5186 = vmatprep.subr.bf16.mxu0 %v5185_v40 }
 0x6a7   :  { %v4698_v42 = vpop.f32.mrb[10].mxu0 }
 0x6a8   :  { %v963_v43 = vpop.f32.mrb[11].mxu0 }
 0x6ac   :  { %v4712_v45 = vpop.f32.mrb[12].mxu0 }
 0x6ad   :  { %v1167_v46 = vpop.f32.mrb[13].mxu0 }
 0x6ae   :  { %4717 = vmatprep.mubr.msk.f32.mxu0 %vm775_vm1, %v1167_v46  ;;  %v634_v46 = vld [vmem:[%s5978_s14 + $0x68] sm:$0xff] }
 0x6af   :  { %4718 = vmatmul.mubr.msk.f32.vlgmr.msra.gmra.mrb[14].mxu0 %vm775_vm1, %v4712_v45  ;;  %v633_v45 = vld [vmem:[%s5978_s14 + $0x60] sm:$0xff] }
 0x6b0   :  { %5188 = vmatpush3.bf16.msra.mxu0 %v5185_v40  ;;  %4724 = vmatprep.mubr.msk.f32.mxu0 %vm775_vm1, %v963_v43  ;;  %v5213_v40 = vpack.c.bf16 %v630_v37, %v629_v36 }
 0x6b1   :  { %5198 = vmatprep.subr.bf16.mxu0 %v5197_v26 }
 0x6b7   :  { %4725 = vmatmul.mubr.msk.f32.vlgmr.msra.gmra.mrb[14].mxu0 %vm775_vm1, %v4698_v42  ;;  %v632_v42 = vld [vmem:[%s5978_s14 + $0x58] sm:$0xff] }
 0x6b8   :  { %5200 = vmatpush3.bf16.msra.mxu0 %v5197_v26  ;;  %v5217_v43 = vpack.c.bf16 %v632_v42, %v631_v39 }
 0x6b9   :  { %5202 = vmatprep.subr.bf16.mxu0 %v5201_v28 }
 0x6bc   :  { %5204 = vmatpush3.bf16.msra.mxu0 %v5201_v28  ;;  %v4234_v28 = vld [vmem:[%s5838_s17 + $0x20] sm:$0xff] }
 0x6bd   :  { %5206 = vmatprep.subr.bf16.mxu0 %v5205_v31  ;;  %v5229_v30 = vpack.c.bf16 %v4235_v29, %v4234_v28 }
 0x6bf   :  { %5230 = vmatprep.subr.bf16.mxu1 %v5229_v30 }
 0x6c0   :  { %5208 = vmatpush3.bf16.msra.mxu0 %v5205_v31  ;;  %v4236_v31 = vld [vmem:[%s5838_s17 + $0x30] sm:$0xff]  ;;  %s5636_s17 = smov 16  }
 0x6c1   :  { %5210 = vmatprep.subr.bf16.mxu0 %v5209_v35  ;;  %v5233_v34 = vpack.c.bf16 %v4237_v33, %v4236_v31 }
 0x6c4   :  { %5212 = vmatpush3.bf16.msra.mxu0 %v5209_v35 }
 0x6c5   :  { %5214 = vmatprep.subr.bf16.mxu0 %v5213_v40 }
 0x6c8   :  { %5216 = vmatpush3.bf16.msra.mxu0 %v5213_v40 }
 0x6c9   :  { %5218 = vmatprep.subr.bf16.mxu0 %v5217_v43 }
 0x6cc   :  { %5220 = vmatpush3.bf16.msra.mxu0 %v5217_v43 }
 0x78a   :  { %v4726_v48 = vpop.f32.mrb[14].mxu0 }
 0x78b   :  { %v1339_v49 = vadd.f32 %v4726_v48, %v5827_v50  ;;  %v1329_v51 = vpop.f32.mrb[15].mxu0  ;;  %v635_v48 = vld [vmem:[%s5978_s14 + $0x70] sm:$0xff] }
 0x78c   :  { %v1338_v52 = vadd.f32 %v1329_v51, %v5823_v44 }
 0x78d   :  { %v5940_v53 = vadd.f32 %v4225_v47, %v1339_v49  ;;  %v636_v49 = vld [vmem:[%s5978_s14 + $0x78] sm:$0xff] }
 0x78e   :  { %v5942_v54 = vadd.f32 %v4225_v47, %v1338_v52  ;;  %v5221_v47 = vpack.c.bf16 %v634_v46, %v633_v45  ;;  %v5225_v51 = vpack.c.bf16 %v636_v49, %v635_v48  ;;  %v4228_v52 = vld [vmem:[%s5999_s22] ss:$0 sm:$0xff]  ;;  %v4268_v45 = vld [vmem:[%s5848_s21 + $0x1] ss:$0 sm:$0xff]  ;;  %s5642_s21 = smov 22  }
 0x78f   :  { %v1351_v55 = vsel %vm638_vm0, %v5940_v53, 0.0  ;;  %v4269_v49 = vld [vmem:[%s5853_s25 + $0x1] ss:$0 sm:$0xff] }
 0x790   :  { %1352 = vadd.xlane.f32.xlu0 %v1351_v55  ;;  %v1348_v56 = vsel %vm638_vm0, %v5942_v54, 0.0  ;;  %5222 = vmatprep.subr.bf16.mxu0 %v5221_v47 }
 0x791   :  { %1349 = vadd.xlane.f32.xlu1 %v1348_v56  ;;  %5224 = vmatpush3.bf16.msra.mxu0 %v5221_v47 }
 0x792   :  { %5226 = vmatprep.subr.bf16.mxu0 %v5225_v51 }
 0x795   :  { %5228 = vmatpush3.bf16.msra.mxu0 %v5225_v51 }
 0x81d   :  { %v1353_v57 = vpop.xlane.xlu0 %1352 }
 0x81e   :  { %v1355_v58 = vmul.f32 0.03125, %v1353_v57  ;;  %v1350_v59 = vpop.xlane.xlu1 %1349 }
 0x81f   :  { %v1354_v60 = vmul.f32 0.03125, %v1350_v59 }
 0x820   :  { %v1357_v50 = vsub.f32 %v5940_v53, %v1355_v58 }
 0x821   :  { %v1356_v44 = vsub.f32 %v5942_v54, %v1354_v60 }
 0x822   :  { %v1359_v61 = vmul.f32 %v1357_v50, %v1357_v50 }
 0x823   :  { %v1358_v62 = vmul.f32 %v1356_v44, %v1356_v44 }
 0x824   :  { %v1363_v63 = vsel %vm638_vm0, %v1359_v61, 0.0 }
 0x825   :  { %1364 = vadd.xlane.f32.xlu1 %v1363_v63  ;;  %v1360_v0 = vsel %vm638_vm0, %v1358_v62, 0.0 }
 0x826   :  { %1361 = vadd.xlane.f32.xlu0 %v1360_v0 }
 0x8b2   :  { %v1365_v7 = vpop.xlane.xlu1 %1364 }
 0x8b3   :  { %v1367_v8 = vmul.f32 0.03125, %v1365_v7  ;;  %v1362_v9 = vpop.xlane.xlu0 %1361 }
 0x8b4   :  { %v1366_v10 = vmul.f32 0.03125, %v1362_v9 }
 0x8b5   :  { %v1369_v11 = vadd.f32 1e-06, %v1367_v8 }
 0x8b6   :  { %v1368_v12 = vadd.f32 1e-06, %v1366_v10 }
 0x8b7   :  { %5536 = vrsqrt.f32 %v1369_v11  ;;  %v4231_v11 = vld [vmem:[%s6005_s3] ss:$0 sm:$0xff] }
 0x8b8   :  { %5538 = vrsqrt.f32 %v1368_v12 }
 0x8c1   :  { %v5537_v13 = vpop.eup %5536 }
 0x8c2   :  { %v5539_v15 = vpop.eup %5538  ;;  %v1373_v16 = vmul.f32 %v5537_v13, %v1357_v50 }
 0x8c3   :  { %v1372_v17 = vmul.f32 %v5539_v15, %v1356_v44 }
 0x8c4   :  { %v1381_v19 = vmul.f32 %v4226_v14, %v1373_v16 }
 0x8c5   :  { %v1380_v20 = vmul.f32 %v4226_v14, %v1372_v17 }
 0x8c6   :  { %v1389_v22 = vadd.f32 %v4227_v18, %v1381_v19 }
 0x8c7   :  { %v1388_v21 = vadd.f32 %v4227_v18, %v1380_v20 }
 0x8c9   :  { %4735 = vmatprep.mubr.msk.f32.mxu1 %vm638_vm0, %v1388_v21 }
 0x8ca   :  { %4736 = vmatmul.mubr.msk.f32.vlgmr.msra.gmra.mrb[12].mxu1 %vm638_vm0, %v1389_v22 }
 0x8cb   :  { %5232 = vmatpush3.bf16.msra.mxu1 %v5229_v30 }
 0x8cc   :  { %5234 = vmatprep.subr.bf16.mxu1 %v5233_v34 }
 0x8cf   :  { %5236 = vmatpush3.bf16.msra.mxu1 %v5233_v34 }
 0x99d   :  { %v4737_v55 = vpop.f32.mrb[12].mxu1 }
 0x99e   :  { %v1474_v56 = vadd.f32 %v4737_v55, %v4228_v52  ;;  %v1468_v57 = vpop.f32.mrb[13].mxu1 }
 0x99f   :  { %v1469_v58 = vadd.f32 %v4228_v52, %v1468_v57  ;;  %v4270_v57 = vld [vmem:[%s5862_s29 + $0x1] ss:$0 sm:$0xff]  ;;  %s4182_s29 = sld [smem:[%s6345_s0 + %s5636_s17]]  }
 0x9a0   :  { %v1478_v59 = vmul.f32 %v1474_v56, %v1474_v56  ;;  %s4187_s17 = sld [smem:[%s6345_s0 + %s5641_s26]]   ;;  %s5648_s26 = smov 27  }
 0x9a1   :  { %v1477_v60 = vmul.f32 %v1469_v58, %v1469_v58 }
 0x9a2   :  { %v1480_v50 = vmul.f32 %v1478_v59, %v1474_v56 }
 0x9a3   :  { %v1479_v44 = vmul.f32 %v1477_v60, %v1469_v58 }
 0x9a4   :  { %v1482_v61 = vmul.f32 0.044715, %v1480_v50 }
 0x9a5   :  { %v1481_v62 = vmul.f32 0.044715, %v1479_v44 }
 0x9a6   :  { %v1484_v63 = vadd.f32 %v1482_v61, %v1474_v56 }
 0x9a7   :  { %v1483_v0 = vadd.f32 %v1481_v62, %v1469_v58 }
 0x9a8   :  { %v1486_v1 = vmul.f32 0.7978846, %v1484_v63 }
 0x9a9   :  { %v1485_v2 = vmul.f32 0.7978846, %v1483_v0 }
 0x9aa   :  { %5540 = vtanh.f32 %v1486_v1 }
 0x9ab   :  { %5542 = vtanh.f32 %v1485_v2 }
 0x9b4   :  { %v5541_v3 = vpop.eup %5540 }
 0x9b5   :  { %v5543_v4 = vpop.eup %5542  ;;  %v1490_v5 = vadd.f32 1.0, %v5541_v3 }
 0x9b6   :  { %v1489_v6 = vadd.f32 1.0, %v5543_v4 }
 0x9b7   :  { %v1492_v7 = vmul.f32 0.5, %v1490_v5 }
 0x9b8   :  { %v1491_v8 = vmul.f32 0.5, %v1489_v6 }
 0x9b9   :  { %v1494_v10 = vmul.f32 %v1492_v7, %v1474_v56 }
 0x9ba   :  { %v1493_v9 = vmul.f32 %v1491_v8, %v1469_v58 }
 0x9bc   :  { %4770 = vmatprep.mubr.f32.mxu0 %v1493_v9 }
 0x9bd   :  { %4771 = vmatmul.mubr.f32.vlgmr.msra.gmra.mrb[16].mxu0 %v1494_v10 }
 0xa90   :  { %v4772_v12 = vpop.f32.mrb[16].mxu0 }
 0xa91   :  { %v1571_v13 = vadd.f32 %v4772_v12, %v5940_v53  ;;  %v1561_v14 = vpop.f32.mrb[17].mxu0 }
 0xa92   :  { %v1570_v15 = vadd.f32 %v1561_v14, %v5942_v54 }
 0xa93   :  { %v6010_v16 = vadd.f32 %v4231_v11, %v1571_v13 }
 0xa94   :  { %v6012_v17 = vadd.f32 %v4231_v11, %v1570_v15 }
 0xa95   :  { %v1631_v18 = vsel %vm638_vm0, %v6010_v16, 0.0 }
 0xa96   :  { %1632 = vadd.xlane.f32.xlu1 %v1631_v18  ;;  %v1628_v19 = vsel %vm638_vm0, %v6012_v17, 0.0 }
 0xa97   :  { %1629 = vadd.xlane.f32.xlu0 %v1628_v19 }
 0xb23   :  { %v1633_v20 = vpop.xlane.xlu1 %1632 }
 0xb24   :  { %v1635_v53 = vmul.f32 0.03125, %v1633_v20  ;;  %v1630_v21 = vpop.xlane.xlu0 %1629 }
 0xb25   :  { %v1634_v54 = vmul.f32 0.03125, %v1630_v21 }
 0xb26   :  { %v1637_v22 = vsub.f32 %v6010_v16, %v1635_v53 }
 0xb27   :  { %v1636_v23 = vsub.f32 %v6012_v17, %v1634_v54 }
 0xb28   :  { %v1639_v24 = vmul.f32 %v1637_v22, %v1637_v22 }
 0xb29   :  { %v1638_v26 = vmul.f32 %v1636_v23, %v1636_v23 }
 0xb2a   :  { %v1643_v25 = vsel %vm638_vm0, %v1639_v24, 0.0 }
 0xb2b   :  { %1644 = vadd.xlane.f32.xlu1 %v1643_v25  ;;  %v1640_v27 = vsel %vm638_vm0, %v1638_v26, 0.0 }
 0xb2c   :  { %1641 = vadd.xlane.f32.xlu0 %v1640_v27 }
 0xbb8   :  { %v1645_v35 = vpop.xlane.xlu1 %1644 }
 0xbb9   :  { %v1647_v36 = vmul.f32 0.03125, %v1645_v35  ;;  %v1642_v37 = vpop.xlane.xlu0 %1641 }
 0xbba   :  { %v1646_v39 = vmul.f32 0.03125, %v1642_v37 }
 0xbbb   :  { %v1649_v40 = vadd.f32 1e-06, %v1647_v36 }
 0xbbc   :  { %v1648_v42 = vadd.f32 1e-06, %v1646_v39 }
 0xbbd   :  { %5544 = vrsqrt.f32 %v1649_v40 }
 0xbbe   :  { %5546 = vrsqrt.f32 %v1648_v42 }
 0xbc7   :  { %v5545_v43 = vpop.eup %5544 }
 0xbc8   :  { %v5547_v46 = vpop.eup %5546  ;;  %v1653_v47 = vmul.f32 %v5545_v43, %v1637_v22 }
 0xbc9   :  { %v1652_v48 = vmul.f32 %v5547_v46, %v1636_v23 }
 0xbca   :  { %v1661_v51 = vmul.f32 %v4268_v45, %v1653_v47 }
 0xbcb   :  { %v1660_v52 = vmul.f32 %v4268_v45, %v1652_v48 }
 0xbcc   :  { %v1669_v56 = vadd.f32 %v4269_v49, %v1661_v51 }
 0xbcd   :  { %v1668_v55 = vadd.f32 %v4269_v49, %v1660_v52 }
 0xbcf   :  { %4781 = vmatprep.mubr.msk.f32.mxu1 %vm638_vm0, %v1668_v55 }
 0xbd0   :  { %4782 = vmatmul.mubr.msk.f32.vlgmr.msra.gmra.mrb[14].mxu1 %vm638_vm0, %v1669_v56 }
 0xca3   :  { %v4783_v58 = vpop.f32.mrb[14].mxu1 }
 0xca4   :  { %v1754_v59 = vadd.f32 %v4783_v58, %v4270_v57  ;;  %v1748_v60 = vpop.f32.mrb[15].mxu1 }
 0xca5   :  { %v1749_v50 = vadd.f32 %v4270_v57, %v1748_v60 }
 0xca7   :  { %4788 = vmatprep.mubr.msk.f32.mxu1 %vm775_vm1, %v1749_v50  ;;  %v6032_v44 = vpack.i.bf16 %v1754_v59, %v1749_v50 }
 0xca9   :  { %5477 = vrot.lane.b32.xlu0 %v6032_v44, %s5623_s1 }
 0xcad   :  { %5487 = vrot.lane.b32.xlu0 %v6032_v44, %s5622_s30 }
 0xcb1   :  { %1959 = vrot.lane.b32.xlu0 %v1749_v50, %s5624_s2 }
 0xcb5   :  { %1961 = vrot.lane.b32.xlu0 %v1754_v59, %s5624_s2 }
 0xd1b   :  { %v5478_v61 = vpop.permute.xlu0 %5477 }
 0xd1c   :  { %v5480_v62 = vunpack.i.h.bf16 %v5478_v61  ;;  %v5479_v63 = vunpack.i.l.bf16 %v5478_v61 }
 0xd1e   :  { %v5237_v0 = vpack.c.bf16 %v5480_v62, %v5479_v63  ;;  %v4241_v62 = vld [vmem:[%s5922_s12 + $0x30] sm:$0xff]  ;;  %v4242_v63 = vld [vmem:[%s5922_s12 + $0x38] sm:$0xff] }
 0xd1f   :  { %v5488_v54 = vpop.permute.xlu0 %5487 }
 0xd20   :  { %5239 = vmatprep.subr.msk.bf16.mxu1 %vm5876_vm2, %v5237_v0  ;;  %v5490_v23 = vunpack.i.h.bf16 %v5488_v54  ;;  %v5489_v24 = vunpack.i.l.bf16 %v5488_v54 }
 0xd21   :  { %5242 = vmatpush3.bf16.xpose.msk.msra.mxu1 %vm5876_vm2, %v5237_v0  ;;  %v5257_v0 = vpack.c.bf16 %v4242_v63, %v4241_v62  ;;  %v4257_v63 = vld [vmem:[%s5978_s14 + $0xb0] sm:$0xff] }
 0xd22   :  { %v5247_v28 = vpack.c.bf16 %v5490_v23, %v5489_v24 }
 0xd23   :  { %v1960_v34 = vpop.permute.xlu0 %1959  ;;  %5258 = vmatprep.subr.bf16.mxu0 %v5257_v0 }
 0xd24   :  { %5260 = vmatpush3.bf16.msra.mxu0 %v5257_v0  ;;  %v4258_v0 = vld [vmem:[%s5978_s14 + $0xb8] sm:$0xff] }
 0xd27   :  { %v1962_v35 = vpop.permute.xlu0 %1961 }
 0xd28   :  { %4789 = vmatmul.mubr.msk.f32.vlgmr.msra.gmra.mrb[16].mxu1 %vm775_vm1, %v1754_v59 }
 0xdfb   :  { %v4790_v1 = vpop.f32.mrb[16].mxu1 }
 0xdfc   :  { %v1837_v2 = vpop.f32.mrb[17].mxu1  ;;  %v1847_v3 = vmul.f32 0.25, %v4790_v1 }
 0xdfd   :  { %v1846_v4 = vmul.f32 0.25, %v1837_v2 }
 0xdfe   :  { %v1849_v7 = vadd.f32 %v1847_v3, %v5894_v38 }
 0xdff   :  { %v1848_v5 = vadd.f32 %v1846_v4, %v5896_v41 }
 0xe00   :  { %v1853_v8 = vsel %vm775_vm1, %v1849_v7, -inf }
 0xe01   :  { %v1850_v6 = vsel %vm775_vm1, %v1848_v5, -inf }
 0xe02   :  { %1851 = vmax.xlane.f32.xlu1 %v1850_v6 }
 0xe06   :  { %1854 = vmax.xlane.f32.xlu1 %v1853_v8  ;;  %v4240_v8 = vld [vmem:[%s5922_s12 + $0x28] sm:$0xff] }
 0xe8f   :  { %v1852_v9 = vpop.xlane.xlu1 %1851 }
 0xe90   :  { %v1856_v10 = vsub.f32 %v1848_v5, %v1852_v9 }
 0xe92   :  { %v1858_v13 = vmul.f32 1.442695, %v1856_v10 }
 0xe93   :  { %v1855_v11 = vpop.xlane.xlu1 %1854 }
 0xe94   :  { %v1857_v12 = vsub.f32 %v1849_v7, %v1855_v11  ;;  %v4239_v7 = vld [vmem:[%s5922_s12 + $0x20] sm:$0xff]  ;;  %s5637_s12 = smov 17  }
 0xe95   :  { %v5261_v9 = vpack.c.bf16 %v4240_v8, %v4239_v7  ;;  %v4263_v8 = vld [vmem:[%s5978_s14 + $0xe0] sm:$0xff] }
 0xe96   :  { %v1860_v14 = vmul.f32 1.442695, %v1857_v12 }
 0xe97   :  { %5262 = vmatprep.subr.bf16.mxu0 %v5261_v9 }
 0xe98   :  { %5548 = vpow2.f32 %v1860_v14 }
 0xe99   :  { %5550 = vpow2.f32 %v1858_v13  ;;  %v4289_v13 = vld [vmem:[%s5935_s16 + $0x1] ss:$0 sm:$0xff]  ;;  %s5643_s16 = smov 24  }
 0xe9a   :  { %s4190_s4 = sld [smem:[%s6345_s0 + %s5643_s16]]   ;;  %s5650_s16 = smov 31  }
 0xea2   :  { %v5549_v15 = vpop.eup %5548 }
 0xea3   :  { %v1865_v18 = vsel %vm775_vm1, %v5549_v15, 0.0  ;;  %v5551_v19 = vpop.eup %5550 }
 0xea4   :  { %1866 = vadd.xlane.f32.xlu1 %v1865_v18  ;;  %v1862_v20 = vsel %vm775_vm1, %v5551_v19, 0.0 }
 0xea8   :  { %1863 = vadd.xlane.f32.xlu1 %v1862_v20 }
 0xeb9   :  { %5482 = vrot.lane.b32.xlu1 %v6032_v44, %s5627_s8 }
 0xf31   :  { %v1867_v53 = vpop.xlane.xlu1 %1866 }
 0xf32   :  { %5552 = vrcp.f32 %v1867_v53 }
 0xf35   :  { %v1864_v21 = vpop.xlane.xlu1 %1863 }
 0xf36   :  { %5554 = vrcp.f32 %v1864_v21 }
 0xf39   :  { %v5483_v22 = vpop.permute.xlu1 %5482 }
 0xf3a   :  { %v5485_v26 = vunpack.i.h.bf16 %v5483_v22  ;;  %v5484_v25 = vunpack.i.l.bf16 %v5483_v22 }
 0xf3c   :  { %v5243_v27 = vpack.c.bf16 %v5485_v26, %v5484_v25  ;;  %v5553_v29 = vpop.eup %5552 }
 0xf3d   :  { %v1871_v33 = vmul.f32 %v5553_v29, %v5549_v15  ;;  %v4246_v29 = vld [vmem:[%s5955_s23 + $0x20] sm:$0xff] }
 0xf3e   :  { %5244 = vmatprep.subr.bf16.mxu1 %v5243_v27 }
 0xf3f   :  { %5246 = vmatpush3.bf16.msra.mxu1 %v5243_v27 }
 0xf40   :  { %v5555_v30 = vpop.eup %5554  ;;  %5249 = vmatprep.subr.msk.bf16.mxu1 %vm5876_vm2, %v5247_v28 }
 0xf41   :  { %v1869_v31 = vmul.f32 %v5555_v30, %v5551_v19  ;;  %v4247_v30 = vld [vmem:[%s5955_s23 + $0x28] sm:$0xff] }
 0xf43   :  { %4795 = vmatprep.mubr.msk.f32.mxu1 %vm775_vm1, %v1869_v31  ;;  %v5265_v31 = vpack.c.bf16 %v4247_v30, %v4246_v29 }
 0xf44   :  { %4796 = vmatmul.mubr.msk.f32.vlgmr.msra.gmra.mrb[18].mxu1 %vm775_vm1, %v1871_v33  ;;  %v4248_v33 = vld [vmem:[%s5955_s23 + $0x30] sm:$0xff] }
 0xf45   :  { %4802 = vmatprep.mubr.msk.f32.mxu1 %vm775_vm1, %v1960_v34  ;;  %v4249_v34 = vld [vmem:[%s5955_s23 + $0x38] sm:$0xff] }
 0xf48   :  { %5252 = vmatpush3.bf16.xpose.msk.msra.mxu1 %vm5876_vm2, %v5247_v28 }
 0xf4f   :  { %4803 = vmatmul.mubr.msk.f32.vlgmr.msra.gmra.mrb[20].mxu1 %vm775_vm1, %v1962_v35  ;;  %v5269_v35 = vpack.c.bf16 %v4249_v34, %v4248_v33 }
0x1017   :  { %v4797_v36 = vpop.f32.mrb[18].mxu1 }
0x1018   :  { %v1950_v37 = vpop.f32.mrb[19].mxu1 }
0x1022   :  { %v4804_v39 = vpop.f32.mrb[20].mxu1 }
0x1023   :  { %v2051_v40 = vmul.f32 0.25, %v4804_v39  ;;  %v2041_v42 = vpop.f32.mrb[21].mxu1 }
0x1024   :  { %v2050_v43 = vmul.f32 0.25, %v2041_v42 }
0x1025   :  { %v2053_v45 = vadd.f32 %v2051_v40, %v5894_v38 }
0x1026   :  { %v2052_v46 = vadd.f32 %v2050_v43, %v5896_v41 }
0x1027   :  { %v2057_v47 = vsel %vm775_vm1, %v2053_v45, -inf }
0x1028   :  { %2058 = vmax.xlane.f32.xlu0 %v2057_v47  ;;  %v2054_v48 = vsel %vm775_vm1, %v2052_v46, -inf }
0x1029   :  { %2055 = vmax.xlane.f32.xlu1 %v2054_v48  ;;  %v4291_v48 = vld [vmem:[%s5969_s6 + $0x1] ss:$0 sm:$0xff] }
0x103a   :  { %5492 = vrot.lane.b32.xlu1 %v6032_v44, %s5626_s7 }
0x10b5   :  { %v2059_v49 = vpop.xlane.xlu0 %2058 }
0x10b6   :  { %v2061_v51 = vsub.f32 %v2053_v45, %v2059_v49  ;;  %v2056_v52 = vpop.xlane.xlu1 %2055 }
0x10b7   :  { %v2060_v55 = vsub.f32 %v2052_v46, %v2056_v52  ;;  %v4290_v46 = vld [vmem:[%s5964_s28 + $0x1] ss:$0 sm:$0xff]  ;;  %s4183_s28 = sld [smem:[%s6345_s0 + %s5637_s12]]  }
0x10b8   :  { %v2064_v56 = vmul.f32 1.442695, %v2061_v51  ;;  %s4188_s12 = sld [smem:[%s6345_s0 + %s5642_s21]]   ;;  %s5649_s21 = smov 28  }
0x10b9   :  { %v2062_v57 = vmul.f32 1.442695, %v2060_v55 }
0x10ba   :  { %v5493_v38 = vpop.permute.xlu1 %5492 }
0x10bb   :  { %5556 = vpow2.f32 %v2062_v57  ;;  %v5495_v41 = vunpack.i.h.bf16 %v5493_v38  ;;  %v5494_v58 = vunpack.i.l.bf16 %v5493_v38  ;;  %v4251_v38 = vld [vmem:[%s5978_s14 + $0x80] sm:$0xff] }
0x10bc   :  { %5558 = vpow2.f32 %v2064_v56 }
0x10bd   :  { %v5253_v59 = vpack.c.bf16 %v5495_v41, %v5494_v58  ;;  %v4252_v41 = vld [vmem:[%s5978_s14 + $0x88] sm:$0xff] }
0x10be   :  { %v5273_v58 = vpack.c.bf16 %v4252_v41, %v4251_v38 }
0x10bf   :  { %5254 = vmatprep.subr.bf16.mxu1 %v5253_v59 }
0x10c0   :  { %5256 = vmatpush3.bf16.msra.mxu1 %v5253_v59  ;;  %v4253_v59 = vld [vmem:[%s5978_s14 + $0x90] sm:$0xff] }
0x10c1   :  { %5266 = vmatprep.subr.bf16.mxu1 %v5265_v31 }
0x10c5   :  { %v5557_v60 = vpop.eup %5556 }
0x10c6   :  { %v2066_v50 = vsel %vm775_vm1, %v5557_v60, 0.0  ;;  %v5559_v44 = vpop.eup %5558 }
0x10c7   :  { %2067 = vadd.xlane.f32.xlu0 %v2066_v50  ;;  %v2069_v61 = vsel %vm775_vm1, %v5559_v44, 0.0 }
0x10cb   :  { %2070 = vadd.xlane.f32.xlu0 %v2069_v61  ;;  %v4256_v61 = vld [vmem:[%s5978_s14 + $0xa8] sm:$0xff] }
0x1154   :  { %v2068_v1 = vpop.xlane.xlu0 %2067 }
0x1155   :  { %5560 = vrcp.f32 %v2068_v1  ;;  %v5285_v1 = vpack.c.bf16 %v4258_v0, %v4257_v63  ;;  %v4296_v0 = vld [vmem:[%s4182_s29] ss:$0 sm:$0xff] }
0x1158   :  { %v2071_v2 = vpop.xlane.xlu0 %2070 }
0x1159   :  { %5562 = vrcp.f32 %v2071_v2  ;;  %v4259_v2 = vld [vmem:[%s5978_s14 + $0xc0] sm:$0xff] }
0x115f   :  { %v5561_v3 = vpop.eup %5560 }
0x1160   :  { %v2073_v4 = vmul.f32 %v5561_v3, %v5557_v60  ;;  %v4254_v60 = vld [vmem:[%s5978_s14 + $0x98] sm:$0xff]  ;;  %v4260_v3 = vld [vmem:[%s5978_s14 + $0xc8] sm:$0xff] }
0x1161   :  { %v5277_v50 = vpack.c.bf16 %v4254_v60, %v4253_v59 }
0x1162   :  { %4809 = vmatprep.mubr.msk.f32.mxu1 %vm775_vm1, %v2073_v4  ;;  %v4261_v4 = vld [vmem:[%s5978_s14 + $0xd0] sm:$0xff] }
0x1163   :  { %v5563_v5 = vpop.eup %5562 }
0x1164   :  { %v2075_v6 = vmul.f32 %v5563_v5, %v5559_v44  ;;  %v4255_v44 = vld [vmem:[%s5978_s14 + $0xa0] sm:$0xff]  ;;  %v5289_v5 = vpack.c.bf16 %v4260_v3, %v4259_v2 }
0x1165   :  { %v5281_v62 = vpack.c.bf16 %v4256_v61, %v4255_v44  ;;  %v4297_v2 = vld [vmem:[%s4183_s28] ss:$0 sm:$0xff] }
0x1166   :  { %4810 = vmatmul.mubr.msk.f32.vlgmr.msra.gmra.mrb[22].mxu1 %vm775_vm1, %v2075_v6  ;;  %v4262_v6 = vld [vmem:[%s5978_s14 + $0xd8] sm:$0xff] }
0x1167   :  { %5268 = vmatpush3.bf16.msra.mxu1 %v5265_v31  ;;  %v5293_v7 = vpack.c.bf16 %v4262_v6, %v4261_v4 }
0x1168   :  { %5270 = vmatprep.subr.bf16.mxu1 %v5269_v35 }
0x116b   :  { %5272 = vmatpush3.bf16.msra.mxu1 %v5269_v35 }
0x1239   :  { %v4811_v10 = vpop.f32.mrb[22].mxu1 }
0x123a   :  { %v2154_v11 = vpop.f32.mrb[23].mxu1 }
0x123b   :  { %4816 = vmatprep.mubr.msk.f32.mxu0 %vm775_vm1, %v2154_v11  ;;  %v4265_v11 = vld [vmem:[%s5978_s14 + $0xf0] sm:$0xff] }
0x123c   :  { %4817 = vmatmul.mubr.msk.f32.vlgmr.msra.gmra.mrb[18].mxu0 %vm775_vm1, %v4811_v10 }
0x123d   :  { %5264 = vmatpush3.bf16.msra.mxu0 %v5261_v9  ;;  %4823 = vmatprep.mubr.msk.f32.mxu0 %vm775_vm1, %v1950_v37  ;;  %v4264_v9 = vld [vmem:[%s5978_s14 + $0xe8] sm:$0xff] }
0x123e   :  { %5274 = vmatprep.subr.bf16.mxu0 %v5273_v58  ;;  %v5297_v10 = vpack.c.bf16 %v4264_v9, %v4263_v8  ;;  %v2615_v8 = vld [vmem:[%s4185_s15] sm:$0xff] }
0x1244   :  { %4824 = vmatmul.mubr.msk.f32.vlgmr.msra.gmra.mrb[18].mxu0 %vm775_vm1, %v4797_v36 }
0x1245   :  { %5276 = vmatpush3.bf16.msra.mxu0 %v5273_v58 }
0x1246   :  { %5278 = vmatprep.subr.bf16.mxu0 %v5277_v50 }
0x1249   :  { %5280 = vmatpush3.bf16.msra.mxu0 %v5277_v50 }
0x124a   :  { %5282 = vmatprep.subr.bf16.mxu0 %v5281_v62 }
0x124d   :  { %5284 = vmatpush3.bf16.msra.mxu0 %v5281_v62 }
0x124e   :  { %5286 = vmatprep.subr.bf16.mxu0 %v5285_v1 }
0x1251   :  { %5288 = vmatpush3.bf16.msra.mxu0 %v5285_v1 }
0x1252   :  { %5290 = vmatprep.subr.bf16.mxu0 %v5289_v5 }
0x1255   :  { %5292 = vmatpush3.bf16.msra.mxu0 %v5289_v5  ;;  %v2611_v5 = vld [vmem:[%s4184_s10] sm:$0xff] }
0x1256   :  { %5294 = vmatprep.subr.bf16.mxu0 %v5293_v7 }
0x1259   :  { %5296 = vmatpush3.bf16.msra.mxu0 %v5293_v7 }
0x125a   :  { %5298 = vmatprep.subr.bf16.mxu0 %v5297_v10 }
0x125d   :  { %5300 = vmatpush3.bf16.msra.mxu0 %v5297_v10 }
0x1317   :  { %v4825_v12 = vpop.f32.mrb[18].mxu0 }
0x1318   :  { %v2316_v14 = vpop.f32.mrb[19].mxu0  ;;  %v2326_v15 = vadd.f32 %v4825_v12, %v6010_v16  ;;  %v4266_v12 = vld [vmem:[%s5978_s14 + $0xf8] sm:$0xff] }
0x1319   :  { %v2325_v18 = vadd.f32 %v2316_v14, %v6012_v17  ;;  %v4292_v14 = vld [vmem:[%s5999_s22 + $0x1] ss:$0 sm:$0xff] }
0x131a   :  { %v6084_v20 = vadd.f32 %v4289_v13, %v2326_v15 }
0x131b   :  { %v6082_v19 = vadd.f32 %v4289_v13, %v2325_v18  ;;  %v5301_v13 = vpack.c.bf16 %v4266_v12, %v4265_v11  ;;  %v2612_v11 = vld [vmem:[%s4184_s10 + $0x8] sm:$0xff] }
0x131c   :  { %v2338_v21 = vsel %vm638_vm0, %v6084_v20, 0.0 }
0x131d   :  { %v2335_v53 = vsel %vm638_vm0, %v6082_v19, 0.0  ;;  %5302 = vmatprep.subr.bf16.mxu0 %v5301_v13 }
0x131e   :  { %2336 = vadd.xlane.f32.xlu0 %v2335_v53  ;;  %5304 = vmatpush3.bf16.msra.mxu0 %v5301_v13 }
0x1322   :  { %2339 = vadd.xlane.f32.xlu0 %v2338_v21 }
0x13ab   :  { %v2337_v54 = vpop.xlane.xlu0 %2336 }
0x13ac   :  { %v2341_v22 = vmul.f32 0.03125, %v2337_v54 }
0x13ae   :  { %v2343_v16 = vsub.f32 %v6082_v19, %v2341_v22 }
0x13af   :  { %v2340_v17 = vpop.xlane.xlu0 %2339 }
0x13b0   :  { %v2342_v23 = vmul.f32 0.03125, %v2340_v17  ;;  %v2345_v24 = vmul.f32 %v2343_v16, %v2343_v16 }
0x13b2   :  { %v2344_v26 = vsub.f32 %v6084_v20, %v2342_v23  ;;  %v2347_v25 = vsel %vm638_vm0, %v2345_v24, 0.0 }
0x13b3   :  { %2348 = vadd.xlane.f32.xlu0 %v2347_v25 }
0x13b4   :  { %v2346_v27 = vmul.f32 %v2344_v26, %v2344_v26 }
0x13b6   :  { %v2350_v28 = vsel %vm638_vm0, %v2346_v27, 0.0 }
0x13b7   :  { %2351 = vadd.xlane.f32.xlu0 %v2350_v28 }
0x1440   :  { %v2349_v36 = vpop.xlane.xlu0 %2348 }
0x1441   :  { %v2353_v37 = vmul.f32 0.03125, %v2349_v36 }
0x1443   :  { %v2355_v39 = vadd.f32 1e-06, %v2353_v37 }
0x1444   :  { %v2352_v40 = vpop.xlane.xlu0 %2351 }
0x1445   :  { %5564 = vrsqrt.f32 %v2355_v39  ;;  %v2354_v42 = vmul.f32 0.03125, %v2352_v40  ;;  %v4295_v40 = vld [vmem:[%s6005_s3 + $0x1] ss:$0 sm:$0xff] }
0x1447   :  { %v2356_v43 = vadd.f32 1e-06, %v2354_v42 }
0x1449   :  { %5566 = vrsqrt.f32 %v2356_v43 }
0x144f   :  { %v5565_v45 = vpop.eup %5564 }
0x1450   :  { %v2359_v47 = vmul.f32 %v5565_v45, %v2343_v16 }
0x1452   :  { %v2367_v49 = vmul.f32 %v4290_v46, %v2359_v47 }
0x1453   :  { %v5567_v51 = vpop.eup %5566 }
0x1454   :  { %v2360_v52 = vmul.f32 %v5567_v51, %v2344_v26  ;;  %v2375_v55 = vadd.f32 %v4291_v48, %v2367_v49 }
0x1456   :  { %v2368_v56 = vmul.f32 %v4290_v46, %v2360_v52  ;;  %4834 = vmatprep.mubr.msk.f32.mxu1 %vm638_vm0, %v2375_v55 }
0x1458   :  { %v2376_v57 = vadd.f32 %v4291_v48, %v2368_v56 }
0x145a   :  { %4835 = vmatmul.mubr.msk.f32.vlgmr.msra.gmra.mrb[24].mxu1 %vm638_vm0, %v2376_v57 }
0x152d   :  { %v4836_v15 = vpop.f32.mrb[24].mxu1 }
0x152e   :  { %v2461_v18 = vadd.f32 %v4836_v15, %v4292_v14  ;;  %v2455_v53 = vpop.f32.mrb[25].mxu1 }
0x152f   :  { %v2456_v21 = vadd.f32 %v4292_v14, %v2455_v53  ;;  %v2616_v14 = vld [vmem:[%s4185_s15 + $0x8] sm:$0xff] }
0x1530   :  { %v2465_v54 = vmul.f32 %v2461_v18, %v2461_v18 }
0x1531   :  { %v2464_v22 = vmul.f32 %v2456_v21, %v2456_v21 }
0x1532   :  { %v2467_v16 = vmul.f32 %v2465_v54, %v2461_v18 }
0x1533   :  { %v2466_v17 = vmul.f32 %v2464_v22, %v2456_v21 }
0x1534   :  { %v2469_v23 = vmul.f32 0.044715, %v2467_v16 }
0x1535   :  { %v2468_v24 = vmul.f32 0.044715, %v2466_v17 }
0x1536   :  { %v2471_v26 = vadd.f32 %v2469_v23, %v2461_v18 }
0x1537   :  { %v2470_v25 = vadd.f32 %v2468_v24, %v2456_v21 }
0x1538   :  { %v2473_v27 = vmul.f32 0.7978846, %v2471_v26 }
0x1539   :  { %v2472_v28 = vmul.f32 0.7978846, %v2470_v25 }
0x153a   :  { %5568 = vtanh.f32 %v2473_v27 }
0x153b   :  { %5570 = vtanh.f32 %v2472_v28 }
0x1544   :  { %v5569_v29 = vpop.eup %5568 }
0x1545   :  { %v5571_v30 = vpop.eup %5570  ;;  %v2477_v31 = vadd.f32 1.0, %v5569_v29  ;;  %v2623_v29 = vld [vmem:[%s4189_s24] sm:$0xff] }
0x1546   :  { %v2476_v33 = vadd.f32 1.0, %v5571_v30  ;;  %v2624_v30 = vld [vmem:[%s4189_s24 + $0x8] sm:$0xff] }
0x1547   :  { %v2479_v34 = vmul.f32 0.5, %v2477_v31  ;;  %v5305_v31 = vpack.c.bf16 %v2624_v30, %v2623_v29 }
0x1548   :  { %v2478_v35 = vmul.f32 0.5, %v2476_v33  ;;  %v2625_v33 = vld [vmem:[%s4189_s24 + $0x10] sm:$0xff] }
0x1549   :  { %v2481_v37 = vmul.f32 %v2479_v34, %v2461_v18  ;;  %5306 = vmatprep.subr.bf16.mxu1 %v5305_v31  ;;  %v2626_v34 = vld [vmem:[%s4189_s24 + $0x18] sm:$0xff]  ;;  %s4195_s24 = sld [smem:[%s6345_s0 + %s5647_s19]]   ;;  %s5657_s19 = smov 33  }
0x154a   :  { %v2480_v36 = vmul.f32 %v2478_v35, %v2456_v21  ;;  %5308 = vmatpush3.bf16.msra.mxu1 %v5305_v31  ;;  %v5309_v35 = vpack.c.bf16 %v2626_v34, %v2625_v33 }
0x154c   :  { %4869 = vmatprep.mubr.f32.mxu0 %v2480_v36  ;;  %5310 = vmatprep.subr.bf16.mxu1 %v5309_v35 }
0x154d   :  { %4870 = vmatmul.mubr.f32.vlgmr.msra.gmra.mrb[20].mxu0 %v2481_v37 }
0x154e   :  { %5312 = vmatpush3.bf16.msra.mxu1 %v5309_v35 }
0x1620   :  { %v4871_v39 = vpop.f32.mrb[20].mxu0 }
0x1621   :  { %v2558_v42 = vadd.f32 %v4871_v39, %v6084_v20  ;;  %v2548_v43 = vpop.f32.mrb[21].mxu0 }
0x1622   :  { %v2557_v45 = vadd.f32 %v2548_v43, %v6082_v19 }
0x1623   :  { %v2566_v46 = vadd.f32 %v4295_v40, %v2558_v42 }
0x1624   :  { %v2565_v47 = vadd.f32 %v4295_v40, %v2557_v45 }
0x1625   :  { %v2572_v48 = vsel %vm638_vm0, %v2566_v46, 0.0 }
0x1626   :  { %2573 = vadd.xlane.f32.xlu0 %v2572_v48  ;;  %v2569_v49 = vsel %vm638_vm0, %v2565_v47, 0.0  ;;  %v4299_v48 = vld [vmem:[%s4188_s12] ss:$0 sm:$0xff]  ;;  %s4194_s12 = sld [smem:[%s6345_s0 + %s5649_s21]]   ;;  %s5659_s21 = smov 36  }
0x1627   :  { %2570 = vadd.xlane.f32.xlu1 %v2569_v49 }
0x16b3   :  { %v2574_v51 = vpop.xlane.xlu0 %2573 }
0x16b4   :  { %v2576_v52 = vmul.f32 0.03125, %v2574_v51  ;;  %v2571_v55 = vpop.xlane.xlu1 %2570 }
0x16b5   :  { %v2575_v56 = vmul.f32 0.03125, %v2571_v55 }
0x16b6   :  { %v2578_v57 = vsub.f32 %v2566_v46, %v2576_v52  ;;  %v4298_v46 = vld [vmem:[%s4187_s17] ss:$0 sm:$0xff]  ;;  %s4193_s17 = sld [smem:[%s6345_s0 + %s5648_s26]]   ;;  %s5658_s26 = smov 34  }
0x16b7   :  { %v2577_v38 = vsub.f32 %v2565_v47, %v2575_v56 }
0x16b8   :  { %v2580_v58 = vmul.f32 %v2578_v57, %v2578_v57 }
0x16b9   :  { %v2579_v41 = vmul.f32 %v2577_v38, %v2577_v38 }
0x16ba   :  { %v2584_v19 = vsel %vm638_vm0, %v2580_v58, 0.0 }
0x16bb   :  { %v2581_v20 = vsel %vm638_vm0, %v2579_v41, 0.0 }
0x16bc   :  { %2582 = vadd.xlane.f32.xlu0 %v2581_v20 }
0x16c0   :  { %2585 = vadd.xlane.f32.xlu0 %v2584_v19 }
0x1749   :  { %v2583_v59 = vpop.xlane.xlu0 %2582 }
0x174a   :  { %v2587_v60 = vmul.f32 0.03125, %v2583_v59 }
0x174c   :  { %v2589_v50 = vadd.f32 1e-06, %v2587_v60 }
0x174d   :  { %v2586_v44 = vpop.xlane.xlu0 %2585 }
0x174e   :  { %5572 = vrsqrt.f32 %v2589_v50  ;;  %v2588_v61 = vmul.f32 0.03125, %v2586_v44 }
0x1750   :  { %v2590_v62 = vadd.f32 1e-06, %v2588_v61 }
0x1752   :  { %5574 = vrsqrt.f32 %v2590_v62 }
0x1758   :  { %v5573_v63 = vpop.eup %5572 }
0x1759   :  { %v2593_v1 = vmul.f32 %v5573_v63, %v2577_v38  ;;  %v4300_v38 = vld [vmem:[%s4190_s4] ss:$0 sm:$0xff]  ;;  %s6247_s4 = sld [smem:[%s6345_s0 + %s5650_s16]]   ;;  %s5660_s16 = smov 37  }
0x175b   :  { %v2601_v3 = vmul.f32 %v4296_v0, %v2593_v1 }
0x175c   :  { %v5575_v4 = vpop.eup %5574 }
0x175d   :  { %v2594_v6 = vmul.f32 %v5575_v4, %v2578_v57  ;;  %v6138_v7 = vadd.f32 %v4297_v2, %v2601_v3 }
0x175f   :  { %v2613_v9 = vmul.f32 %v2611_v5, %v6138_v7  ;;  %v2602_v10 = vmul.f32 %v4296_v0, %v2594_v6 }
0x1761   :  { %v6141_v12 = vadd.f32 %v2615_v8, %v2613_v9  ;;  %v6143_v13 = vadd.f32 %v4297_v2, %v2602_v10 }
0x1763   :  { %v2657_v15 = vsel %vm638_vm0, %v6141_v12, 0.0  ;;  %v2614_v18 = vmul.f32 %v2612_v11, %v6143_v13 }
0x1764   :  { %2658 = vadd.xlane.f32.xlu0 %v2657_v15 }
0x1765   :  { %v6148_v53 = vadd.f32 %v2616_v14, %v2614_v18 }
0x1767   :  { %v2660_v21 = vsel %vm638_vm0, %v6148_v53, 0.0 }
0x1768   :  { %2661 = vadd.xlane.f32.xlu0 %v2660_v21 }
0x17f1   :  { %v2659_v54 = vpop.xlane.xlu0 %2658 }
0x17f2   :  { %v2663_v22 = vmul.f32 0.03125, %v2659_v54 }
0x17f4   :  { %v2665_v16 = vsub.f32 %v6141_v12, %v2663_v22 }
0x17f5   :  { %v2662_v17 = vpop.xlane.xlu0 %2661 }
0x17f6   :  { %v2664_v23 = vmul.f32 0.03125, %v2662_v17  ;;  %v2667_v24 = vmul.f32 %v2665_v16, %v2665_v16 }
0x17f8   :  { %v2666_v26 = vsub.f32 %v6148_v53, %v2664_v23  ;;  %v2669_v25 = vsel %vm638_vm0, %v2667_v24, 0.0 }
0x17f9   :  { %2670 = vadd.xlane.f32.xlu0 %v2669_v25 }
0x17fa   :  { %v2668_v27 = vmul.f32 %v2666_v26, %v2666_v26 }
0x17fc   :  { %v2672_v28 = vsel %vm638_vm0, %v2668_v27, 0.0 }
0x17fd   :  { %2673 = vadd.xlane.f32.xlu0 %v2672_v28 }
0x1886   :  { %v2671_v36 = vpop.xlane.xlu0 %2670 }
0x1887   :  { %v2675_v37 = vmul.f32 0.03125, %v2671_v36 }
0x1889   :  { %v2677_v39 = vadd.f32 1e-06, %v2675_v37 }
0x188a   :  { %v2674_v40 = vpop.xlane.xlu0 %2673 }
0x188b   :  { %5576 = vrsqrt.f32 %v2677_v39  ;;  %v2676_v42 = vmul.f32 0.03125, %v2674_v40 }
0x188d   :  { %v2678_v43 = vadd.f32 1e-06, %v2676_v42 }
0x188f   :  { %5578 = vrsqrt.f32 %v2678_v43 }
0x1895   :  { %v5577_v45 = vpop.eup %5576 }
0x1896   :  { %v2681_v47 = vmul.f32 %v5577_v45, %v2665_v16 }
0x1898   :  { %v2689_v49 = vmul.f32 %v4298_v46, %v2681_v47 }
0x1899   :  { %v5579_v51 = vpop.eup %5578 }
0x189a   :  { %v2682_v52 = vmul.f32 %v5579_v51, %v2666_v26  ;;  %v2697_v55 = vadd.f32 %v4299_v48, %v2689_v49 }
0x189c   :  { %v2690_v56 = vmul.f32 %v4298_v46, %v2682_v52  ;;  %4880 = vmatprep.mubr.msk.f32.mxu1 %vm638_vm0, %v2697_v55 }
0x189e   :  { %v2698_v57 = vadd.f32 %v4299_v48, %v2690_v56 }
0x18a0   :  { %4881 = vmatmul.mubr.msk.f32.vlgmr.msra.gmra.mrb[26].mxu1 %vm638_vm0, %v2698_v57 }
0x1973   :  { %v4882_v41 = vpop.f32.mrb[26].mxu1 }
0x1974   :  { %v2783_v20 = vadd.f32 %v4882_v41, %v4300_v38  ;;  %v2777_v58 = vpop.f32.mrb[27].mxu1 }
0x1975   :  { %v2778_v19 = vadd.f32 %v4300_v38, %v2777_v58 }
0x1977   :  { %4887 = vmatprep.mubr.msk.f32.mxu1 %vm775_vm1, %v2778_v19  ;;  %v6171_v59 = vpack.i.bf16 %v2783_v20, %v2778_v19 }
0x1979   :  { %5497 = vrot.lane.b32.xlu0 %v6171_v59, %s5623_s1  ;;  %s5644_s1 = smov 20  }
0x197d   :  { %5507 = vrot.lane.b32.xlu0 %v6171_v59, %s5622_s30  ;;  %s4186_s30 = sld [smem:[%s6345_s0 + %s5644_s1]]   ;;  %s5651_s1 = smov 30  }
0x1981   :  { %2988 = vrot.lane.b32.xlu0 %v2778_v19, %s5624_s2 }
0x1983   :  { %v2619_v0 = vld [vmem:[%s4186_s30] sm:$0xff]  ;;  %v2620_v3 = vld [vmem:[%s4186_s30 + $0x8] sm:$0xff]  ;;  %s4196_s30 = sld [smem:[%s6345_s0 + %s5651_s1]]  }
0x1985   :  { %2990 = vrot.lane.b32.xlu0 %v2783_v20, %s5624_s2  ;;  %s5645_s2 = smov 25  }
0x1986   :  { %s4191_s11 = sld [smem:[%s6345_s0 + %s5645_s2]]   ;;  %s5652_s2 = smov 32  }
0x19eb   :  { %v5498_v60 = vpop.permute.xlu0 %5497 }
0x19ec   :  { %v5500_v50 = vunpack.i.h.bf16 %v5498_v60  ;;  %v5499_v44 = vunpack.i.l.bf16 %v5498_v60 }
0x19ee   :  { %v5313_v61 = vpack.c.bf16 %v5500_v50, %v5499_v44  ;;  %v2630_v50 = vld [vmem:[%s4191_s11 + $0x10] sm:$0xff]  ;;  %v2631_v44 = vld [vmem:[%s4191_s11 + $0x18] sm:$0xff] }
0x19ef   :  { %v5508_v24 = vpop.permute.xlu0 %5507 }
0x19f0   :  { %5315 = vmatprep.subr.msk.bf16.mxu1 %vm5876_vm2, %v5313_v61  ;;  %v5510_v25 = vunpack.i.h.bf16 %v5508_v24  ;;  %v5509_v27 = vunpack.i.l.bf16 %v5508_v24 }
0x19f1   :  { %5318 = vmatpush3.bf16.xpose.msk.msra.mxu1 %vm5876_vm2, %v5313_v61  ;;  %v5333_v61 = vpack.c.bf16 %v2631_v44, %v2630_v50  ;;  %v2642_v50 = vld [vmem:[%s6247_s4 + $0x10] sm:$0xff]  ;;  %v2643_v44 = vld [vmem:[%s6247_s4 + $0x18] sm:$0xff] }
0x19f2   :  { %v5323_v31 = vpack.c.bf16 %v5510_v25, %v5509_v27 }
0x19f3   :  { %v2989_v37 = vpop.permute.xlu0 %2988  ;;  %5334 = vmatprep.subr.bf16.mxu0 %v5333_v61 }
0x19f4   :  { %5336 = vmatpush3.bf16.msra.mxu0 %v5333_v61  ;;  %v5353_v61 = vpack.c.bf16 %v2643_v44, %v2642_v50 }
0x19f7   :  { %v2991_v39 = vpop.permute.xlu0 %2990 }
0x19f8   :  { %4888 = vmatmul.mubr.msk.f32.vlgmr.msra.gmra.mrb[28].mxu1 %vm775_vm1, %v2783_v20 }
0x1acb   :  { %v4889_v62 = vpop.f32.mrb[28].mxu1 }
0x1acc   :  { %v2866_v63 = vpop.f32.mrb[29].mxu1  ;;  %v2876_v1 = vmul.f32 0.25, %v4889_v62 }
0x1acd   :  { %v2875_v2 = vmul.f32 0.25, %v2866_v63 }
0x1ace   :  { %v2878_v6 = vadd.f32 %v2876_v1, %v2620_v3 }
0x1acf   :  { %v2877_v4 = vadd.f32 %v2875_v2, %v2619_v0 }
0x1ad0   :  { %v2882_v8 = vsel %vm775_vm1, %v2878_v6, -inf }
0x1ad1   :  { %v2879_v5 = vsel %vm775_vm1, %v2877_v4, -inf }
0x1ad2   :  { %2880 = vmax.xlane.f32.xlu1 %v2879_v5 }
0x1ad6   :  { %2883 = vmax.xlane.f32.xlu1 %v2882_v8  ;;  %v2628_v8 = vld [vmem:[%s4191_s11] sm:$0xff] }
0x1b5f   :  { %v2881_v9 = vpop.xlane.xlu1 %2880 }
0x1b60   :  { %v2885_v10 = vsub.f32 %v2877_v4, %v2881_v9  ;;  %v2629_v9 = vld [vmem:[%s4191_s11 + $0x8] sm:$0xff]  ;;  %s4198_s11 = sld [smem:[%s6345_s0 + %s5652_s2]]  }
0x1b62   :  { %v2887_v15 = vmul.f32 1.442695, %v2885_v10  ;;  %v5337_v10 = vpack.c.bf16 %v2629_v9, %v2628_v8  ;;  %v2651_v8 = vld [vmem:[%s6247_s4 + $0x58] sm:$0xff] }
0x1b63   :  { %v2884_v11 = vpop.xlane.xlu1 %2883 }
0x1b64   :  { %v2886_v14 = vsub.f32 %v2878_v6, %v2884_v11  ;;  %5338 = vmatprep.subr.bf16.mxu0 %v5337_v10 }
0x1b66   :  { %v2889_v18 = vmul.f32 1.442695, %v2886_v14 }
0x1b68   :  { %5580 = vpow2.f32 %v2889_v18 }
0x1b69   :  { %5582 = vpow2.f32 %v2887_v15 }
0x1b72   :  { %v5581_v21 = vpop.eup %5580 }
0x1b73   :  { %v2894_v54 = vsel %vm775_vm1, %v5581_v21, 0.0  ;;  %v5583_v22 = vpop.eup %5582 }
0x1b74   :  { %2895 = vadd.xlane.f32.xlu1 %v2894_v54  ;;  %v2891_v16 = vsel %vm775_vm1, %v5583_v22, 0.0 }
0x1b78   :  { %2892 = vadd.xlane.f32.xlu1 %v2891_v16 }
0x1b89   :  { %5502 = vrot.lane.b32.xlu1 %v6171_v59, %s5627_s8 }
0x1c01   :  { %v2896_v17 = vpop.xlane.xlu1 %2895 }
0x1c02   :  { %5584 = vrcp.f32 %v2896_v17 }
0x1c05   :  { %v2893_v23 = vpop.xlane.xlu1 %2892 }
0x1c06   :  { %5586 = vrcp.f32 %v2893_v23 }
0x1c09   :  { %v5503_v26 = vpop.permute.xlu1 %5502 }
0x1c0a   :  { %v5505_v28 = vunpack.i.h.bf16 %v5503_v26  ;;  %v5504_v29 = vunpack.i.l.bf16 %v5503_v26 }
0x1c0c   :  { %v5319_v30 = vpack.c.bf16 %v5505_v28, %v5504_v29  ;;  %v5585_v33 = vpop.eup %5584 }
0x1c0d   :  { %v2900_v36 = vmul.f32 %v5585_v33, %v5581_v21 }
0x1c0e   :  { %5320 = vmatprep.subr.bf16.mxu1 %v5319_v30 }
0x1c0f   :  { %5322 = vmatpush3.bf16.msra.mxu1 %v5319_v30 }
0x1c10   :  { %v5587_v34 = vpop.eup %5586  ;;  %5325 = vmatprep.subr.msk.bf16.mxu1 %vm5876_vm2, %v5323_v31 }
0x1c11   :  { %v2898_v35 = vmul.f32 %v5587_v34, %v5583_v22  ;;  %v2635_v34 = vld [vmem:[%s4195_s24] sm:$0xff] }
0x1c13   :  { %4894 = vmatprep.mubr.msk.f32.mxu1 %vm775_vm1, %v2898_v35  ;;  %v2636_v35 = vld [vmem:[%s4195_s24 + $0x8] sm:$0xff] }
0x1c14   :  { %4895 = vmatmul.mubr.msk.f32.vlgmr.msra.gmra.mrb[30].mxu1 %vm775_vm1, %v2900_v36  ;;  %v5341_v36 = vpack.c.bf16 %v2636_v35, %v2635_v34 }
0x1c15   :  { %4901 = vmatprep.mubr.msk.f32.mxu1 %vm775_vm1, %v2989_v37  ;;  %v2637_v37 = vld [vmem:[%s4195_s24 + $0x10] sm:$0xff] }
0x1c18   :  { %5328 = vmatpush3.bf16.xpose.msk.msra.mxu1 %vm5876_vm2, %v5323_v31 }
0x1c1f   :  { %4902 = vmatmul.mubr.msk.f32.vlgmr.msra.gmra.mrb[32].mxu1 %vm775_vm1, %v2991_v39  ;;  %v2638_v39 = vld [vmem:[%s4195_s24 + $0x18] sm:$0xff]  ;;  %s4199_s24 = sld [smem:[%s6345_s0 + %s5657_s19]]  }
0x1ce7   :  { %v4896_v40 = vpop.f32.mrb[30].mxu1 }
0x1ce8   :  { %v2979_v42 = vpop.f32.mrb[31].mxu1 }
0x1cf2   :  { %v4903_v43 = vpop.f32.mrb[32].mxu1 }
0x1cf3   :  { %v3080_v45 = vmul.f32 0.25, %v4903_v43  ;;  %v3070_v46 = vpop.f32.mrb[33].mxu1 }
0x1cf4   :  { %v3079_v47 = vmul.f32 0.25, %v3070_v46 }
0x1cf5   :  { %v3082_v48 = vadd.f32 %v3080_v45, %v2620_v3 }
0x1cf6   :  { %v3081_v49 = vadd.f32 %v3079_v47, %v2619_v0 }
0x1cf7   :  { %v3086_v51 = vsel %vm775_vm1, %v3082_v48, -inf }
0x1cf8   :  { %3087 = vmax.xlane.f32.xlu1 %v3086_v51  ;;  %v3083_v52 = vsel %vm775_vm1, %v3081_v49, -inf  ;;  %v4320_v51 = vld [vmem:[%s4193_s17] ss:$0 sm:$0xff]  ;;  %s4200_s17 = sld [smem:[%s6345_s0 + %s5658_s26]]  }
0x1cf9   :  { %3084 = vmax.xlane.f32.xlu0 %v3083_v52 }
0x1d85   :  { %v3088_v55 = vpop.xlane.xlu1 %3087 }
0x1d86   :  { %v3090_v32 = vsub.f32 %v3082_v48, %v3088_v55  ;;  %v3085_v56 = vpop.xlane.xlu0 %3084  ;;  %v4321_v55 = vld [vmem:[%s4194_s12] ss:$0 sm:$0xff]  ;;  %s4202_s12 = sld [smem:[%s6345_s0 + %s5659_s21]]  }
0x1d87   :  { %v3089_v57 = vsub.f32 %v3081_v49, %v3085_v56 }
0x1d88   :  { %v3093_v38 = vmul.f32 1.442695, %v3090_v32 }
0x1d89   :  { %v3091_v41 = vmul.f32 1.442695, %v3089_v57 }
0x1d8a   :  { %5588 = vpow2.f32 %v3093_v38 }
0x1d8b   :  { %5590 = vpow2.f32 %v3091_v41 }
0x1d94   :  { %v5589_v20 = vpop.eup %5588 }
0x1d95   :  { %v3098_v58 = vsel %vm775_vm1, %v5589_v20, 0.0  ;;  %v5591_v19 = vpop.eup %5590 }
0x1d96   :  { %3099 = vadd.xlane.f32.xlu0 %v3098_v58  ;;  %v3095_v60 = vsel %vm775_vm1, %v5591_v19, 0.0  ;;  %v2640_v58 = vld [vmem:[%s6247_s4] sm:$0xff] }
0x1d9a   :  { %3096 = vadd.xlane.f32.xlu0 %v3095_v60 }
0x1db0   :  { %5512 = vrot.lane.b32.xlu0 %v6171_v59, %s5626_s7  ;;  %s5646_s7 = smov 26  }
0x1db1   :  { %s4192_s15 = sld [smem:[%s6345_s0 + %s5646_s7]]   ;;  %s5653_s7 = smov 35  }
0x1db7   :  { %v4319_v18 = vld [vmem:[%s4192_s15] ss:$0 sm:$0xff]  ;;  %s4201_s15 = sld [smem:[%s6345_s0 + %s5653_s7]]  }
0x1dbd   :  { %v3640_v44 = vld [vmem:[%s4201_s15] sm:$0xff] }
0x1e23   :  { %v3100_v62 = vpop.xlane.xlu0 %3099 }
0x1e24   :  { %5592 = vrcp.f32 %v3100_v62  ;;  %v2644_v62 = vld [vmem:[%s6247_s4 + $0x20] sm:$0xff] }
0x1e27   :  { %v3097_v63 = vpop.xlane.xlu0 %3096 }
0x1e28   :  { %5594 = vrcp.f32 %v3097_v63  ;;  %v2645_v63 = vld [vmem:[%s6247_s4 + $0x28] sm:$0xff] }
0x1e2b   :  { %v5513_v0 = vpop.permute.xlu0 %5512 }
0x1e2c   :  { %v5515_v1 = vunpack.i.h.bf16 %v5513_v0  ;;  %v5514_v2 = vunpack.i.l.bf16 %v5513_v0  ;;  %v5357_v0 = vpack.c.bf16 %v2645_v63, %v2644_v62  ;;  %v5654_v63 = vmov 0.0|0.0  }
0x1e2e   :  { %v5329_v3 = vpack.c.bf16 %v5515_v1, %v5514_v2  ;;  %v5593_v59 = vpop.eup %5592  ;;  %v2646_v1 = vld [vmem:[%s6247_s4 + $0x30] sm:$0xff]  ;;  %v2647_v2 = vld [vmem:[%s6247_s4 + $0x38] sm:$0xff] }
0x1e2f   :  { %v3104_v6 = vmul.f32 %v5593_v59, %v5589_v20  ;;  %v2648_v59 = vld [vmem:[%s6247_s4 + $0x40] sm:$0xff] }
0x1e30   :  { %5330 = vmatprep.subr.bf16.mxu1 %v5329_v3 }
0x1e31   :  { %5332 = vmatpush3.bf16.msra.mxu1 %v5329_v3  ;;  %v5361_v3 = vpack.c.bf16 %v2647_v2, %v2646_v1  ;;  %v3643_v1 = vld [vmem:[%s4201_s15 + $0x18] sm:$0xff] }
0x1e32   :  { %v5595_v4 = vpop.eup %5594  ;;  %5342 = vmatprep.subr.bf16.mxu1 %v5341_v36 }
0x1e33   :  { %v3102_v5 = vmul.f32 %v5595_v4, %v5591_v19  ;;  %v2641_v19 = vld [vmem:[%s6247_s4 + $0x8] sm:$0xff] }
0x1e34   :  { %v5349_v60 = vpack.c.bf16 %v2641_v19, %v2640_v58  ;;  %v2649_v4 = vld [vmem:[%s6247_s4 + $0x48] sm:$0xff] }
0x1e35   :  { %4908 = vmatprep.mubr.msk.f32.mxu1 %vm775_vm1, %v3102_v5  ;;  %v2650_v5 = vld [vmem:[%s6247_s4 + $0x50] sm:$0xff] }
0x1e36   :  { %4909 = vmatmul.mubr.msk.f32.vlgmr.msra.gmra.mrb[34].mxu1 %vm775_vm1, %v3104_v6  ;;  %v5365_v6 = vpack.c.bf16 %v2649_v4, %v2648_v59  ;;  %v5369_v9 = vpack.c.bf16 %v2651_v8, %v2650_v5 }
0x1e37   :  { %5344 = vmatpush3.bf16.msra.mxu1 %v5341_v36 }
0x1f09   :  { %v4910_v11 = vpop.f32.mrb[34].mxu1 }
0x1f0a   :  { %v3183_v14 = vpop.f32.mrb[35].mxu1 }
0x1f0b   :  { %4915 = vmatprep.mubr.msk.f32.mxu0 %vm775_vm1, %v3183_v14 }
0x1f0c   :  { %4916 = vmatmul.mubr.msk.f32.vlgmr.msra.gmra.mrb[22].mxu0 %vm775_vm1, %v4910_v11  ;;  %v2653_v11 = vld [vmem:[%s6247_s4 + $0x68] sm:$0xff] }
0x1f0d   :  { %5340 = vmatpush3.bf16.msra.mxu0 %v5337_v10  ;;  %4922 = vmatprep.mubr.msk.f32.mxu0 %vm775_vm1, %v2979_v42  ;;  %v2652_v10 = vld [vmem:[%s6247_s4 + $0x60] sm:$0xff] }
0x1f0e   :  { %5350 = vmatprep.subr.bf16.mxu0 %v5349_v60  ;;  %v5373_v14 = vpack.c.bf16 %v2653_v11, %v2652_v10  ;;  %v4326_v11 = vld [vmem:[%s4199_s24] ss:$0 sm:$0xff] }
0x1f14   :  { %4923 = vmatmul.mubr.msk.f32.vlgmr.msra.gmra.mrb[22].mxu0 %vm775_vm1, %v4896_v40  ;;  %v5345_v40 = vpack.c.bf16 %v2638_v39, %v2637_v37 }
0x1f15   :  { %5352 = vmatpush3.bf16.msra.mxu0 %v5349_v60 }
0x1f16   :  { %5346 = vmatprep.subr.bf16.mxu1 %v5345_v40  ;;  %5354 = vmatprep.subr.bf16.mxu0 %v5353_v61 }
0x1f17   :  { %5348 = vmatpush3.bf16.msra.mxu1 %v5345_v40 }
0x1f18   :  { %5381 = vmatprep.subr.bf16.mxu1 %v5654_v63 }
0x1f19   :  { %5356 = vmatpush3.bf16.msra.mxu0 %v5353_v61  ;;  %v3641_v61 = vld [vmem:[%s4201_s15 + $0x8] sm:$0xff] }
0x1f1a   :  { %5358 = vmatprep.subr.bf16.mxu0 %v5357_v0  ;;  %v6281_v62 = vpack.c.bf16 %v3641_v61, %v3640_v44 }
0x1f1d   :  { %5360 = vmatpush3.bf16.msra.mxu0 %v5357_v0  ;;  %v3642_v0 = vld [vmem:[%s4201_s15 + $0x10] sm:$0xff] }
0x1f1e   :  { %5362 = vmatprep.subr.bf16.mxu0 %v5361_v3  ;;  %v6286_v2 = vpack.c.bf16 %v3643_v1, %v3642_v0 }
0x1f21   :  { %5364 = vmatpush3.bf16.msra.mxu0 %v5361_v3  ;;  %v5656_v3 = vmov 0.0  }
0x1f22   :  { %5366 = vmatprep.subr.bf16.mxu0 %v5365_v6 }
0x1f25   :  { %5368 = vmatpush3.bf16.msra.mxu0 %v5365_v6 }
0x1f26   :  { %5370 = vmatprep.subr.bf16.mxu0 %v5369_v9 }
0x1f29   :  { %5372 = vmatpush3.bf16.msra.mxu0 %v5369_v9 }
0x1f2a   :  { %5374 = vmatprep.subr.bf16.mxu0 %v5373_v14 }
0x1f2d   :  { %5376 = vmatpush3.bf16.msra.mxu0 %v5373_v14 }
0x1fe7   :  { %v4924_v15 = vpop.f32.mrb[22].mxu0 }
0x1fe8   :  { %v3345_v21 = vpop.f32.mrb[23].mxu0  ;;  %v3355_v54 = vadd.f32 %v4924_v15, %v6148_v53  ;;  %v2654_v15 = vld [vmem:[%s6247_s4 + $0x70] sm:$0xff] }
0x1fe9   :  { %v3354_v22 = vadd.f32 %v3345_v21, %v6141_v12 }
0x1fea   :  { %v6223_v17 = vadd.f32 %v4319_v18, %v3355_v54  ;;  %v4322_v54 = vld [vmem:[%s4196_s30] ss:$0 sm:$0xff] }
0x1feb   :  { %v6221_v16 = vadd.f32 %v4319_v18, %v3354_v22  ;;  %v2655_v18 = vld [vmem:[%s6247_s4 + $0x78] sm:$0xff]  ;;  %s4203_s4 = sld [smem:[%s6345_s0 + %s5660_s16]]  }
0x1fec   :  { %v3367_v24 = vsel %vm638_vm0, %v6223_v17, 0.0  ;;  %v5377_v21 = vpack.c.bf16 %v2655_v18, %v2654_v15  ;;  %v4327_v15 = vld [vmem:[%s4200_s17] ss:$0 sm:$0xff] }
0x1fed   :  { %v3364_v23 = vsel %vm638_vm0, %v6221_v16, 0.0 }
0x1fee   :  { %3365 = vadd.xlane.f32.xlu1 %v3364_v23  ;;  %5378 = vmatprep.subr.bf16.mxu0 %v5377_v21 }
0x1fef   :  { %5380 = vmatpush3.bf16.msra.mxu0 %v5377_v21  ;;  %v3644_v21 = vld [vmem:[%s4202_s12] sm:$0xff] }
0x1ff0   :  { %5020 = vmatprep.subr.mxu0 %v5656_v3 }
0x1ff2   :  { %3368 = vadd.xlane.f32.xlu1 %v3367_v24 }
0x207b   :  { %v3366_v26 = vpop.xlane.xlu1 %3365 }
0x207c   :  { %v3370_v25 = vmul.f32 0.03125, %v3366_v26 }
0x207e   :  { %v3372_v27 = vsub.f32 %v6221_v16, %v3370_v25 }
0x207f   :  { %v3369_v28 = vpop.xlane.xlu1 %3368 }
0x2080   :  { %v3371_v53 = vmul.f32 0.03125, %v3369_v28  ;;  %v3374_v29 = vmul.f32 %v3372_v27, %v3372_v27 }
0x2082   :  { %v3373_v12 = vsub.f32 %v6223_v17, %v3371_v53  ;;  %v3376_v30 = vsel %vm638_vm0, %v3374_v29, 0.0 }
0x2083   :  { %3377 = vadd.xlane.f32.xlu1 %v3376_v30 }
0x2084   :  { %v3375_v31 = vmul.f32 %v3373_v12, %v3373_v12 }
0x2086   :  { %v3379_v33 = vsel %vm638_vm0, %v3375_v31, 0.0 }
0x2087   :  { %3380 = vadd.xlane.f32.xlu1 %v3379_v33 }
0x2110   :  { %v3378_v42 = vpop.xlane.xlu1 %3377 }
0x2111   :  { %v3382_v43 = vmul.f32 0.03125, %v3378_v42 }
0x2113   :  { %v3384_v45 = vadd.f32 1e-06, %v3382_v43 }
0x2114   :  { %v3381_v46 = vpop.xlane.xlu1 %3380 }
0x2115   :  { %5596 = vrsqrt.f32 %v3384_v45  ;;  %v3383_v47 = vmul.f32 0.03125, %v3381_v46 }
0x2117   :  { %v3385_v48 = vadd.f32 1e-06, %v3383_v47  ;;  %v4325_v47 = vld [vmem:[%s4198_s11] ss:$0 sm:$0xff] }
0x2119   :  { %5598 = vrsqrt.f32 %v3385_v48 }
0x211f   :  { %v5597_v49 = vpop.eup %5596 }
0x2120   :  { %v3388_v52 = vmul.f32 %v5597_v49, %v3372_v27 }
0x2122   :  { %v3396_v32 = vmul.f32 %v4320_v51, %v3388_v52 }
0x2123   :  { %v5599_v56 = vpop.eup %5598 }
0x2124   :  { %v3389_v57 = vmul.f32 %v5599_v56, %v3373_v12  ;;  %v3404_v38 = vadd.f32 %v4321_v55, %v3396_v32 }
0x2126   :  { %v3397_v41 = vmul.f32 %v4320_v51, %v3389_v57  ;;  %4933 = vmatprep.mubr.msk.f32.mxu1 %vm638_vm0, %v3404_v38 }
0x2128   :  { %v3405_v20 = vadd.f32 %v4321_v55, %v3397_v41 }
0x212a   :  { %4934 = vmatmul.mubr.msk.f32.vlgmr.msra.gmra.mrb[36].mxu1 %vm638_vm0, %v3405_v20 }
0x212b   :  { %5383 = vmatpush3.bf16.msra.mxu1 %v6281_v62  ;;  %4979 = vmatprep.mubr.msk.f32.mxu1 %vm5655_vm3, %v5656_v3 }
0x212c   :  { %5384 = vmatprep.subr.bf16.mxu1 %v5654_v63 }
0x212f   :  { %5386 = vmatpush3.bf16.msra.mxu1 %v6286_v2 }
0x2130   :  { %5387 = vmatprep.subr.bf16.mxu1 %v5654_v63 }
0x21fd   :  { %v4935_v22 = vpop.f32.mrb[36].mxu1 }
0x21fe   :  { %v3490_v23 = vadd.f32 %v4935_v22, %v4322_v54  ;;  %v3484_v24 = vpop.f32.mrb[37].mxu1 }
0x21ff   :  { %v3485_v26 = vadd.f32 %v4322_v54, %v3484_v24  ;;  %v3645_v54 = vld [vmem:[%s4202_s12 + $0x8] sm:$0xff] }
0x2200   :  { %v3494_v25 = vmul.f32 %v3490_v23, %v3490_v23 }
0x2201   :  { %v3493_v27 = vmul.f32 %v3485_v26, %v3485_v26 }
0x2202   :  { %v3496_v28 = vmul.f32 %v3494_v25, %v3490_v23 }
0x2203   :  { %v3495_v53 = vmul.f32 %v3493_v27, %v3485_v26 }
0x2204   :  { %v3498_v29 = vmul.f32 0.044715, %v3496_v28  ;;  %v3646_v28 = vld [vmem:[%s4202_s12 + $0x10] sm:$0xff] }
0x2205   :  { %v3497_v12 = vmul.f32 0.044715, %v3495_v53  ;;  %v3647_v53 = vld [vmem:[%s4202_s12 + $0x18] sm:$0xff] }
0x2206   :  { %v3500_v30 = vadd.f32 %v3498_v29, %v3490_v23 }
0x2207   :  { %v3499_v31 = vadd.f32 %v3497_v12, %v3485_v26  ;;  %v5391_v12 = vpack.c.bf16 %v3647_v53, %v3646_v28 }
0x2208   :  { %v3502_v33 = vmul.f32 0.7978846, %v3500_v30 }
0x2209   :  { %v3501_v34 = vmul.f32 0.7978846, %v3499_v31 }
0x220a   :  { %5600 = vtanh.f32 %v3502_v33 }
0x220b   :  { %5602 = vtanh.f32 %v3501_v34 }
0x2214   :  { %v5601_v35 = vpop.eup %5600 }
0x2215   :  { %v5603_v36 = vpop.eup %5602  ;;  %v3506_v37 = vadd.f32 1.0, %v5601_v35 }
0x2216   :  { %v3505_v39 = vadd.f32 1.0, %v5603_v36 }
0x2217   :  { %v3508_v40 = vmul.f32 0.5, %v3506_v37 }
0x2218   :  { %v3507_v42 = vmul.f32 0.5, %v3505_v39 }
0x2219   :  { %v3510_v45 = vmul.f32 %v3508_v40, %v3490_v23 }
0x221a   :  { %v3509_v43 = vmul.f32 %v3507_v42, %v3485_v26  ;;  %v5388_v26 = vpack.c.bf16 %v3645_v54, %v3644_v21 }
0x221c   :  { %4968 = vmatprep.mubr.f32.mxu0 %v3509_v43 }
0x221d   :  { %4969 = vmatmul.mubr.f32.vlgmr.msra.gmra.mrb[24].mxu0 %v3510_v45 }
0x221e   :  { %5022 = vmatprep.mubr.msk.f32.mxu0 %vm5655_vm3, %v5656_v3 }
0x22f0   :  { %v4970_v46 = vpop.f32.mrb[24].mxu0 }
0x22f1   :  { %v3587_v48 = vadd.f32 %v4970_v46, %v6223_v17  ;;  %v3577_v49 = vpop.f32.mrb[25].mxu0 }
0x22f2   :  { %v3586_v51 = vadd.f32 %v3577_v49, %v6221_v16 }
0x22f3   :  { %v3595_v52 = vadd.f32 %v4325_v47, %v3587_v48 }
0x22f4   :  { %v3594_v55 = vadd.f32 %v4325_v47, %v3586_v51 }
0x22f5   :  { %v3601_v32 = vsel %vm638_vm0, %v3595_v52, 0.0 }
0x22f6   :  { %3602 = vadd.xlane.f32.xlu0 %v3601_v32  ;;  %v3598_v56 = vsel %vm638_vm0, %v3594_v55, 0.0 }
0x22f7   :  { %3599 = vadd.xlane.f32.xlu1 %v3598_v56 }
0x2383   :  { %v3603_v57 = vpop.xlane.xlu0 %3602 }
0x2384   :  { %v3605_v38 = vmul.f32 0.03125, %v3603_v57  ;;  %v3600_v41 = vpop.xlane.xlu1 %3599 }
0x2385   :  { %v3604_v20 = vmul.f32 0.03125, %v3600_v41 }
0x2386   :  { %v3607_v58 = vsub.f32 %v3595_v52, %v3605_v38 }
0x2387   :  { %v3606_v19 = vsub.f32 %v3594_v55, %v3604_v20 }
0x2388   :  { %v3609_v50 = vmul.f32 %v3607_v58, %v3607_v58 }
0x2389   :  { %v3608_v60 = vmul.f32 %v3606_v19, %v3606_v19 }
0x238a   :  { %v3613_v16 = vsel %vm638_vm0, %v3609_v50, 0.0 }
0x238b   :  { %v3610_v17 = vsel %vm638_vm0, %v3608_v60, 0.0 }
0x238c   :  { %3611 = vadd.xlane.f32.xlu1 %v3610_v17 }
0x2390   :  { %3614 = vadd.xlane.f32.xlu1 %v3613_v16 }
0x2419   :  { %v3612_v59 = vpop.xlane.xlu1 %3611 }
0x241a   :  { %v3616_v4 = vmul.f32 0.03125, %v3612_v59 }
0x241c   :  { %v3618_v5 = vadd.f32 1e-06, %v3616_v4 }
0x241d   :  { %v3615_v6 = vpop.xlane.xlu1 %3614 }
0x241e   :  { %5604 = vrsqrt.f32 %v3618_v5  ;;  %v3617_v8 = vmul.f32 0.03125, %v3615_v6 }
0x2420   :  { %v3619_v9 = vadd.f32 1e-06, %v3617_v8 }
0x2422   :  { %5606 = vrsqrt.f32 %v3619_v9 }
0x2428   :  { %v5605_v10 = vpop.eup %5604 }
0x2429   :  { %v3622_v14 = vmul.f32 %v5605_v10, %v3606_v19 }
0x242b   :  { %v3630_v18 = vmul.f32 %v4326_v11, %v3622_v14 }
0x242c   :  { %v5607_v22 = vpop.eup %5606 }
0x242d   :  { %v3623_v23 = vmul.f32 %v5607_v22, %v3607_v58  ;;  %v3638_v24 = vadd.f32 %v4327_v15, %v3630_v18 }
0x242f   :  { %v3631_v25 = vmul.f32 %v4326_v11, %v3623_v23  ;;  %v3649_v27 = vrot.slane %v3638_v24, 1  ;;  %v3722_v30 = vrot.slane %v3638_v24, 5 }
0x2431   :  { %4980 = vmatmul.mubr.msk.f32.vlgmr.msra.gmra.mrb[38].mxu1 %vm638_vm0, %v3649_v27  ;;  %v3639_v29 = vadd.f32 %v4327_v15, %v3631_v25 }
0x2432   :  { %5389 = vmatpush3.bf16.msra.mxu1 %v5388_v26  ;;  %4990 = vmatprep.mubr.msk.f32.mxu1 %vm5655_vm3, %v5656_v3 }
0x2433   :  { %5390 = vmatprep.subr.bf16.mxu1 %v5654_v63  ;;  %v3909_v52 = vrot.slane %v3639_v29, 1  ;;  %v3982_v55 = vrot.slane %v3639_v29, 5 }
0x2436   :  { %5392 = vmatpush3.bf16.msra.mxu1 %v5391_v12 }
0x2437   :  { %4993 = vmatprep.subr.mxu1 %v5656_v3 }
0x2439   :  { %4991 = vmatmul.mubr.msk.f32.vlgmr.msra.gmra.mrb[40].mxu1 %vm638_vm0, %v3722_v30 }
0x243a   :  { %4995 = vmatprep.mubr.msk.f32.mxu1 %vm5655_vm3, %v5656_v3 }
0x2504   :  { %v3718_v31 = vpop.f32.mrb[38].mxu1 }
0x2505   :  { %v3795_v33 = vmul.f32 %v3718_v31, %v3718_v31  ;;  %v4981_v34 = vpop.f32.mrb[39].mxu1 }
0x2507   :  { %v3797_v35 = vsel %vm3796_vm4, %v3795_v33, 0.0 }
0x2508   :  { %3798 = vadd.xlane.f32.xlu1 %v3797_v35 }
0x250c   :  { %v3791_v36 = vpop.f32.mrb[40].mxu1 }
0x250d   :  { %v3803_v37 = vmul.f32 %v3791_v36, %v3791_v36  ;;  %v4992_v39 = vpop.f32.mrb[41].mxu1 }
0x250f   :  { %v3805_v40 = vsel %vm3804_vm5, %v3803_v37, 0.0 }
0x2510   :  { %3806 = vadd.xlane.f32.xlu1 %v3805_v40 }
0x2595   :  { %v3799_v42 = vpop.xlane.xlu1 %3798 }
0x2596   :  { %v3800_v43 = vadd.f32 1e-12, %v3799_v42 }
0x2598   :  { %5608 = vrsqrt.f32 %v3800_v43 }
0x259d   :  { %v3807_v45 = vpop.xlane.xlu1 %3806 }
0x259e   :  { %v3808_v46 = vadd.f32 1e-12, %v3807_v45 }
0x25a0   :  { %5610 = vrsqrt.f32 %v3808_v46 }
0x25a2   :  { %v5609_v47 = vpop.eup %5608 }
0x25a3   :  { %v3802_v48 = vmul.f32 %v5609_v47, %v3718_v31 }
0x25a5   :  { %4994 = vmatpush3.xpose.msk.msra.mxu1 %vm638_vm0, %v3802_v48 }
0x25a6   :  { %5393 = vmatprep.subr.bf16.mxu1 %v5654_v63 }
0x25aa   :  { %v5611_v49 = vpop.eup %5610 }
0x25ab   :  { %v3810_v51 = vmul.f32 %v5611_v49, %v3791_v36 }
0x25ad   :  { %4996 = vmatmul.mubr.msk.f32.vlgmr.msra.gmra.mrb[42].mxu1 %vm638_vm0, %v3810_v51 }
0x25ae   :  { %5395 = vmatpush3.bf16.msra.mxu1 %v6281_v62  ;;  %5006 = vmatprep.mubr.msk.f32.mxu1 %vm5655_vm3, %v5656_v3 }
0x25af   :  { %5396 = vmatprep.subr.bf16.mxu1 %v5654_v63 }
0x25b2   :  { %5398 = vmatpush3.bf16.msra.mxu1 %v6286_v2 }
0x25b3   :  { %5399 = vmatprep.subr.bf16.mxu1 %v5654_v63 }
0x25b5   :  { %5007 = vmatmul.mubr.msk.f32.vlgmr.msra.gmra.mrb[44].mxu1 %vm638_vm0, %v3909_v52 }
0x25b6   :  { %5401 = vmatpush3.bf16.msra.mxu1 %v5388_v26  ;;  %5017 = vmatprep.mubr.msk.f32.mxu1 %vm5655_vm3, %v5656_v3 }
0x25b7   :  { %5402 = vmatprep.subr.bf16.mxu1 %v5654_v63 }
0x25ba   :  { %5404 = vmatpush3.bf16.msra.mxu1 %v5391_v12 }
0x25bd   :  { %5018 = vmatmul.mubr.msk.f32.vlgmr.msra.gmra.mrb[46].mxu1 %vm638_vm0, %v3982_v55 }
0x2680   :  { %v3883_v32 = vpop.f32.mrb[42].mxu1 }
0x2681   :  { %v4997_v56 = vpop.f32.mrb[43].mxu1  ;;  %v3888_v50 = vrot.slane %v3883_v32, 1  ;;  %v3892_v16 = vrot.slane %v3883_v32, 2 }
0x2688   :  { %v3978_v57 = vpop.f32.mrb[44].mxu1 }
0x2689   :  { %v4055_v38 = vmul.f32 %v3978_v57, %v3978_v57  ;;  %v5008_v41 = vpop.f32.mrb[45].mxu1 }
0x268b   :  { %v4056_v20 = vsel %vm3796_vm4, %v4055_v38, 0.0 }
0x268c   :  { %4057 = vadd.xlane.f32.xlu1 %v4056_v20 }
0x2690   :  { %v4051_v58 = vpop.f32.mrb[46].mxu1 }
0x2691   :  { %v4062_v19 = vmul.f32 %v4051_v58, %v4051_v58  ;;  %v5019_v60 = vpop.f32.mrb[47].mxu1 }
0x2693   :  { %v4063_v17 = vsel %vm3804_vm5, %v4062_v19, 0.0 }
0x2694   :  { %4064 = vadd.xlane.f32.xlu1 %v4063_v17 }
0x26a5   :  { %3889 = vrot.lane.b32.xlu1 %v3888_v50, %s5619_s18 }
0x26a9   :  { %3893 = vrot.lane.b32.xlu1 %v3892_v16, %s5628_s9 }
0x2719   :  { %v4058_v44 = vpop.xlane.xlu1 %4057 }
0x271a   :  { %v4059_v61 = vadd.f32 1e-12, %v4058_v44 }
0x271c   :  { %5612 = vrsqrt.f32 %v4059_v61 }
0x2721   :  { %v4065_v62 = vpop.xlane.xlu1 %4064 }
0x2722   :  { %v4066_v63 = vadd.f32 1e-12, %v4065_v62 }
0x2724   :  { %5614 = vrsqrt.f32 %v4066_v63 }
0x2725   :  { %v3890_v59 = vpop.permute.xlu1 %3889 }
0x2726   :  { %v5613_v0 = vpop.eup %5612  ;;  %v3897_v10 = vsel %vm3896_vm6, %v3883_v32, %v3890_v59 }
0x2727   :  { %v4061_v1 = vmul.f32 %v5613_v0, %v3978_v57 }
0x2729   :  { %5021 = vmatpush3.xpose.msk.msra.mxu0 %vm638_vm0, %v4061_v1  ;;  %v3894_v9 = vpop.permute.xlu1 %3893 }
0x272a   :  { %v3899_v11 = vsel %vm3898_vm7, %v3897_v10, %v3894_v9 }
0x272e   :  { %v5615_v2 = vpop.eup %5614 }
0x272f   :  { %v4068_v3 = vmul.f32 %v5615_v2, %v4051_v58 }
0x2731   :  { %5023 = vmatmul.mubr.msk.f32.vlgmr.msra.gmra.mrb[26].mxu0 %vm638_vm0, %v4068_v3 }
0x2804   :  { %v4141_v4 = vpop.f32.mrb[26].mxu0 }
0x2805   :  { %v4146_v5 = vrot.slane %v4141_v4, 1  ;;  %v4150_v6 = vrot.slane %v4141_v4, 2  ;;  %v5024_v8 = vpop.f32.mrb[27].mxu0 }
0x2807   :  { %4151 = vrot.lane.b32.xlu1 %v4150_v6, %s5628_s9  ;;  %4147 = vrot.lane.b32.xlu0 %v4146_v5, %s5619_s18 }
0x280b   :  { %3901 = vrot.lane.b32.xlu1 %v3899_v11, %s5652_s2 }
0x2879   :  { %v4148_v14 = vpop.permute.xlu0 %4147  ;;  %v4152_v15 = vpop.permute.xlu1 %4151 }
0x287a   :  { %v4154_v18 = vsel %vm3896_vm6, %v4141_v4, %v4148_v14 }
0x287b   :  { %v4155_v21 = vsel %vm3898_vm7, %v4154_v18, %v4152_v15 }
0x287c   :  { %4157 = vrot.lane.b32.xlu1 %v4155_v21, %s5652_s2 }
0x287d   :  { %v3902_v54 = vpop.permute.xlu1 %3901 }
0x287e   :  { %v3904_v22 = vsel %vm638_vm0, %v6138_v7, %v3902_v54 }
0x287f   :  { %v3906_v23 = vsel %vm3905_vm8, %v3904_v22, 0.0 }
0x2880   :  { %3907 = vst [vmem:[%s4203_s4] sm:$0x1] %v3906_v23 }
0x28ee   :  { %v4158_v24 = vpop.permute.xlu1 %4157 }
0x28ef   :  { %v4160_v26 = vsel %vm638_vm0, %v6143_v13, %v4158_v24 }
0x28f0   :  { %v4161_v25 = vsel %vm3905_vm8, %v4160_v26, 0.0 }
0x28f1   :  { %4162 = vst [vmem:[%s4203_s4 + $0x1] sm:$0x1] %v4161_v25 }

</bundles_post_ra>
